<compile_context>
chip_gen: v6e
topology: v6e:2x2x1
jax: 0.10.0
libtpu: 0.0.40
codegen_flags: <defaults>
</compile_context>

<pallas_src>
import functools

import jax
import jax.numpy as jnp
from jax.experimental import pallas as pl
from jax.experimental.pallas import tpu as pltpu

HIDDEN = 128  # nn.LSTM(hidden_size=128) in the reference module


def _round_up(n, m):
    return ((n + m - 1) // m) * m


# ----------------------------------------------------------------------------
# Fused LSTM + MLP-head kernel (one invocation per batch tile)
# ----------------------------------------------------------------------------
def drqn_kernel(x_ref, wih_ref, whh_ref, b_ref,                  # LSTM
                w1_ref, b1_ref, w2_ref, b2_ref, w3_ref, b3_ref,  # MLP head
                q_ref, hN_ref, cN_ref,                           # outputs
                gx_sc, h_sc):                                    # VMEM scratch
    """Full T-step recurrence + hoisted input projection + hoisted MLP head.

    x_ref  : (T, BT, n_in_pad)  time-major, BT % 8 == 0, features 128-padded
    wih    : (n_in_pad, 4H)     W_ih.T  (PyTorch gate order i,f,g,o)
    whh    : (H, 4H)            W_hh.T
    b_ref  : (1, 4H)            b_ih + b_hh (folded once)
    q_ref  : (T, BT, n_out_pad) lane-dense (128-wide) Q output, time-major
    gx_sc  : (T, BT, 4H)        precomputed input-projection gates
    h_sc   : (T, BT, H)         per-step hidden states (head input)
    """
    T, BT, n_in_pad = x_ref.shape
    H = HIDDEN
    n_out_pad = q_ref.shape[2]

    # --- (1) Hoisted input projection: one big MXU pass over all T*BT rows,
    #         bias folded in here (no per-step bias broadcast).
    x2d = x_ref[...].reshape(T * BT, n_in_pad)
    gx = jnp.dot(x2d, wih_ref[...], preferred_element_type=jnp.float32) + b_ref[...]
    gx_sc[...] = gx.reshape(T, BT, 4 * H)

    # --- (2) Recurrence: only h_{t-1} @ W_hh (K=128) on the serial path;
    #         h / c live in registers (fori_loop carry), not VMEM.
    def step(t, carry):
        h, c = carry
        gates = (jnp.dot(h, whh_ref[...], preferred_element_type=jnp.float32)
                 + gx_sc[t])                                     # (BT, 4H)
        i_g = jax.nn.sigmoid(gates[:, 0 * H:1 * H])
        f_g = jax.nn.sigmoid(gates[:, 1 * H:2 * H])
        g_g = jnp.tanh(gates[:, 2 * H:3 * H])
        o_g = jax.nn.sigmoid(gates[:, 3 * H:4 * H])
        c_new = f_g * c + i_g * g_g
        h_new = o_g * jnp.tanh(c_new)
        h_sc[t] = h_new                                          # feed the head
        return (h_new, c_new)

    h0 = jnp.zeros((BT, H), jnp.float32)                         # PyTorch default
    unroll = True if T <= 16 else 8                              # static (shape)
    hN, cN = jax.lax.fori_loop(0, T, step, (h0, h0), unroll=unroll)

    hN_ref[...] = hN.astype(hN_ref.dtype)
    cN_ref[...] = cN.astype(cN_ref.dtype)

    # --- (3) Hoisted MLP head: three batched (T*BT, 128) matmuls, biases
    #         applied once, single lane-dense q writeback.
    h_all = h_sc[...].reshape(T * BT, H)
    h1 = jnp.maximum(
        jnp.dot(h_all, w1_ref[...], preferred_element_type=jnp.float32)
        + b1_ref[...], 0.0)
    h2 = jnp.maximum(
        jnp.dot(h1, w2_ref[...], preferred_element_type=jnp.float32)
        + b2_ref[...], 0.0)
    q = (jnp.dot(h2, w3_ref[...], preferred_element_type=jnp.float32)
         + b3_ref[...])                                          # (T*BT, n_out_pad)
    q_ref[...] = q.reshape(T, BT, n_out_pad).astype(q_ref.dtype)


# ----------------------------------------------------------------------------
# Batch-tile picker: multiple of 8, <=64 (register-resident h/c), VMEM budget,
# and >=2 tiles on v7x so both TensorCores get a "parallel" grid iteration.
# ----------------------------------------------------------------------------
def _pick_bt(b_pad, t, n_in_pad, n_out_pad):
    budget = 20 << 20   # streamed bytes per tile (x,q double-buffered + scratch)
    per_row = 4 * (2 * n_in_pad + 2 * n_out_pad + 4 * HIDDEN + HIDDEN)

    bt = 8
    cand = min(b_pad, 64)
    cand -= cand % 8
    while cand >= 8:
        if b_pad % cand == 0 and t * cand * per_row <= budget:
            bt = cand
            break
        cand -= 8
    # TODO(synk): very long sequences (T*BT over the VMEM budget even at BT=8)
    # would need a time-chunk grid axis with manual double-buffered DMA.

    try:
        kind = jax.devices()[0].device_kind.lower()
    except Exception:
        kind = ""
    if "v7" in kind and b_pad // bt < 2 and b_pad >= 16:
        half = bt // 2
        while half >= 8 and b_pad % half:
            half -= 8
        if half >= 8:
            bt = half
    return bt


# ----------------------------------------------------------------------------
# Wrapper
# ----------------------------------------------------------------------------
@functools.partial(jax.jit, static_argnames=("n_output",))
def drqn_forward(x, kp, *, n_output):
    """x: (B, T, n_input) batch_first, like the PyTorch module.

    kp: kernel-layout params from prepare_params() (pre-transposed / padded).
    Returns (q, (h_n, c_n)) with q: (B, T, n_output), h_n/c_n: (1, B, 128).
    """
    B, T, n_in = x.shape
    H = HIDDEN
    n_in_pad = kp["w_ih_p"].shape[0]
    n_out_pad = kp["w3p"].shape[1]

    # Time-major, pad batch to 8 sublanes and features to 128 lanes (once).
    B_pad = _round_up(B, 8)
    x_tm = jnp.transpose(x, (1, 0, 2)).astype(jnp.float32)
    x_tm = jnp.pad(x_tm, ((0, 0), (0, B_pad - B), (0, n_in_pad - n_in)))

    BT = _pick_bt(B_pad, T, n_in_pad, n_out_pad)
    nb = B_pad // BT

    const = lambda shape: pl.BlockSpec(shape, lambda b: tuple(0 for _ in shape))

    q_tm, h_pad, c_pad = pl.pallas_call(
        drqn_kernel,
        out_shape=(
            jax.ShapeDtypeStruct((T, B_pad, n_out_pad), jnp.float32),
            jax.ShapeDtypeStruct((B_pad, H), jnp.float32),
            jax.ShapeDtypeStruct((B_pad, H), jnp.float32),
        ),
        grid_spec=pltpu.PrefetchScalarGridSpec(
            num_scalar_prefetch=0,
            grid=(nb,),
            in_specs=[
                pl.BlockSpec((T, BT, n_in_pad), lambda b: (0, b, 0)),
                const((n_in_pad, 4 * H)),          # W_ih.T (padded)
                const((H, 4 * H)),                 # W_hh.T
                const((1, 4 * H)),                 # folded LSTM bias
                const((H, H)), const((1, H)),      # head layer 1
                const((H, H)), const((1, H)),      # head layer 2
                const((H, n_out_pad)), const((1, n_out_pad)),  # head layer 3
            ],
            out_specs=[
                pl.BlockSpec((T, BT, n_out_pad), lambda b: (0, b, 0)),
                pl.BlockSpec((BT, H), lambda b: (b, 0)),
                pl.BlockSpec((BT, H), lambda b: (b, 0)),
            ],
            scratch_shapes=[
                pltpu.VMEM((T, BT, 4 * H), jnp.float32),  # gates_x (hoisted proj)
                pltpu.VMEM((T, BT, H), jnp.float32),      # per-step h for the head
            ],
        ),
        compiler_params=pltpu.CompilerParams(
            dimension_semantics=("parallel",),            # batch tiles independent
            vmem_limit_bytes=32 * 1024 * 1024),
    )(x_tm, kp["w_ih_p"], kp["w_hh_t"], kp["b_lstm"],
      kp["w1"], kp["b1"], kp["w2"], kp["b2"], kp["w3p"], kp["b3p"])

    # Slice the small padded q down first, then transpose back to batch_first.
    q = jnp.transpose(q_tm[:, :B, :n_output], (1, 0, 2)).astype(x.dtype)
    return q, (h_pad[:B][None], c_pad[:B][None])        # (1, B, H) like PyTorch


# ----------------------------------------------------------------------------
# One-time parameter preparation (outside the jitted forward): transpose,
# fold biases, zero-pad to lane-dense shapes.
# ----------------------------------------------------------------------------
def prepare_params(params, n_input, n_output):
    H = HIDDEN
    n_in_pad = _round_up(max(n_input, 1), 128)
    n_out_pad = _round_up(max(n_output, 1), 128)

    wih_t = params["w_ih"].T.astype(jnp.float32)                       # (n_in, 4H)
    w_ih_p = jnp.zeros((n_in_pad, 4 * H), jnp.float32).at[:n_input].set(wih_t)
    b_lstm = (params["b_ih"] + params["b_hh"]).reshape(1, 4 * H).astype(jnp.float32)

    w3p = jnp.zeros((H, n_out_pad), jnp.float32).at[:, :n_output].set(
        params["w3"].T)
    b3p = jnp.zeros((1, n_out_pad), jnp.float32).at[:, :n_output].set(params["b3"])

    return {
        "w_ih_p": w_ih_p,
        "w_hh_t": params["w_hh"].T.astype(jnp.float32),
        "b_lstm": b_lstm,
        "w1": params["w1"].T.astype(jnp.float32),
        "b1": params["b1"].reshape(1, -1).astype(jnp.float32),
        "w2": params["w2"].T.astype(jnp.float32),
        "b2": params["b2"].reshape(1, -1).astype(jnp.float32),
        "w3p": w3p, "b3p": b3p,
    }


# ----------------------------------------------------------------------------
# Deterministic parameter init (PyTorch default: U(-1/sqrt(fan), 1/sqrt(fan)))
# ----------------------------------------------------------------------------
def init_params(key, n_input, n_output):
    ks = jax.random.split(key, 10)
    bound = 1.0 / jnp.sqrt(HIDDEN)

    def u(k, shape):
        return jax.random.uniform(k, shape, jnp.float32, -bound, bound)

    return {
        # LSTM (PyTorch layout: weight_ih_l0 = (4H, n_input), gate order i,f,g,o)
        "w_ih": u(ks[0], (4 * HIDDEN, n_input)),
        "w_hh": u(ks[1], (4 * HIDDEN, HIDDEN)),
        "b_ih": u(ks[2], (4 * HIDDEN,)),
        "b_hh": u(ks[3], (4 * HIDDEN,)),
        # MLP head (PyTorch Linear layout: (out_features, in_features))
        "w1": u(ks[4], (HIDDEN, HIDDEN)), "b1": u(ks[5], (HIDDEN,)),
        "w2": u(ks[6], (HIDDEN, HIDDEN)), "b2": u(ks[7], (HIDDEN,)),
        "w3": u(ks[8], (n_output, HIDDEN)), "b3": u(ks[9], (n_output,)),
    }


# ----------------------------------------------------------------------------
# Pure-JAX reference (sanity check against the Pallas kernel)
# ----------------------------------------------------------------------------
def drqn_reference(x, p):
    B, T, _ = x.shape
    wih_t, whh_t = p["w_ih"].T, p["w_hh"].T
    b = p["b_ih"] + p["b_hh"]

    def step(carry, x_t):
        h, c = carry
        g = x_t @ wih_t + h @ whh_t + b
        i = jax.nn.sigmoid(g[:, 0 * HIDDEN:1 * HIDDEN])
        f = jax.nn.sigmoid(g[:, 1 * HIDDEN:2 * HIDDEN])
        gg = jnp.tanh(g[:, 2 * HIDDEN:3 * HIDDEN])
        o = jax.nn.sigmoid(g[:, 3 * HIDDEN:4 * HIDDEN])
        c = f * c + i * gg
        h = o * jnp.tanh(c)
        return (h, c), h

    h0 = jnp.zeros((B, HIDDEN), jnp.float32)
    (hN, cN), o_tm = jax.lax.scan(step, (h0, h0), jnp.transpose(x, (1, 0, 2)))
    o = jnp.transpose(o_tm, (1, 0, 2))
    h1 = jnp.maximum(o @ p["w1"].T + p["b1"], 0.0)
    h2 = jnp.maximum(h1 @ p["w2"].T + p["b2"], 0.0)
    q = h2 @ p["w3"].T + p["b3"]
    return q, (hN[None], cN[None])


if __name__ == "__main__":
    B, T, N_INPUT, N_OUTPUT = 2, 8, 32, 4

    key = jax.random.PRNGKey(0)
    k_x, k_p = jax.random.split(key)
    x = jax.random.normal(k_x, (B, T, N_INPUT), jnp.float32)
    params = init_params(k_p, N_INPUT, N_OUTPUT)
    kparams = prepare_params(params, N_INPUT, N_OUTPUT)   # once, outside jit

    q, (h_n, c_n) = drqn_forward(x, kparams, n_output=N_OUTPUT)
    jax.block_until_ready((q, h_n, c_n))

    # Sanity check vs pure-JAX reference.
    q_ref, (h_ref, c_ref) = drqn_reference(x, params)
    assert q.shape == (B, T, N_OUTPUT) and h_n.shape == (1, B, HIDDEN)
    assert jnp.allclose(q, q_ref, atol=1e-2, rtol=1e-2)
    assert jnp.allclose(h_n, h_ref, atol=1e-2, rtol=1e-2)
    assert jnp.allclose(c_n, c_ref, atol=1e-2, rtol=1e-2)

    print("KERNEL_OK")
</pallas_src>

<mosaic_0001>
module attributes {stable_mosaic.version = 11 : i64} {
  func.func @drqn_kernel(%arg0: i32, %arg1: memref<8x8x128xf32, #tpu.memory_space<vmem>>, %arg2: memref<128x512xf32, #tpu.memory_space<vmem>>, %arg3: memref<128x512xf32, #tpu.memory_space<vmem>>, %arg4: memref<1x512xf32, #tpu.memory_space<vmem>>, %arg5: memref<128x128xf32, #tpu.memory_space<vmem>>, %arg6: memref<1x128xf32, #tpu.memory_space<vmem>>, %arg7: memref<128x128xf32, #tpu.memory_space<vmem>>, %arg8: memref<1x128xf32, #tpu.memory_space<vmem>>, %arg9: memref<128x128xf32, #tpu.memory_space<vmem>>, %arg10: memref<1x128xf32, #tpu.memory_space<vmem>>, %arg11: memref<8x8x128xf32, #tpu.memory_space<vmem>>, %arg12: memref<8x128xf32, #tpu.memory_space<vmem>>, %arg13: memref<8x128xf32, #tpu.memory_space<vmem>>, %arg14: memref<8x8x512xf32, #tpu.memory_space<vmem>>, %arg15: memref<8x8x128xf32, #tpu.memory_space<vmem>>) attributes {dimension_semantics = [#tpu.dimension_semantics<parallel>], iteration_bounds = array<i64: 1>, scalar_prefetch = 0 : i64, scratch_operands = 2 : i64, tpu.core_type = #tpu.core_type<tc>, window_params = [{transform_indices = @transform_0, window_bounds = array<i64: 8, 8, 128>}, {pipeline_mode = #tpu.pipeline_mode<synchronous>, transform_indices = @transform_1, window_bounds = array<i64: 128, 512>}, {pipeline_mode = #tpu.pipeline_mode<synchronous>, transform_indices = @transform_2, window_bounds = array<i64: 128, 512>}, {pipeline_mode = #tpu.pipeline_mode<synchronous>, transform_indices = @transform_3, window_bounds = array<i64: 1, 512>}, {pipeline_mode = #tpu.pipeline_mode<synchronous>, transform_indices = @transform_4, window_bounds = array<i64: 128, 128>}, {pipeline_mode = #tpu.pipeline_mode<synchronous>, transform_indices = @transform_5, window_bounds = array<i64: 1, 128>}, {pipeline_mode = #tpu.pipeline_mode<synchronous>, transform_indices = @transform_6, window_bounds = array<i64: 128, 128>}, {pipeline_mode = #tpu.pipeline_mode<synchronous>, transform_indices = @transform_7, window_bounds = array<i64: 1, 128>}, {pipeline_mode = #tpu.pipeline_mode<synchronous>, transform_indices = @transform_8, window_bounds = array<i64: 128, 128>}, {pipeline_mode = #tpu.pipeline_mode<synchronous>, transform_indices = @transform_9, window_bounds = array<i64: 1, 128>}, {transform_indices = @transform_10, window_bounds = array<i64: 8, 8, 128>}, {transform_indices = @transform_11, window_bounds = array<i64: 8, 128>}, {transform_indices = @transform_12, window_bounds = array<i64: 8, 128>}]} {
    %c0 = arith.constant 0 : index
    %c0_0 = arith.constant 0 : index
    %c0_1 = arith.constant 0 : index
    %0 = vector.load %arg1[%c0, %c0_0, %c0_1] : memref<8x8x128xf32, #tpu.memory_space<vmem>>, vector<8x8x128xf32>
    %1 = vector.shape_cast %0 : vector<8x8x128xf32> to vector<64x128xf32>
    %c0_2 = arith.constant 0 : index
    %c0_3 = arith.constant 0 : index
    %2 = vector.load %arg2[%c0_2, %c0_3] : memref<128x512xf32, #tpu.memory_space<vmem>>, vector<128x512xf32>
    %cst = arith.constant dense<0.000000e+00> : vector<64x512xf32>
    %3 = tpu.matmul %1, %2, %cst {dimension_numbers = #tpu.dot_dimension_numbers<[1], [0], [0], [1], [0, 0, 1, 1], [], []>} : vector<64x128xf32>, vector<128x512xf32>, vector<64x512xf32> -> vector<64x512xf32>
    %c0_4 = arith.constant 0 : index
    %c0_5 = arith.constant 0 : index
    %4 = vector.load %arg4[%c0_4, %c0_5] : memref<1x512xf32, #tpu.memory_space<vmem>>, vector<1x512xf32>
    %5 = vector.broadcast %4 : vector<1x512xf32> to vector<64x512xf32>
    %6 = arith.addf %3, %5 : vector<64x512xf32>
    %7 = vector.shape_cast %6 : vector<64x512xf32> to vector<8x8x512xf32>
    %c0_6 = arith.constant 0 : index
    %c0_7 = arith.constant 0 : index
    %c0_8 = arith.constant 0 : index
    %8 = vector.load %arg14[%c0_6, %c0_7, %c0_8] : memref<8x8x512xf32, #tpu.memory_space<vmem>>, vector<8x8x512xf32>
    tpu.vector_store %arg14[%c0_6, %c0_7, %c0_8], %7 {strides = array<i32>} : memref<8x8x512xf32, #tpu.memory_space<vmem>>, vector<8x8x512xf32>,
    %cst_9 = arith.constant 0.000000e+00 : f32
    %9 = vector.broadcast %cst_9 : f32 to vector<8x128xf32>
    %c0_i32 = arith.constant 0 : i32
    %c0_10 = arith.constant 0 : index
    %c0_11 = arith.constant 0 : index
    %10 = vector.load %arg3[%c0_10, %c0_11] : memref<128x512xf32, #tpu.memory_space<vmem>>, vector<128x512xf32>
    %cst_12 = arith.constant dense<0.000000e+00> : vector<8x512xf32>
    %11 = tpu.matmul %9, %10, %cst_12 {dimension_numbers = #tpu.dot_dimension_numbers<[1], [0], [0], [1], [0, 0, 1, 1], [], []>} : vector<8x128xf32>, vector<128x512xf32>, vector<8x512xf32> -> vector<8x512xf32>
    %12 = arith.index_cast %c0_i32 : i32 to index
    %c0_13 = arith.constant 0 : index
    %c0_14 = arith.constant 0 : index
    %13 = vector.load %arg14[%12, %c0_13, %c0_14] : memref<8x8x512xf32, #tpu.memory_space<vmem>>, vector<1x8x512xf32>
    %14 = vector.shape_cast %13 : vector<1x8x512xf32> to vector<8x512xf32>
    %15 = arith.addf %11, %14 : vector<8x512xf32>
    %16 = vector.extract_strided_slice %15 {offsets = [0, 0], sizes = [8, 128], strides = [1, 1]} : vector<8x512xf32> to vector<8x128xf32>
    %17 = arith.negf %16 : vector<8x128xf32>
    %18 = math.exp %17 : vector<8x128xf32>
    %cst_15 = arith.constant 1.000000e+00 : f32
    %19 = vector.broadcast %cst_15 : f32 to vector<8x128xf32>
    %20 = arith.addf %19, %18 : vector<8x128xf32>
    %21 = arith.divf %19, %20 : vector<8x128xf32>
    %22 = vector.extract_strided_slice %15 {offsets = [0, 128], sizes = [8, 128], strides = [1, 1]} : vector<8x512xf32> to vector<8x128xf32>
    %23 = arith.negf %22 : vector<8x128xf32>
    %24 = math.exp %23 : vector<8x128xf32>
    %cst_16 = arith.constant 1.000000e+00 : f32
    %25 = vector.broadcast %cst_16 : f32 to vector<8x128xf32>
    %26 = arith.addf %25, %24 : vector<8x128xf32>
    %27 = arith.divf %25, %26 : vector<8x128xf32>
    %28 = vector.extract_strided_slice %15 {offsets = [0, 256], sizes = [8, 128], strides = [1, 1]} : vector<8x512xf32> to vector<8x128xf32>
    %29 = math.tanh %28 : vector<8x128xf32>
    %30 = vector.extract_strided_slice %15 {offsets = [0, 384], sizes = [8, 128], strides = [1, 1]} : vector<8x512xf32> to vector<8x128xf32>
    %31 = arith.negf %30 : vector<8x128xf32>
    %32 = math.exp %31 : vector<8x128xf32>
    %cst_17 = arith.constant 1.000000e+00 : f32
    %33 = vector.broadcast %cst_17 : f32 to vector<8x128xf32>
    %34 = arith.addf %33, %32 : vector<8x128xf32>
    %35 = arith.divf %33, %34 : vector<8x128xf32>
    %36 = arith.mulf %27, %9 : vector<8x128xf32>
    %37 = arith.mulf %21, %29 : vector<8x128xf32>
    %38 = arith.addf %36, %37 : vector<8x128xf32>
    %39 = math.tanh %38 : vector<8x128xf32>
    %40 = arith.mulf %35, %39 : vector<8x128xf32>
    %41 = arith.index_cast %c0_i32 : i32 to index
    %c0_18 = arith.constant 0 : index
    %c0_19 = arith.constant 0 : index
    %42 = vector.load %arg15[%41, %c0_18, %c0_19] : memref<8x8x128xf32, #tpu.memory_space<vmem>>, vector<1x8x128xf32>
    %43 = vector.shape_cast %42 : vector<1x8x128xf32> to vector<8x128xf32>
    %44 = vector.shape_cast %40 : vector<8x128xf32> to vector<1x8x128xf32>
    tpu.vector_store %arg15[%41, %c0_18, %c0_19], %44 {strides = array<i32>} : memref<8x8x128xf32, #tpu.memory_space<vmem>>, vector<1x8x128xf32>,
    %c1_i32 = arith.constant 1 : i32
    %c0_20 = arith.constant 0 : index
    %c0_21 = arith.constant 0 : index
    %45 = vector.load %arg3[%c0_20, %c0_21] : memref<128x512xf32, #tpu.memory_space<vmem>>, vector<128x512xf32>
    %cst_22 = arith.constant dense<0.000000e+00> : vector<8x512xf32>
    %46 = tpu.matmul %40, %45, %cst_22 {dimension_numbers = #tpu.dot_dimension_numbers<[1], [0], [0], [1], [0, 0, 1, 1], [], []>} : vector<8x128xf32>, vector<128x512xf32>, vector<8x512xf32> -> vector<8x512xf32>
    %47 = arith.index_cast %c1_i32 : i32 to index
    %c0_23 = arith.constant 0 : index
    %c0_24 = arith.constant 0 : index
    %48 = vector.load %arg14[%47, %c0_23, %c0_24] : memref<8x8x512xf32, #tpu.memory_space<vmem>>, vector<1x8x512xf32>
    %49 = vector.shape_cast %48 : vector<1x8x512xf32> to vector<8x512xf32>
    %50 = arith.addf %46, %49 : vector<8x512xf32>
    %51 = vector.extract_strided_slice %50 {offsets = [0, 0], sizes = [8, 128], strides = [1, 1]} : vector<8x512xf32> to vector<8x128xf32>
    %52 = arith.negf %51 : vector<8x128xf32>
    %53 = math.exp %52 : vector<8x128xf32>
    %cst_25 = arith.constant 1.000000e+00 : f32
    %54 = vector.broadcast %cst_25 : f32 to vector<8x128xf32>
    %55 = arith.addf %54, %53 : vector<8x128xf32>
    %56 = arith.divf %54, %55 : vector<8x128xf32>
    %57 = vector.extract_strided_slice %50 {offsets = [0, 128], sizes = [8, 128], strides = [1, 1]} : vector<8x512xf32> to vector<8x128xf32>
    %58 = arith.negf %57 : vector<8x128xf32>
    %59 = math.exp %58 : vector<8x128xf32>
    %cst_26 = arith.constant 1.000000e+00 : f32
    %60 = vector.broadcast %cst_26 : f32 to vector<8x128xf32>
    %61 = arith.addf %60, %59 : vector<8x128xf32>
    %62 = arith.divf %60, %61 : vector<8x128xf32>
    %63 = vector.extract_strided_slice %50 {offsets = [0, 256], sizes = [8, 128], strides = [1, 1]} : vector<8x512xf32> to vector<8x128xf32>
    %64 = math.tanh %63 : vector<8x128xf32>
    %65 = vector.extract_strided_slice %50 {offsets = [0, 384], sizes = [8, 128], strides = [1, 1]} : vector<8x512xf32> to vector<8x128xf32>
    %66 = arith.negf %65 : vector<8x128xf32>
    %67 = math.exp %66 : vector<8x128xf32>
    %cst_27 = arith.constant 1.000000e+00 : f32
    %68 = vector.broadcast %cst_27 : f32 to vector<8x128xf32>
    %69 = arith.addf %68, %67 : vector<8x128xf32>
    %70 = arith.divf %68, %69 : vector<8x128xf32>
    %71 = arith.mulf %62, %38 : vector<8x128xf32>
    %72 = arith.mulf %56, %64 : vector<8x128xf32>
    %73 = arith.addf %71, %72 : vector<8x128xf32>
    %74 = math.tanh %73 : vector<8x128xf32>
    %75 = arith.mulf %70, %74 : vector<8x128xf32>
    %76 = arith.index_cast %c1_i32 : i32 to index
    %c0_28 = arith.constant 0 : index
    %c0_29 = arith.constant 0 : index
    %77 = vector.load %arg15[%76, %c0_28, %c0_29] : memref<8x8x128xf32, #tpu.memory_space<vmem>>, vector<1x8x128xf32>
    %78 = vector.shape_cast %77 : vector<1x8x128xf32> to vector<8x128xf32>
    %79 = vector.shape_cast %75 : vector<8x128xf32> to vector<1x8x128xf32>
    tpu.vector_store %arg15[%76, %c0_28, %c0_29], %79 {strides = array<i32>} : memref<8x8x128xf32, #tpu.memory_space<vmem>>, vector<1x8x128xf32>,
    %c2_i32 = arith.constant 2 : i32
    %c0_30 = arith.constant 0 : index
    %c0_31 = arith.constant 0 : index
    %80 = vector.load %arg3[%c0_30, %c0_31] : memref<128x512xf32, #tpu.memory_space<vmem>>, vector<128x512xf32>
    %cst_32 = arith.constant dense<0.000000e+00> : vector<8x512xf32>
    %81 = tpu.matmul %75, %80, %cst_32 {dimension_numbers = #tpu.dot_dimension_numbers<[1], [0], [0], [1], [0, 0, 1, 1], [], []>} : vector<8x128xf32>, vector<128x512xf32>, vector<8x512xf32> -> vector<8x512xf32>
    %82 = arith.index_cast %c2_i32 : i32 to index
    %c0_33 = arith.constant 0 : index
    %c0_34 = arith.constant 0 : index
    %83 = vector.load %arg14[%82, %c0_33, %c0_34] : memref<8x8x512xf32, #tpu.memory_space<vmem>>, vector<1x8x512xf32>
    %84 = vector.shape_cast %83 : vector<1x8x512xf32> to vector<8x512xf32>
    %85 = arith.addf %81, %84 : vector<8x512xf32>
    %86 = vector.extract_strided_slice %85 {offsets = [0, 0], sizes = [8, 128], strides = [1, 1]} : vector<8x512xf32> to vector<8x128xf32>
    %87 = arith.negf %86 : vector<8x128xf32>
    %88 = math.exp %87 : vector<8x128xf32>
    %cst_35 = arith.constant 1.000000e+00 : f32
    %89 = vector.broadcast %cst_35 : f32 to vector<8x128xf32>
    %90 = arith.addf %89, %88 : vector<8x128xf32>
    %91 = arith.divf %89, %90 : vector<8x128xf32>
    %92 = vector.extract_strided_slice %85 {offsets = [0, 128], sizes = [8, 128], strides = [1, 1]} : vector<8x512xf32> to vector<8x128xf32>
    %93 = arith.negf %92 : vector<8x128xf32>
    %94 = math.exp %93 : vector<8x128xf32>
    %cst_36 = arith.constant 1.000000e+00 : f32
    %95 = vector.broadcast %cst_36 : f32 to vector<8x128xf32>
    %96 = arith.addf %95, %94 : vector<8x128xf32>
    %97 = arith.divf %95, %96 : vector<8x128xf32>
    %98 = vector.extract_strided_slice %85 {offsets = [0, 256], sizes = [8, 128], strides = [1, 1]} : vector<8x512xf32> to vector<8x128xf32>
    %99 = math.tanh %98 : vector<8x128xf32>
    %100 = vector.extract_strided_slice %85 {offsets = [0, 384], sizes = [8, 128], strides = [1, 1]} : vector<8x512xf32> to vector<8x128xf32>
    %101 = arith.negf %100 : vector<8x128xf32>
    %102 = math.exp %101 : vector<8x128xf32>
    %cst_37 = arith.constant 1.000000e+00 : f32
    %103 = vector.broadcast %cst_37 : f32 to vector<8x128xf32>
    %104 = arith.addf %103, %102 : vector<8x128xf32>
    %105 = arith.divf %103, %104 : vector<8x128xf32>
    %106 = arith.mulf %97, %73 : vector<8x128xf32>
    %107 = arith.mulf %91, %99 : vector<8x128xf32>
    %108 = arith.addf %106, %107 : vector<8x128xf32>
    %109 = math.tanh %108 : vector<8x128xf32>
    %110 = arith.mulf %105, %109 : vector<8x128xf32>
    %111 = arith.index_cast %c2_i32 : i32 to index
    %c0_38 = arith.constant 0 : index
    %c0_39 = arith.constant 0 : index
    %112 = vector.load %arg15[%111, %c0_38, %c0_39] : memref<8x8x128xf32, #tpu.memory_space<vmem>>, vector<1x8x128xf32>
    %113 = vector.shape_cast %112 : vector<1x8x128xf32> to vector<8x128xf32>
    %114 = vector.shape_cast %110 : vector<8x128xf32> to vector<1x8x128xf32>
    tpu.vector_store %arg15[%111, %c0_38, %c0_39], %114 {strides = array<i32>} : memref<8x8x128xf32, #tpu.memory_space<vmem>>, vector<1x8x128xf32>,
    %c3_i32 = arith.constant 3 : i32
    %c0_40 = arith.constant 0 : index
    %c0_41 = arith.constant 0 : index
    %115 = vector.load %arg3[%c0_40, %c0_41] : memref<128x512xf32, #tpu.memory_space<vmem>>, vector<128x512xf32>
    %cst_42 = arith.constant dense<0.000000e+00> : vector<8x512xf32>
    %116 = tpu.matmul %110, %115, %cst_42 {dimension_numbers = #tpu.dot_dimension_numbers<[1], [0], [0], [1], [0, 0, 1, 1], [], []>} : vector<8x128xf32>, vector<128x512xf32>, vector<8x512xf32> -> vector<8x512xf32>
    %117 = arith.index_cast %c3_i32 : i32 to index
    %c0_43 = arith.constant 0 : index
    %c0_44 = arith.constant 0 : index
    %118 = vector.load %arg14[%117, %c0_43, %c0_44] : memref<8x8x512xf32, #tpu.memory_space<vmem>>, vector<1x8x512xf32>
    %119 = vector.shape_cast %118 : vector<1x8x512xf32> to vector<8x512xf32>
    %120 = arith.addf %116, %119 : vector<8x512xf32>
    %121 = vector.extract_strided_slice %120 {offsets = [0, 0], sizes = [8, 128], strides = [1, 1]} : vector<8x512xf32> to vector<8x128xf32>
    %122 = arith.negf %121 : vector<8x128xf32>
    %123 = math.exp %122 : vector<8x128xf32>
    %cst_45 = arith.constant 1.000000e+00 : f32
    %124 = vector.broadcast %cst_45 : f32 to vector<8x128xf32>
    %125 = arith.addf %124, %123 : vector<8x128xf32>
    %126 = arith.divf %124, %125 : vector<8x128xf32>
    %127 = vector.extract_strided_slice %120 {offsets = [0, 128], sizes = [8, 128], strides = [1, 1]} : vector<8x512xf32> to vector<8x128xf32>
    %128 = arith.negf %127 : vector<8x128xf32>
    %129 = math.exp %128 : vector<8x128xf32>
    %cst_46 = arith.constant 1.000000e+00 : f32
    %130 = vector.broadcast %cst_46 : f32 to vector<8x128xf32>
    %131 = arith.addf %130, %129 : vector<8x128xf32>
    %132 = arith.divf %130, %131 : vector<8x128xf32>
    %133 = vector.extract_strided_slice %120 {offsets = [0, 256], sizes = [8, 128], strides = [1, 1]} : vector<8x512xf32> to vector<8x128xf32>
    %134 = math.tanh %133 : vector<8x128xf32>
    %135 = vector.extract_strided_slice %120 {offsets = [0, 384], sizes = [8, 128], strides = [1, 1]} : vector<8x512xf32> to vector<8x128xf32>
    %136 = arith.negf %135 : vector<8x128xf32>
    %137 = math.exp %136 : vector<8x128xf32>
    %cst_47 = arith.constant 1.000000e+00 : f32
    %138 = vector.broadcast %cst_47 : f32 to vector<8x128xf32>
    %139 = arith.addf %138, %137 : vector<8x128xf32>
    %140 = arith.divf %138, %139 : vector<8x128xf32>
    %141 = arith.mulf %132, %108 : vector<8x128xf32>
    %142 = arith.mulf %126, %134 : vector<8x128xf32>
    %143 = arith.addf %141, %142 : vector<8x128xf32>
    %144 = math.tanh %143 : vector<8x128xf32>
    %145 = arith.mulf %140, %144 : vector<8x128xf32>
    %146 = arith.index_cast %c3_i32 : i32 to index
    %c0_48 = arith.constant 0 : index
    %c0_49 = arith.constant 0 : index
    %147 = vector.load %arg15[%146, %c0_48, %c0_49] : memref<8x8x128xf32, #tpu.memory_space<vmem>>, vector<1x8x128xf32>
    %148 = vector.shape_cast %147 : vector<1x8x128xf32> to vector<8x128xf32>
    %149 = vector.shape_cast %145 : vector<8x128xf32> to vector<1x8x128xf32>
    tpu.vector_store %arg15[%146, %c0_48, %c0_49], %149 {strides = array<i32>} : memref<8x8x128xf32, #tpu.memory_space<vmem>>, vector<1x8x128xf32>,
    %c4_i32 = arith.constant 4 : i32
    %c0_50 = arith.constant 0 : index
    %c0_51 = arith.constant 0 : index
    %150 = vector.load %arg3[%c0_50, %c0_51] : memref<128x512xf32, #tpu.memory_space<vmem>>, vector<128x512xf32>
    %cst_52 = arith.constant dense<0.000000e+00> : vector<8x512xf32>
    %151 = tpu.matmul %145, %150, %cst_52 {dimension_numbers = #tpu.dot_dimension_numbers<[1], [0], [0], [1], [0, 0, 1, 1], [], []>} : vector<8x128xf32>, vector<128x512xf32>, vector<8x512xf32> -> vector<8x512xf32>
    %152 = arith.index_cast %c4_i32 : i32 to index
    %c0_53 = arith.constant 0 : index
    %c0_54 = arith.constant 0 : index
    %153 = vector.load %arg14[%152, %c0_53, %c0_54] : memref<8x8x512xf32, #tpu.memory_space<vmem>>, vector<1x8x512xf32>
    %154 = vector.shape_cast %153 : vector<1x8x512xf32> to vector<8x512xf32>
    %155 = arith.addf %151, %154 : vector<8x512xf32>
    %156 = vector.extract_strided_slice %155 {offsets = [0, 0], sizes = [8, 128], strides = [1, 1]} : vector<8x512xf32> to vector<8x128xf32>
    %157 = arith.negf %156 : vector<8x128xf32>
    %158 = math.exp %157 : vector<8x128xf32>
    %cst_55 = arith.constant 1.000000e+00 : f32
    %159 = vector.broadcast %cst_55 : f32 to vector<8x128xf32>
    %160 = arith.addf %159, %158 : vector<8x128xf32>
    %161 = arith.divf %159, %160 : vector<8x128xf32>
    %162 = vector.extract_strided_slice %155 {offsets = [0, 128], sizes = [8, 128], strides = [1, 1]} : vector<8x512xf32> to vector<8x128xf32>
    %163 = arith.negf %162 : vector<8x128xf32>
    %164 = math.exp %163 : vector<8x128xf32>
    %cst_56 = arith.constant 1.000000e+00 : f32
    %165 = vector.broadcast %cst_56 : f32 to vector<8x128xf32>
    %166 = arith.addf %165, %164 : vector<8x128xf32>
    %167 = arith.divf %165, %166 : vector<8x128xf32>
    %168 = vector.extract_strided_slice %155 {offsets = [0, 256], sizes = [8, 128], strides = [1, 1]} : vector<8x512xf32> to vector<8x128xf32>
    %169 = math.tanh %168 : vector<8x128xf32>
    %170 = vector.extract_strided_slice %155 {offsets = [0, 384], sizes = [8, 128], strides = [1, 1]} : vector<8x512xf32> to vector<8x128xf32>
    %171 = arith.negf %170 : vector<8x128xf32>
    %172 = math.exp %171 : vector<8x128xf32>
    %cst_57 = arith.constant 1.000000e+00 : f32
    %173 = vector.broadcast %cst_57 : f32 to vector<8x128xf32>
    %174 = arith.addf %173, %172 : vector<8x128xf32>
    %175 = arith.divf %173, %174 : vector<8x128xf32>
    %176 = arith.mulf %167, %143 : vector<8x128xf32>
    %177 = arith.mulf %161, %169 : vector<8x128xf32>
    %178 = arith.addf %176, %177 : vector<8x128xf32>
    %179 = math.tanh %178 : vector<8x128xf32>
    %180 = arith.mulf %175, %179 : vector<8x128xf32>
    %181 = arith.index_cast %c4_i32 : i32 to index
    %c0_58 = arith.constant 0 : index
    %c0_59 = arith.constant 0 : index
    %182 = vector.load %arg15[%181, %c0_58, %c0_59] : memref<8x8x128xf32, #tpu.memory_space<vmem>>, vector<1x8x128xf32>
    %183 = vector.shape_cast %182 : vector<1x8x128xf32> to vector<8x128xf32>
    %184 = vector.shape_cast %180 : vector<8x128xf32> to vector<1x8x128xf32>
    tpu.vector_store %arg15[%181, %c0_58, %c0_59], %184 {strides = array<i32>} : memref<8x8x128xf32, #tpu.memory_space<vmem>>, vector<1x8x128xf32>,
    %c5_i32 = arith.constant 5 : i32
    %c0_60 = arith.constant 0 : index
    %c0_61 = arith.constant 0 : index
    %185 = vector.load %arg3[%c0_60, %c0_61] : memref<128x512xf32, #tpu.memory_space<vmem>>, vector<128x512xf32>
    %cst_62 = arith.constant dense<0.000000e+00> : vector<8x512xf32>
    %186 = tpu.matmul %180, %185, %cst_62 {dimension_numbers = #tpu.dot_dimension_numbers<[1], [0], [0], [1], [0, 0, 1, 1], [], []>} : vector<8x128xf32>, vector<128x512xf32>, vector<8x512xf32> -> vector<8x512xf32>
    %187 = arith.index_cast %c5_i32 : i32 to index
    %c0_63 = arith.constant 0 : index
    %c0_64 = arith.constant 0 : index
    %188 = vector.load %arg14[%187, %c0_63, %c0_64] : memref<8x8x512xf32, #tpu.memory_space<vmem>>, vector<1x8x512xf32>
    %189 = vector.shape_cast %188 : vector<1x8x512xf32> to vector<8x512xf32>
    %190 = arith.addf %186, %189 : vector<8x512xf32>
    %191 = vector.extract_strided_slice %190 {offsets = [0, 0], sizes = [8, 128], strides = [1, 1]} : vector<8x512xf32> to vector<8x128xf32>
    %192 = arith.negf %191 : vector<8x128xf32>
    %193 = math.exp %192 : vector<8x128xf32>
    %cst_65 = arith.constant 1.000000e+00 : f32
    %194 = vector.broadcast %cst_65 : f32 to vector<8x128xf32>
    %195 = arith.addf %194, %193 : vector<8x128xf32>
    %196 = arith.divf %194, %195 : vector<8x128xf32>
    %197 = vector.extract_strided_slice %190 {offsets = [0, 128], sizes = [8, 128], strides = [1, 1]} : vector<8x512xf32> to vector<8x128xf32>
    %198 = arith.negf %197 : vector<8x128xf32>
    %199 = math.exp %198 : vector<8x128xf32>
    %cst_66 = arith.constant 1.000000e+00 : f32
    %200 = vector.broadcast %cst_66 : f32 to vector<8x128xf32>
    %201 = arith.addf %200, %199 : vector<8x128xf32>
    %202 = arith.divf %200, %201 : vector<8x128xf32>
    %203 = vector.extract_strided_slice %190 {offsets = [0, 256], sizes = [8, 128], strides = [1, 1]} : vector<8x512xf32> to vector<8x128xf32>
    %204 = math.tanh %203 : vector<8x128xf32>
    %205 = vector.extract_strided_slice %190 {offsets = [0, 384], sizes = [8, 128], strides = [1, 1]} : vector<8x512xf32> to vector<8x128xf32>
    %206 = arith.negf %205 : vector<8x128xf32>
    %207 = math.exp %206 : vector<8x128xf32>
    %cst_67 = arith.constant 1.000000e+00 : f32
    %208 = vector.broadcast %cst_67 : f32 to vector<8x128xf32>
    %209 = arith.addf %208, %207 : vector<8x128xf32>
    %210 = arith.divf %208, %209 : vector<8x128xf32>
    %211 = arith.mulf %202, %178 : vector<8x128xf32>
    %212 = arith.mulf %196, %204 : vector<8x128xf32>
    %213 = arith.addf %211, %212 : vector<8x128xf32>
    %214 = math.tanh %213 : vector<8x128xf32>
    %215 = arith.mulf %210, %214 : vector<8x128xf32>
    %216 = arith.index_cast %c5_i32 : i32 to index
    %c0_68 = arith.constant 0 : index
    %c0_69 = arith.constant 0 : index
    %217 = vector.load %arg15[%216, %c0_68, %c0_69] : memref<8x8x128xf32, #tpu.memory_space<vmem>>, vector<1x8x128xf32>
    %218 = vector.shape_cast %217 : vector<1x8x128xf32> to vector<8x128xf32>
    %219 = vector.shape_cast %215 : vector<8x128xf32> to vector<1x8x128xf32>
    tpu.vector_store %arg15[%216, %c0_68, %c0_69], %219 {strides = array<i32>} : memref<8x8x128xf32, #tpu.memory_space<vmem>>, vector<1x8x128xf32>,
    %c6_i32 = arith.constant 6 : i32
    %c0_70 = arith.constant 0 : index
    %c0_71 = arith.constant 0 : index
    %220 = vector.load %arg3[%c0_70, %c0_71] : memref<128x512xf32, #tpu.memory_space<vmem>>, vector<128x512xf32>
    %cst_72 = arith.constant dense<0.000000e+00> : vector<8x512xf32>
    %221 = tpu.matmul %215, %220, %cst_72 {dimension_numbers = #tpu.dot_dimension_numbers<[1], [0], [0], [1], [0, 0, 1, 1], [], []>} : vector<8x128xf32>, vector<128x512xf32>, vector<8x512xf32> -> vector<8x512xf32>
    %222 = arith.index_cast %c6_i32 : i32 to index
    %c0_73 = arith.constant 0 : index
    %c0_74 = arith.constant 0 : index
    %223 = vector.load %arg14[%222, %c0_73, %c0_74] : memref<8x8x512xf32, #tpu.memory_space<vmem>>, vector<1x8x512xf32>
    %224 = vector.shape_cast %223 : vector<1x8x512xf32> to vector<8x512xf32>
    %225 = arith.addf %221, %224 : vector<8x512xf32>
    %226 = vector.extract_strided_slice %225 {offsets = [0, 0], sizes = [8, 128], strides = [1, 1]} : vector<8x512xf32> to vector<8x128xf32>
    %227 = arith.negf %226 : vector<8x128xf32>
    %228 = math.exp %227 : vector<8x128xf32>
    %cst_75 = arith.constant 1.000000e+00 : f32
    %229 = vector.broadcast %cst_75 : f32 to vector<8x128xf32>
    %230 = arith.addf %229, %228 : vector<8x128xf32>
    %231 = arith.divf %229, %230 : vector<8x128xf32>
    %232 = vector.extract_strided_slice %225 {offsets = [0, 128], sizes = [8, 128], strides = [1, 1]} : vector<8x512xf32> to vector<8x128xf32>
    %233 = arith.negf %232 : vector<8x128xf32>
    %234 = math.exp %233 : vector<8x128xf32>
    %cst_76 = arith.constant 1.000000e+00 : f32
    %235 = vector.broadcast %cst_76 : f32 to vector<8x128xf32>
    %236 = arith.addf %235, %234 : vector<8x128xf32>
    %237 = arith.divf %235, %236 : vector<8x128xf32>
    %238 = vector.extract_strided_slice %225 {offsets = [0, 256], sizes = [8, 128], strides = [1, 1]} : vector<8x512xf32> to vector<8x128xf32>
    %239 = math.tanh %238 : vector<8x128xf32>
    %240 = vector.extract_strided_slice %225 {offsets = [0, 384], sizes = [8, 128], strides = [1, 1]} : vector<8x512xf32> to vector<8x128xf32>
    %241 = arith.negf %240 : vector<8x128xf32>
    %242 = math.exp %241 : vector<8x128xf32>
    %cst_77 = arith.constant 1.000000e+00 : f32
    %243 = vector.broadcast %cst_77 : f32 to vector<8x128xf32>
    %244 = arith.addf %243, %242 : vector<8x128xf32>
    %245 = arith.divf %243, %244 : vector<8x128xf32>
    %246 = arith.mulf %237, %213 : vector<8x128xf32>
    %247 = arith.mulf %231, %239 : vector<8x128xf32>
    %248 = arith.addf %246, %247 : vector<8x128xf32>
    %249 = math.tanh %248 : vector<8x128xf32>
    %250 = arith.mulf %245, %249 : vector<8x128xf32>
    %251 = arith.index_cast %c6_i32 : i32 to index
    %c0_78 = arith.constant 0 : index
    %c0_79 = arith.constant 0 : index
    %252 = vector.load %arg15[%251, %c0_78, %c0_79] : memref<8x8x128xf32, #tpu.memory_space<vmem>>, vector<1x8x128xf32>
    %253 = vector.shape_cast %252 : vector<1x8x128xf32> to vector<8x128xf32>
    %254 = vector.shape_cast %250 : vector<8x128xf32> to vector<1x8x128xf32>
    tpu.vector_store %arg15[%251, %c0_78, %c0_79], %254 {strides = array<i32>} : memref<8x8x128xf32, #tpu.memory_space<vmem>>, vector<1x8x128xf32>,
    %c7_i32 = arith.constant 7 : i32
    %c0_80 = arith.constant 0 : index
    %c0_81 = arith.constant 0 : index
    %255 = vector.load %arg3[%c0_80, %c0_81] : memref<128x512xf32, #tpu.memory_space<vmem>>, vector<128x512xf32>
    %cst_82 = arith.constant dense<0.000000e+00> : vector<8x512xf32>
    %256 = tpu.matmul %250, %255, %cst_82 {dimension_numbers = #tpu.dot_dimension_numbers<[1], [0], [0], [1], [0, 0, 1, 1], [], []>} : vector<8x128xf32>, vector<128x512xf32>, vector<8x512xf32> -> vector<8x512xf32>
    %257 = arith.index_cast %c7_i32 : i32 to index
    %c0_83 = arith.constant 0 : index
    %c0_84 = arith.constant 0 : index
    %258 = vector.load %arg14[%257, %c0_83, %c0_84] : memref<8x8x512xf32, #tpu.memory_space<vmem>>, vector<1x8x512xf32>
    %259 = vector.shape_cast %258 : vector<1x8x512xf32> to vector<8x512xf32>
    %260 = arith.addf %256, %259 : vector<8x512xf32>
    %261 = vector.extract_strided_slice %260 {offsets = [0, 0], sizes = [8, 128], strides = [1, 1]} : vector<8x512xf32> to vector<8x128xf32>
    %262 = arith.negf %261 : vector<8x128xf32>
    %263 = math.exp %262 : vector<8x128xf32>
    %cst_85 = arith.constant 1.000000e+00 : f32
    %264 = vector.broadcast %cst_85 : f32 to vector<8x128xf32>
    %265 = arith.addf %264, %263 : vector<8x128xf32>
    %266 = arith.divf %264, %265 : vector<8x128xf32>
    %267 = vector.extract_strided_slice %260 {offsets = [0, 128], sizes = [8, 128], strides = [1, 1]} : vector<8x512xf32> to vector<8x128xf32>
    %268 = arith.negf %267 : vector<8x128xf32>
    %269 = math.exp %268 : vector<8x128xf32>
    %cst_86 = arith.constant 1.000000e+00 : f32
    %270 = vector.broadcast %cst_86 : f32 to vector<8x128xf32>
    %271 = arith.addf %270, %269 : vector<8x128xf32>
    %272 = arith.divf %270, %271 : vector<8x128xf32>
    %273 = vector.extract_strided_slice %260 {offsets = [0, 256], sizes = [8, 128], strides = [1, 1]} : vector<8x512xf32> to vector<8x128xf32>
    %274 = math.tanh %273 : vector<8x128xf32>
    %275 = vector.extract_strided_slice %260 {offsets = [0, 384], sizes = [8, 128], strides = [1, 1]} : vector<8x512xf32> to vector<8x128xf32>
    %276 = arith.negf %275 : vector<8x128xf32>
    %277 = math.exp %276 : vector<8x128xf32>
    %cst_87 = arith.constant 1.000000e+00 : f32
    %278 = vector.broadcast %cst_87 : f32 to vector<8x128xf32>
    %279 = arith.addf %278, %277 : vector<8x128xf32>
    %280 = arith.divf %278, %279 : vector<8x128xf32>
    %281 = arith.mulf %272, %248 : vector<8x128xf32>
    %282 = arith.mulf %266, %274 : vector<8x128xf32>
    %283 = arith.addf %281, %282 : vector<8x128xf32>
    %284 = math.tanh %283 : vector<8x128xf32>
    %285 = arith.mulf %280, %284 : vector<8x128xf32>
    %286 = arith.index_cast %c7_i32 : i32 to index
    %c0_88 = arith.constant 0 : index
    %c0_89 = arith.constant 0 : index
    %287 = vector.load %arg15[%286, %c0_88, %c0_89] : memref<8x8x128xf32, #tpu.memory_space<vmem>>, vector<1x8x128xf32>
    %288 = vector.shape_cast %287 : vector<1x8x128xf32> to vector<8x128xf32>
    %289 = vector.shape_cast %285 : vector<8x128xf32> to vector<1x8x128xf32>
    tpu.vector_store %arg15[%286, %c0_88, %c0_89], %289 {strides = array<i32>} : memref<8x8x128xf32, #tpu.memory_space<vmem>>, vector<1x8x128xf32>,
    %c8_i32 = arith.constant 8 : i32
    %c0_90 = arith.constant 0 : index
    %c0_91 = arith.constant 0 : index
    %290 = vector.load %arg12[%c0_90, %c0_91] : memref<8x128xf32, #tpu.memory_space<vmem>>, vector<8x128xf32>
    tpu.vector_store %arg12[%c0_90, %c0_91], %285 {strides = array<i32>} : memref<8x128xf32, #tpu.memory_space<vmem>>, vector<8x128xf32>,
    %c0_92 = arith.constant 0 : index
    %c0_93 = arith.constant 0 : index
    %291 = vector.load %arg13[%c0_92, %c0_93] : memref<8x128xf32, #tpu.memory_space<vmem>>, vector<8x128xf32>
    tpu.vector_store %arg13[%c0_92, %c0_93], %283 {strides = array<i32>} : memref<8x128xf32, #tpu.memory_space<vmem>>, vector<8x128xf32>,
    %c0_94 = arith.constant 0 : index
    %c0_95 = arith.constant 0 : index
    %c0_96 = arith.constant 0 : index
    %292 = vector.load %arg15[%c0_94, %c0_95, %c0_96] : memref<8x8x128xf32, #tpu.memory_space<vmem>>, vector<8x8x128xf32>
    %293 = vector.shape_cast %292 : vector<8x8x128xf32> to vector<64x128xf32>
    %c0_97 = arith.constant 0 : index
    %c0_98 = arith.constant 0 : index
    %294 = vector.load %arg5[%c0_97, %c0_98] : memref<128x128xf32, #tpu.memory_space<vmem>>, vector<128x128xf32>
    %cst_99 = arith.constant dense<0.000000e+00> : vector<64x128xf32>
    %295 = tpu.matmul %293, %294, %cst_99 {dimension_numbers = #tpu.dot_dimension_numbers<[1], [0], [0], [1], [0, 0, 1, 1], [], []>} : vector<64x128xf32>, vector<128x128xf32>, vector<64x128xf32> -> vector<64x128xf32>
    %c0_100 = arith.constant 0 : index
    %c0_101 = arith.constant 0 : index
    %296 = vector.load %arg6[%c0_100, %c0_101] : memref<1x128xf32, #tpu.memory_space<vmem>>, vector<1x128xf32>
    %297 = vector.broadcast %296 : vector<1x128xf32> to vector<64x128xf32>
    %298 = arith.addf %295, %297 : vector<64x128xf32>
    %cst_102 = arith.constant 0.000000e+00 : f32
    %299 = vector.broadcast %cst_102 : f32 to vector<64x128xf32>
    %300 = arith.maximumf %298, %299 : vector<64x128xf32>
    %c0_103 = arith.constant 0 : index
    %c0_104 = arith.constant 0 : index
    %301 = vector.load %arg7[%c0_103, %c0_104] : memref<128x128xf32, #tpu.memory_space<vmem>>, vector<128x128xf32>
    %cst_105 = arith.constant dense<0.000000e+00> : vector<64x128xf32>
    %302 = tpu.matmul %300, %301, %cst_105 {dimension_numbers = #tpu.dot_dimension_numbers<[1], [0], [0], [1], [0, 0, 1, 1], [], []>} : vector<64x128xf32>, vector<128x128xf32>, vector<64x128xf32> -> vector<64x128xf32>
    %c0_106 = arith.constant 0 : index
    %c0_107 = arith.constant 0 : index
    %303 = vector.load %arg8[%c0_106, %c0_107] : memref<1x128xf32, #tpu.memory_space<vmem>>, vector<1x128xf32>
    %304 = vector.broadcast %303 : vector<1x128xf32> to vector<64x128xf32>
    %305 = arith.addf %302, %304 : vector<64x128xf32>
    %cst_108 = arith.constant 0.000000e+00 : f32
    %306 = vector.broadcast %cst_108 : f32 to vector<64x128xf32>
    %307 = arith.maximumf %305, %306 : vector<64x128xf32>
    %c0_109 = arith.constant 0 : index
    %c0_110 = arith.constant 0 : index
    %308 = vector.load %arg9[%c0_109, %c0_110] : memref<128x128xf32, #tpu.memory_space<vmem>>, vector<128x128xf32>
    %cst_111 = arith.constant dense<0.000000e+00> : vector<64x128xf32>
    %309 = tpu.matmul %307, %308, %cst_111 {dimension_numbers = #tpu.dot_dimension_numbers<[1], [0], [0], [1], [0, 0, 1, 1], [], []>} : vector<64x128xf32>, vector<128x128xf32>, vector<64x128xf32> -> vector<64x128xf32>
    %c0_112 = arith.constant 0 : index
    %c0_113 = arith.constant 0 : index
    %310 = vector.load %arg10[%c0_112, %c0_113] : memref<1x128xf32, #tpu.memory_space<vmem>>, vector<1x128xf32>
    %311 = vector.broadcast %310 : vector<1x128xf32> to vector<64x128xf32>
    %312 = arith.addf %309, %311 : vector<64x128xf32>
    %313 = vector.shape_cast %312 : vector<64x128xf32> to vector<8x8x128xf32>
    %c0_114 = arith.constant 0 : index
    %c0_115 = arith.constant 0 : index
    %c0_116 = arith.constant 0 : index
    %314 = vector.load %arg11[%c0_114, %c0_115, %c0_116] : memref<8x8x128xf32, #tpu.memory_space<vmem>>, vector<8x8x128xf32>
    tpu.vector_store %arg11[%c0_114, %c0_115, %c0_116], %313 {strides = array<i32>} : memref<8x8x128xf32, #tpu.memory_space<vmem>>, vector<8x8x128xf32>,
    return
  }
  func.func @transform_0(%arg0: i32) -> (i32, i32, i32) {
    %c0_i32 = arith.constant 0 : i32
    %c0_i32_0 = arith.constant 0 : i32
    %c0_i32_1 = arith.constant 0 : i32
    return %c0_i32, %arg0, %c0_i32_0 : i32, i32, i32
  }
  func.func @transform_1(%arg0: i32) -> (i32, i32) {
    %c0_i32 = arith.constant 0 : i32
    %c0_i32_0 = arith.constant 0 : i32
    %c0_i32_1 = arith.constant 0 : i32
    return %c0_i32, %c0_i32_0 : i32, i32
  }
  func.func @transform_2(%arg0: i32) -> (i32, i32) {
    %c0_i32 = arith.constant 0 : i32
    %c0_i32_0 = arith.constant 0 : i32
    %c0_i32_1 = arith.constant 0 : i32
    return %c0_i32, %c0_i32_0 : i32, i32
  }
  func.func @transform_3(%arg0: i32) -> (i32, i32) {
    %c0_i32 = arith.constant 0 : i32
    %c0_i32_0 = arith.constant 0 : i32
    %c0_i32_1 = arith.constant 0 : i32
    return %c0_i32, %c0_i32_0 : i32, i32
  }
  func.func @transform_4(%arg0: i32) -> (i32, i32) {
    %c0_i32 = arith.constant 0 : i32
    %c0_i32_0 = arith.constant 0 : i32
    %c0_i32_1 = arith.constant 0 : i32
    return %c0_i32, %c0_i32_0 : i32, i32
  }
  func.func @transform_5(%arg0: i32) -> (i32, i32) {
    %c0_i32 = arith.constant 0 : i32
    %c0_i32_0 = arith.constant 0 : i32
    %c0_i32_1 = arith.constant 0 : i32
    return %c0_i32, %c0_i32_0 : i32, i32
  }
  func.func @transform_6(%arg0: i32) -> (i32, i32) {
    %c0_i32 = arith.constant 0 : i32
    %c0_i32_0 = arith.constant 0 : i32
    %c0_i32_1 = arith.constant 0 : i32
    return %c0_i32, %c0_i32_0 : i32, i32
  }
  func.func @transform_7(%arg0: i32) -> (i32, i32) {
    %c0_i32 = arith.constant 0 : i32
    %c0_i32_0 = arith.constant 0 : i32
    %c0_i32_1 = arith.constant 0 : i32
    return %c0_i32, %c0_i32_0 : i32, i32
  }
  func.func @transform_8(%arg0: i32) -> (i32, i32) {
    %c0_i32 = arith.constant 0 : i32
    %c0_i32_0 = arith.constant 0 : i32
    %c0_i32_1 = arith.constant 0 : i32
    return %c0_i32, %c0_i32_0 : i32, i32
  }
  func.func @transform_9(%arg0: i32) -> (i32, i32) {
    %c0_i32 = arith.constant 0 : i32
    %c0_i32_0 = arith.constant 0 : i32
    %c0_i32_1 = arith.constant 0 : i32
    return %c0_i32, %c0_i32_0 : i32, i32
  }
  func.func @transform_10(%arg0: i32) -> (i32, i32, i32) {
    %c0_i32 = arith.constant 0 : i32
    %c0_i32_0 = arith.constant 0 : i32
    %c0_i32_1 = arith.constant 0 : i32
    return %c0_i32, %arg0, %c0_i32_0 : i32, i32, i32
  }
  func.func @transform_11(%arg0: i32) -> (i32, i32) {
    %c0_i32 = arith.constant 0 : i32
    %c0_i32_0 = arith.constant 0 : i32
    return %arg0, %c0_i32 : i32, i32
  }
  func.func @transform_12(%arg0: i32) -> (i32, i32) {
    %c0_i32 = arith.constant 0 : i32
    %c0_i32_0 = arith.constant 0 : i32
    return %arg0, %c0_i32 : i32, i32
  }
}

</mosaic_0001>

<bundles_post_ra>
// kernel: drqn_forward.1
= control target key start
LH: loop header
LB: loop body
LE: loop exit
PB: predicated region body
PF: predicated region fallthrough
CT: control target
= control target key end

     0   :  { %18 = vsyncpa [#allocation5], 0  ;;  %s4451_s0 = inlined_call_operand.vmem [shape: f32[8,8,128], index: 0, kind: input, shape index: {}]   ;;  %s4452_s1 = inlined_call_operand.hbm [shape: f32[128,512], index: 1, kind: input, shape index: {}]   ;;  %s4453_s2 = inlined_call_operand.hbm [shape: f32[128,512], index: 2, kind: input, shape index: {}]   ;;  %s4454_s3 = inlined_call_operand.vmem [shape: f32[1,512], index: 3, kind: input, shape index: {}]   ;;  %s4455_s4 = inlined_call_operand.hbm [shape: f32[128,128], index: 4, kind: input, shape index: {}]   ;;  %s4456_s5 = inlined_call_operand.vmem [shape: f32[1,128], index: 5, kind: input, shape index: {}]   ;;  %s4457_s6 = inlined_call_operand.hbm [shape: f32[128,128], index: 6, kind: input, shape index: {}]   ;;  %s4458_s7 = inlined_call_operand.vmem [shape: f32[1,128], index: 7, kind: input, shape index: {}]   ;;  %s4459_s8 = inlined_call_operand.hbm [shape: f32[128,128], index: 8, kind: input, shape index: {}]   ;;  %s4460_s9 = inlined_call_operand.vmem [shape: f32[1,128], index: 9, kind: input, shape index: {}]   ;;  %s4461_s10 = inlined_call_operand.vmem [shape: f32[8,8,128], index: 10, kind: output, shape index: {0}]   ;;  %s4462_s11 = inlined_call_operand.vmem [shape: f32[8,128], index: 11, kind: output, shape index: {1}]   ;;  %s4463_s12 = inlined_call_operand.vmem [shape: f32[8,128], index: 12, kind: output, shape index: {2}]  }
   0x1   :  { %19 = vsyncpa [#allocation7], 0 }
   0x2   :  { %20 = vsyncpa [#allocation10], 0  ;;  %s3292_s21 = smov [#allocation6]  }
   0x3   :  { %s40_s22 = sshll.u32 %s3292_s21, 4  ;;  %s41_s22 = int_to_ptr.vmem [resolvable:$true] %s40_s22 }
   0x4   :  { %s3194_s23 = scalar_lea.vmem %s41_s22, 8192  ;;  %p3199_p1 = scmp.lt.s32.totalorder %s41_s22, %s41_s22 }
   0x5   :  { %p3195_p0 = scmp.ne.s32.totalorder %s41_s22, %s3194_s23  ;;  %p3200_p2 = scmp.lt.s32.totalorder %s3194_s23, %s3194_s23 }
   0x7   :  { %p3201_p3 = por %p3200_p2, %p3199_p1 }
   0x9   :  { %p3202_p4 = pnand %p3201_p3, %p3195_p0 }
   0xb   :  { %3205 = shalt.err (!%p3202_p4)
}
   0xc   :  { %s3293_s24 = smov 512   ;;  %s3294_s25 = smov 32  }
   0xd   :  { %46 = dma.hbm_to_vmem [thread:$0]  %s4453_s2, 8192, %s41_s22, [#allocation7], %s3293_s24, %s3293_s24, %s3294_s25  }
   0xe   :  { %s3295_s28 = smov [#allocation9]   ;;  %s3296_s30 = smov [#allocation4]  }
   0xf   :  { %s68_s29 = sshll.u32 %s3295_s28, 4  ;;  %s28_s13 = sshll.u32 %s3296_s30, 4  ;;  %s69_s29 = int_to_ptr.vmem [resolvable:$true] %s68_s29  ;;  %s29_s13 = int_to_ptr.vmem [resolvable:$true] %s28_s13 }
  0x10   :  { %s3214_s14 = scalar_lea.vmem %s69_s29, 2048  ;;  %p3219_p6 = scmp.lt.s32.totalorder %s69_s29, %s69_s29 }
  0x11   :  { %p3215_p5 = scmp.ne.s32.totalorder %s69_s29, %s3214_s14  ;;  %p3220_p7 = scmp.lt.s32.totalorder %s3214_s14, %s3214_s14 }
  0x13   :  { %p3221_p8 = por %p3220_p7, %p3219_p6 }
  0x15   :  { %p3222_p9 = pnand %p3221_p8, %p3215_p5 }
  0x17   :  { %3225 = shalt.err (!%p3222_p9)
}
  0x18   :  { %s3297_s15 = smov 128   ;;  %s3298_s16 = smov 8  }
  0x19   :  { %74 = dma.hbm_to_vmem [thread:$0]  %s4457_s6, 2048, %s69_s29, [#allocation10], %s3297_s15, %s3297_s15, %s3298_s16  }
  0x1a   :  { %s3234_s2 = scalar_lea.vmem %s29_s13, 8192  ;;  %p3239_p11 = scmp.lt.s32.totalorder %s29_s13, %s29_s13 }
  0x1b   :  { %p3235_p10 = scmp.ne.s32.totalorder %s29_s13, %s3234_s2  ;;  %p3240_p12 = scmp.lt.s32.totalorder %s3234_s2, %s3234_s2 }
  0x1d   :  { %p3241_p13 = por %p3240_p12, %p3239_p11 }
  0x1f   :  { %p3242_p0 = pnand %p3241_p13, %p3235_p10 }
  0x21   :  { %3245 = shalt.err (!%p3242_p0)
}
  0x22   :  { %34 = dma.hbm_to_vmem [thread:$0]  %s4452_s1, 8192, %s29_s13, [#allocation5], %s3293_s24, %s3293_s24, %s3294_s25  }
  0x23   :  { %s3299_s21 = smov [#allocation8]   ;;  %s3300_s23 = smov [#allocation11]  }
  0x24   :  { %s54_s22 = sshll.u32 %s3299_s21, 4  ;;  %s82_s26 = sshll.u32 %s3300_s23, 4  ;;  %s55_s22 = int_to_ptr.vmem [resolvable:$true] %s54_s22  ;;  %s83_s26 = int_to_ptr.vmem [resolvable:$true] %s82_s26 }
  0x25   :  { %s3254_s27 = scalar_lea.vmem %s55_s22, 2048  ;;  %p3259_p2 = scmp.lt.s32.totalorder %s55_s22, %s55_s22 }
  0x26   :  { %p3255_p1 = scmp.ne.s32.totalorder %s55_s22, %s3254_s27  ;;  %p3260_p3 = scmp.lt.s32.totalorder %s3254_s27, %s3254_s27 }
  0x28   :  { %p3261_p4 = por %p3260_p3, %p3259_p2 }
  0x2a   :  { %p3262_p5 = pnand %p3261_p4, %p3255_p1 }
  0x2c   :  { %3265 = shalt.err (!%p3262_p5)
}
  0x2d   :  { %60 = dma.hbm_to_vmem [thread:$0]  %s4455_s4, 2048, %s55_s22, [#allocation7], %s3297_s15, %s3297_s15, %s3298_s16  }
  0x2e   :  { %s3274_s1 = scalar_lea.vmem %s83_s26, 2048  ;;  %p3279_p7 = scmp.lt.s32.totalorder %s83_s26, %s83_s26 }
  0x2f   :  { %p3275_p6 = scmp.ne.s32.totalorder %s83_s26, %s3274_s1  ;;  %p3280_p8 = scmp.lt.s32.totalorder %s3274_s1, %s3274_s1 }
  0x31   :  { %p3281_p9 = por %p3280_p8, %p3279_p7 }
  0x33   :  { %p3282_p10 = pnand %p3281_p9, %p3275_p6 }
  0x35   :  { %3285 = shalt.err (!%p3282_p10)
}
  0x36   :  { %88 = dma.hbm_to_vmem [thread:$0]  %s4459_s8, 2048, %s83_s26, [#allocation10], %s3297_s15, %s3297_s15, %s3298_s16  }
  0x37   :  { %3286 = dma.done.wait [#allocation5], 8192  }
  0x38   :  { %3287 = vsyncadd [#allocation5], 4294959104 }
  0x39   :  { %3288 = dma.done.wait [#allocation7], 10240  }
  0x3a   :  { %3289 = vsyncadd [#allocation7], 4294957056 }
  0x3b   :  { %3290 = dma.done.wait [#allocation10], 4096  }
  0x3c   :  { %3291 = vsyncadd [#allocation10], 4294963200  ;;  %v4464_v0 = vmov 0.0   ;;  %v175_v1 = vld [vmem:[#allocation4 + $0x1e8] sm:$0xff]  ;;  %v177_v2 = vld [vmem:[#allocation4 + $0x1f8] sm:$0xff] }
  0x3d   :  { %264 = vmatprep.mubr.f32.mxu0 %v4464_v0  ;;  %377 = vmatprep.mubr.f32.mxu1 %v4464_v0  ;;  %v174_v3 = vld [vmem:[#allocation4 + $0x1e0] sm:$0xff]  ;;  %v176_v4 = vld [vmem:[#allocation4 + $0x1f0] sm:$0xff]  ;;  %v171_v5 = vld [vmem:[#allocation4 + $0x1c8] sm:$0xff] }
  0x3e   :  { %200 = vmatprep.subr.mxu0 %v175_v1  ;;  %313 = vmatprep.subr.mxu1 %v177_v2  ;;  %v173_v6 = vld [vmem:[#allocation4 + $0x1d8] sm:$0xff]  ;;  %v170_v7 = vld [vmem:[#allocation4 + $0x1c0] sm:$0xff]  ;;  %v172_v8 = vld [vmem:[#allocation4 + $0x1d0] sm:$0xff] }
  0x3f   :  { %201 = vmatpush1.msra.mxu0 %v174_v3  ;;  %314 = vmatpush1.msra.mxu1 %v176_v4  ;;  %v167_v9 = vld [vmem:[#allocation4 + $0x1a8] sm:$0xff]  ;;  %v169_v10 = vld [vmem:[#allocation4 + $0x1b8] sm:$0xff]  ;;  %v166_v11 = vld [vmem:[#allocation4 + $0x1a0] sm:$0xff] }
  0x40   :  { %202 = vmatprep.subr.mxu0 %v171_v5  ;;  %315 = vmatprep.subr.mxu1 %v173_v6  ;;  %v168_v12 = vld [vmem:[#allocation4 + $0x1b0] sm:$0xff]  ;;  %v163_v13 = vld [vmem:[#allocation4 + $0x188] sm:$0xff]  ;;  %v165_v14 = vld [vmem:[#allocation4 + $0x198] sm:$0xff] }
  0x41   :  { %203 = vmatpush1.msra.mxu0 %v170_v7  ;;  %316 = vmatpush1.msra.mxu1 %v172_v8  ;;  %v162_v15 = vld [vmem:[#allocation4 + $0x180] sm:$0xff]  ;;  %v164_v16 = vld [vmem:[#allocation4 + $0x190] sm:$0xff]  ;;  %v159_v17 = vld [vmem:[#allocation4 + $0x168] sm:$0xff] }
  0x42   :  { %204 = vmatprep.subr.mxu0 %v167_v9  ;;  %317 = vmatprep.subr.mxu1 %v169_v10  ;;  %v161_v18 = vld [vmem:[#allocation4 + $0x178] sm:$0xff]  ;;  %v158_v19 = vld [vmem:[#allocation4 + $0x160] sm:$0xff]  ;;  %v160_v20 = vld [vmem:[#allocation4 + $0x170] sm:$0xff] }
  0x43   :  { %205 = vmatpush1.msra.mxu0 %v166_v11  ;;  %318 = vmatpush1.msra.mxu1 %v168_v12  ;;  %v155_v21 = vld [vmem:[#allocation4 + $0x148] sm:$0xff]  ;;  %v157_v22 = vld [vmem:[#allocation4 + $0x158] sm:$0xff]  ;;  %v154_v23 = vld [vmem:[#allocation4 + $0x140] sm:$0xff] }
  0x44   :  { %206 = vmatprep.subr.mxu0 %v163_v13  ;;  %319 = vmatprep.subr.mxu1 %v165_v14  ;;  %v156_v24 = vld [vmem:[#allocation4 + $0x150] sm:$0xff]  ;;  %v151_v25 = vld [vmem:[#allocation4 + $0x128] sm:$0xff]  ;;  %v153_v26 = vld [vmem:[#allocation4 + $0x138] sm:$0xff] }
  0x45   :  { %207 = vmatpush1.msra.mxu0 %v162_v15  ;;  %320 = vmatpush1.msra.mxu1 %v164_v16  ;;  %v150_v27 = vld [vmem:[#allocation4 + $0x120] sm:$0xff]  ;;  %v152_v28 = vld [vmem:[#allocation4 + $0x130] sm:$0xff]  ;;  %v147_v29 = vld [vmem:[#allocation4 + $0x108] sm:$0xff] }
  0x46   :  { %208 = vmatprep.subr.mxu0 %v159_v17  ;;  %321 = vmatprep.subr.mxu1 %v161_v18  ;;  %v149_v30 = vld [vmem:[#allocation4 + $0x118] sm:$0xff]  ;;  %v146_v31 = vld [vmem:[#allocation4 + $0x100] sm:$0xff]  ;;  %v148_v32 = vld [vmem:[#allocation4 + $0x110] sm:$0xff] }
  0x47   :  { %209 = vmatpush1.msra.mxu0 %v158_v19  ;;  %322 = vmatpush1.msra.mxu1 %v160_v20  ;;  %v143_v33 = vld [vmem:[#allocation4 + $0xe8] sm:$0xff]  ;;  %v145_v34 = vld [vmem:[#allocation4 + $0xf8] sm:$0xff]  ;;  %v142_v35 = vld [vmem:[#allocation4 + $0xe0] sm:$0xff] }
  0x48   :  { %210 = vmatprep.subr.mxu0 %v155_v21  ;;  %323 = vmatprep.subr.mxu1 %v157_v22  ;;  %v144_v36 = vld [vmem:[#allocation4 + $0xf0] sm:$0xff]  ;;  %v139_v37 = vld [vmem:[#allocation4 + $0xc8] sm:$0xff]  ;;  %v141_v38 = vld [vmem:[#allocation4 + $0xd8] sm:$0xff] }
  0x49   :  { %211 = vmatpush1.msra.mxu0 %v154_v23  ;;  %324 = vmatpush1.msra.mxu1 %v156_v24  ;;  %v138_v39 = vld [vmem:[#allocation4 + $0xc0] sm:$0xff]  ;;  %v140_v40 = vld [vmem:[#allocation4 + $0xd0] sm:$0xff]  ;;  %v135_v41 = vld [vmem:[#allocation4 + $0xa8] sm:$0xff] }
  0x4a   :  { %212 = vmatprep.subr.mxu0 %v151_v25  ;;  %325 = vmatprep.subr.mxu1 %v153_v26  ;;  %v137_v42 = vld [vmem:[#allocation4 + $0xb8] sm:$0xff]  ;;  %v134_v43 = vld [vmem:[#allocation4 + $0xa0] sm:$0xff]  ;;  %v136_v44 = vld [vmem:[#allocation4 + $0xb0] sm:$0xff] }
  0x4b   :  { %213 = vmatpush1.msra.mxu0 %v150_v27  ;;  %326 = vmatpush1.msra.mxu1 %v152_v28  ;;  %v131_v45 = vld [vmem:[#allocation4 + $0x88] sm:$0xff]  ;;  %v133_v46 = vld [vmem:[#allocation4 + $0x98] sm:$0xff]  ;;  %v130_v47 = vld [vmem:[#allocation4 + $0x80] sm:$0xff] }
  0x4c   :  { %214 = vmatprep.subr.mxu0 %v147_v29  ;;  %327 = vmatprep.subr.mxu1 %v149_v30  ;;  %v132_v48 = vld [vmem:[#allocation4 + $0x90] sm:$0xff]  ;;  %v127_v49 = vld [vmem:[#allocation4 + $0x68] sm:$0xff]  ;;  %v129_v50 = vld [vmem:[#allocation4 + $0x78] sm:$0xff] }
  0x4d   :  { %215 = vmatpush1.msra.mxu0 %v146_v31  ;;  %328 = vmatpush1.msra.mxu1 %v148_v32  ;;  %v126_v51 = vld [vmem:[#allocation4 + $0x60] sm:$0xff]  ;;  %v128_v52 = vld [vmem:[#allocation4 + $0x70] sm:$0xff]  ;;  %v123_v53 = vld [vmem:[#allocation4 + $0x48] sm:$0xff] }
  0x4e   :  { %216 = vmatprep.subr.mxu0 %v143_v33  ;;  %329 = vmatprep.subr.mxu1 %v145_v34  ;;  %v125_v54 = vld [vmem:[#allocation4 + $0x58] sm:$0xff]  ;;  %v122_v55 = vld [vmem:[#allocation4 + $0x40] sm:$0xff]  ;;  %v124_v56 = vld [vmem:[#allocation4 + $0x50] sm:$0xff] }
  0x4f   :  { %217 = vmatpush1.msra.mxu0 %v142_v35  ;;  %330 = vmatpush1.msra.mxu1 %v144_v36  ;;  %v119_v57 = vld [vmem:[#allocation4 + $0x28] sm:$0xff]  ;;  %v121_v58 = vld [vmem:[#allocation4 + $0x38] sm:$0xff]  ;;  %v118_v59 = vld [vmem:[#allocation4 + $0x20] sm:$0xff] }
  0x50   :  { %218 = vmatprep.subr.mxu0 %v139_v37  ;;  %331 = vmatprep.subr.mxu1 %v141_v38  ;;  %v120_v60 = vld [vmem:[#allocation4 + $0x30] sm:$0xff]  ;;  %v115_v61 = vld [vmem:[#allocation4 + $0x8] sm:$0xff]  ;;  %v117_v62 = vld [vmem:[#allocation4 + $0x18] sm:$0xff] }
  0x51   :  { %219 = vmatpush1.msra.mxu0 %v138_v39  ;;  %332 = vmatpush1.msra.mxu1 %v140_v40  ;;  %v114_v63 = vld [vmem:[#allocation4] sm:$0xff]  ;;  %v116_v1 = vld [vmem:[#allocation4 + $0x10] sm:$0xff]  ;;  %v3396_v3 = vld [vmem:[#allocation6 + $0x1e8] sm:$0xff] }
  0x52   :  { %220 = vmatprep.subr.mxu0 %v135_v41  ;;  %333 = vmatprep.subr.mxu1 %v137_v42  ;;  %v106_v2 = vld [vmem:[%s4451_s0] sm:$0xff]  ;;  %v3398_v4 = vld [vmem:[#allocation6 + $0x1f8] sm:$0xff]  ;;  %v3402_v6 = vld [vmem:[#allocation6 + $0x1f0] sm:$0xff] }
  0x53   :  { %221 = vmatpush1.msra.mxu0 %v134_v43  ;;  %334 = vmatpush1.msra.mxu1 %v136_v44  ;;  %v3400_v5 = vld [vmem:[#allocation6 + $0x1e0] sm:$0xff]  ;;  %v3404_v7 = vld [vmem:[#allocation6 + $0x1c8] sm:$0xff]  ;;  %v3406_v8 = vld [vmem:[#allocation6 + $0x1d8] sm:$0xff] }
  0x54   :  { %222 = vmatprep.subr.mxu0 %v131_v45  ;;  %335 = vmatprep.subr.mxu1 %v133_v46  ;;  %v3412_v9 = vld [vmem:[#allocation6 + $0x1c0] sm:$0xff]  ;;  %v3414_v10 = vld [vmem:[#allocation6 + $0x1d0] sm:$0xff]  ;;  %v107_v11 = vld [vmem:[%s4451_s0 + $0x8] sm:$0xff] }
  0x55   :  { %223 = vmatpush1.msra.mxu0 %v130_v47  ;;  %336 = vmatpush1.msra.mxu1 %v132_v48  ;;  %v3423_v12 = vld [vmem:[#allocation6 + $0x1a8] sm:$0xff]  ;;  %v3425_v13 = vld [vmem:[#allocation6 + $0x1b8] sm:$0xff]  ;;  %v3429_v14 = vld [vmem:[#allocation6 + $0x1a0] sm:$0xff] }
  0x56   :  { %224 = vmatprep.subr.mxu0 %v127_v49  ;;  %337 = vmatprep.subr.mxu1 %v129_v50  ;;  %v3431_v15 = vld [vmem:[#allocation6 + $0x1b0] sm:$0xff]  ;;  %v3433_v16 = vld [vmem:[#allocation6 + $0x188] sm:$0xff]  ;;  %v3435_v17 = vld [vmem:[#allocation6 + $0x198] sm:$0xff] }
  0x57   :  { %225 = vmatpush1.msra.mxu0 %v126_v51  ;;  %338 = vmatpush1.msra.mxu1 %v128_v52  ;;  %v3441_v18 = vld [vmem:[#allocation6 + $0x180] sm:$0xff]  ;;  %v3443_v19 = vld [vmem:[#allocation6 + $0x190] sm:$0xff]  ;;  %v3452_v21 = vld [vmem:[#allocation6 + $0x168] sm:$0xff] }
  0x58   :  { %226 = vmatprep.subr.mxu0 %v123_v53  ;;  %339 = vmatprep.subr.mxu1 %v125_v54  ;;  %v108_v20 = vld [vmem:[%s4451_s0 + $0x10] sm:$0xff]  ;;  %v3454_v22 = vld [vmem:[#allocation6 + $0x178] sm:$0xff]  ;;  %v3458_v23 = vld [vmem:[#allocation6 + $0x160] sm:$0xff] }
  0x59   :  { %227 = vmatpush1.msra.mxu0 %v122_v55  ;;  %340 = vmatpush1.msra.mxu1 %v124_v56  ;;  %v3460_v24 = vld [vmem:[#allocation6 + $0x170] sm:$0xff]  ;;  %v3462_v25 = vld [vmem:[#allocation6 + $0x148] sm:$0xff]  ;;  %v3464_v26 = vld [vmem:[#allocation6 + $0x158] sm:$0xff] }
  0x5a   :  { %228 = vmatprep.subr.mxu0 %v119_v57  ;;  %341 = vmatprep.subr.mxu1 %v121_v58  ;;  %v3470_v27 = vld [vmem:[#allocation6 + $0x140] sm:$0xff]  ;;  %v3472_v28 = vld [vmem:[#allocation6 + $0x150] sm:$0xff]  ;;  %v109_v29 = vld [vmem:[%s4451_s0 + $0x18] sm:$0xff] }
  0x5b   :  { %229 = vmatpush1.msra.mxu0 %v118_v59  ;;  %342 = vmatpush1.msra.mxu1 %v120_v60  ;;  %v3481_v30 = vld [vmem:[#allocation6 + $0x128] sm:$0xff]  ;;  %v3483_v31 = vld [vmem:[#allocation6 + $0x138] sm:$0xff]  ;;  %v3487_v32 = vld [vmem:[#allocation6 + $0x120] sm:$0xff] }
  0x5c   :  { %230 = vmatprep.subr.mxu0 %v115_v61  ;;  %343 = vmatprep.subr.mxu1 %v117_v62  ;;  %v3489_v33 = vld [vmem:[#allocation6 + $0x130] sm:$0xff]  ;;  %v3491_v34 = vld [vmem:[#allocation6 + $0x108] sm:$0xff]  ;;  %v3493_v35 = vld [vmem:[#allocation6 + $0x118] sm:$0xff] }
  0x5d   :  { %231 = vmatpush1.msra.mxu0 %v114_v63  ;;  %344 = vmatpush1.msra.mxu1 %v116_v1  ;;  %v3499_v36 = vld [vmem:[#allocation6 + $0x100] sm:$0xff]  ;;  %v3501_v37 = vld [vmem:[#allocation6 + $0x110] sm:$0xff]  ;;  %v3510_v39 = vld [vmem:[#allocation6 + $0xe8] sm:$0xff] }
  0x5e   :  { %265 = vmatmul.mubr.f32.vlgmr.msra.gmra.mxu0 %v106_v2  ;;  %378 = vmatmul.mubr.f32.vlgmr.msra.gmra.mxu1 %v106_v2  ;;  %v110_v38 = vld [vmem:[%s4451_s0 + $0x20] sm:$0xff]  ;;  %v3512_v40 = vld [vmem:[#allocation6 + $0xf8] sm:$0xff]  ;;  %v3518_v42 = vld [vmem:[#allocation6 + $0xf0] sm:$0xff] }
  0x5f   :  { %526 = vmatprep.subr.mxu0 %v3396_v3  ;;  %597 = vmatprep.subr.mxu1 %v3398_v4  ;;  %v3516_v41 = vld [vmem:[#allocation6 + $0xe0] sm:$0xff]  ;;  %v3520_v43 = vld [vmem:[#allocation6 + $0xc8] sm:$0xff]  ;;  %v3522_v44 = vld [vmem:[#allocation6 + $0xd8] sm:$0xff] }
  0x60   :  { %527 = vmatpush1.msra.mxu0 %v3400_v5  ;;  %598 = vmatpush1.msra.mxu1 %v3402_v6  ;;  %v3528_v45 = vld [vmem:[#allocation6 + $0xc0] sm:$0xff]  ;;  %v3530_v46 = vld [vmem:[#allocation6 + $0xd0] sm:$0xff]  ;;  %v111_v47 = vld [vmem:[%s4451_s0 + $0x28] sm:$0xff] }
  0x61   :  { %528 = vmatprep.subr.mxu0 %v3404_v7  ;;  %599 = vmatprep.subr.mxu1 %v3406_v8  ;;  %v3539_v48 = vld [vmem:[#allocation6 + $0xa8] sm:$0xff]  ;;  %v3541_v49 = vld [vmem:[#allocation6 + $0xb8] sm:$0xff]  ;;  %v3545_v50 = vld [vmem:[#allocation6 + $0xa0] sm:$0xff] }
  0x62   :  { %270 = vmatprep.mubr.f32.mxu0 %v4464_v0  ;;  %383 = vmatprep.mubr.f32.mxu1 %v4464_v0  ;;  %v3547_v51 = vld [vmem:[#allocation6 + $0xb0] sm:$0xff]  ;;  %v3549_v52 = vld [vmem:[#allocation6 + $0x88] sm:$0xff]  ;;  %v3551_v53 = vld [vmem:[#allocation6 + $0x98] sm:$0xff] }
  0x63   :  { %529 = vmatpush1.msra.mxu0 %v3412_v9  ;;  %600 = vmatpush1.msra.mxu1 %v3414_v10  ;;  %4533 = vst [vmem:[#allocation15_spill] sm:$0xff] %v3549_v52  ;;  %4534 = vst [vmem:[#allocation16_spill] sm:$0xff] %v3551_v53  ;;  %v3557_v54 = vld [vmem:[#allocation6 + $0x80] sm:$0xff]  ;;  %v3559_v55 = vld [vmem:[#allocation6 + $0x90] sm:$0xff] }
  0x64   :  { %271 = vmatmul.mubr.f32.gmra.mxu0 %v107_v11  ;;  %384 = vmatmul.mubr.f32.gmra.mxu1 %v107_v11  ;;  %4535 = vst [vmem:[#allocation17_spill] sm:$0xff] %v3557_v54  ;;  %4536 = vst [vmem:[#allocation18_spill] sm:$0xff] %v3559_v55  ;;  %v112_v56 = vld [vmem:[%s4451_s0 + $0x30] sm:$0xff]  ;;  %v3568_v57 = vld [vmem:[#allocation6 + $0x68] sm:$0xff] }
  0x65   :  { %530 = vmatprep.subr.mxu0 %v3423_v12  ;;  %601 = vmatprep.subr.mxu1 %v3425_v13  ;;  %4537 = vst [vmem:[#allocation19_spill] sm:$0xff] %v3568_v57  ;;  %v3570_v58 = vld [vmem:[#allocation6 + $0x78] sm:$0xff]  ;;  %v3574_v59 = vld [vmem:[#allocation6 + $0x60] sm:$0xff]  ;;  %v3576_v60 = vld [vmem:[#allocation6 + $0x70] sm:$0xff] }
  0x66   :  { %531 = vmatpush1.msra.mxu0 %v3429_v14  ;;  %602 = vmatpush1.msra.mxu1 %v3431_v15  ;;  %4538 = vst [vmem:[#allocation20_spill] sm:$0xff] %v3570_v58  ;;  %4539 = vst [vmem:[#allocation21_spill] sm:$0xff] %v3574_v59  ;;  %v3578_v61 = vld [vmem:[#allocation6 + $0x48] sm:$0xff]  ;;  %v3580_v62 = vld [vmem:[#allocation6 + $0x58] sm:$0xff] }
  0x67   :  { %532 = vmatprep.subr.mxu0 %v3433_v16  ;;  %603 = vmatprep.subr.mxu1 %v3435_v17  ;;  %4540 = vst [vmem:[#allocation22_spill] sm:$0xff] %v3576_v60  ;;  %4541 = vst [vmem:[#allocation23_spill] sm:$0xff] %v3578_v61  ;;  %v3586_v63 = vld [vmem:[#allocation6 + $0x40] sm:$0xff]  ;;  %v3588_v1 = vld [vmem:[#allocation6 + $0x50] sm:$0xff] }
  0x68   :  { %276 = vmatprep.mubr.f32.mxu0 %v4464_v0  ;;  %389 = vmatprep.mubr.f32.mxu1 %v4464_v0  ;;  %4542 = vst [vmem:[#allocation24_spill] sm:$0xff] %v3580_v62  ;;  %4543 = vst [vmem:[#allocation25_spill] sm:$0xff] %v3586_v63  ;;  %v113_v2 = vld [vmem:[%s4451_s0 + $0x38] sm:$0xff]  ;;  %v3597_v11 = vld [vmem:[#allocation6 + $0x28] sm:$0xff] }
  0x69   :  { %533 = vmatpush1.msra.mxu0 %v3441_v18  ;;  %604 = vmatpush1.msra.mxu1 %v3443_v19  ;;  %4544 = vst [vmem:[#allocation26_spill] sm:$0xff] %v3588_v1  ;;  %4545 = vst [vmem:[#allocation27_spill] sm:$0xff] %v3597_v11 }
  0x6a   :  { %277 = vmatmul.mubr.f32.gmra.mxu0 %v108_v20  ;;  %390 = vmatmul.mubr.f32.gmra.mxu1 %v108_v20  ;;  %v3599_v20 = vld [vmem:[#allocation6 + $0x38] sm:$0xff] }
  0x6b   :  { %534 = vmatprep.subr.mxu0 %v3452_v21  ;;  %605 = vmatprep.subr.mxu1 %v3454_v22  ;;  %4546 = vst [vmem:[#allocation28_spill] sm:$0xff] %v3599_v20 }
  0x6c   :  { %535 = vmatpush1.msra.mxu0 %v3458_v23  ;;  %606 = vmatpush1.msra.mxu1 %v3460_v24 }
  0x6d   :  { %536 = vmatprep.subr.mxu0 %v3462_v25  ;;  %607 = vmatprep.subr.mxu1 %v3464_v26 }
  0x6e   :  { %282 = vmatprep.mubr.f32.mxu0 %v4464_v0  ;;  %395 = vmatprep.mubr.f32.mxu1 %v4464_v0 }
  0x6f   :  { %537 = vmatpush1.msra.mxu0 %v3470_v27  ;;  %608 = vmatpush1.msra.mxu1 %v3472_v28 }
  0x70   :  { %283 = vmatmul.mubr.f32.gmra.mxu0 %v109_v29  ;;  %396 = vmatmul.mubr.f32.gmra.mxu1 %v109_v29  ;;  %v3603_v29 = vld [vmem:[#allocation6 + $0x20] sm:$0xff] }
  0x71   :  { %538 = vmatprep.subr.mxu0 %v3481_v30  ;;  %609 = vmatprep.subr.mxu1 %v3483_v31  ;;  %4547 = vst [vmem:[#allocation29_spill] sm:$0xff] %v3603_v29 }
  0x72   :  { %539 = vmatpush1.msra.mxu0 %v3487_v32  ;;  %610 = vmatpush1.msra.mxu1 %v3489_v33 }
  0x73   :  { %540 = vmatprep.subr.mxu0 %v3491_v34  ;;  %611 = vmatprep.subr.mxu1 %v3493_v35 }
  0x74   :  { %288 = vmatprep.mubr.f32.mxu0 %v4464_v0  ;;  %401 = vmatprep.mubr.f32.mxu1 %v4464_v0 }
  0x75   :  { %541 = vmatpush1.msra.mxu0 %v3499_v36  ;;  %612 = vmatpush1.msra.mxu1 %v3501_v37 }
  0x76   :  { %289 = vmatmul.mubr.f32.gmra.mxu0 %v110_v38  ;;  %402 = vmatmul.mubr.f32.gmra.mxu1 %v110_v38  ;;  %v3605_v38 = vld [vmem:[#allocation6 + $0x30] sm:$0xff] }
  0x77   :  { %542 = vmatprep.subr.mxu0 %v3510_v39  ;;  %613 = vmatprep.subr.mxu1 %v3512_v40  ;;  %4548 = vst [vmem:[#allocation30_spill] sm:$0xff] %v3605_v38 }
  0x78   :  { %543 = vmatpush1.msra.mxu0 %v3516_v41  ;;  %614 = vmatpush1.msra.mxu1 %v3518_v42 }
  0x79   :  { %544 = vmatprep.subr.mxu0 %v3520_v43  ;;  %615 = vmatprep.subr.mxu1 %v3522_v44 }
  0x7a   :  { %294 = vmatprep.mubr.f32.mxu0 %v4464_v0  ;;  %407 = vmatprep.mubr.f32.mxu1 %v4464_v0 }
  0x7b   :  { %545 = vmatpush1.msra.mxu0 %v3528_v45  ;;  %616 = vmatpush1.msra.mxu1 %v3530_v46 }
  0x7c   :  { %295 = vmatmul.mubr.f32.gmra.mxu0 %v111_v47  ;;  %408 = vmatmul.mubr.f32.gmra.mxu1 %v111_v47  ;;  %v3607_v47 = vld [vmem:[#allocation6 + $0x8] sm:$0xff] }
  0x7d   :  { %546 = vmatprep.subr.mxu0 %v3539_v48  ;;  %617 = vmatprep.subr.mxu1 %v3541_v49  ;;  %4549 = vst [vmem:[#allocation31_spill] sm:$0xff] %v3607_v47 }
  0x7e   :  { %547 = vmatpush1.msra.mxu0 %v3545_v50  ;;  %618 = vmatpush1.msra.mxu1 %v3547_v51 }
  0x7f   :  { %548 = vmatprep.subr.mxu0 %v3549_v52  ;;  %619 = vmatprep.subr.mxu1 %v3551_v53 }
  0x80   :  { %300 = vmatprep.mubr.f32.mxu0 %v4464_v0  ;;  %413 = vmatprep.mubr.f32.mxu1 %v4464_v0 }
  0x81   :  { %549 = vmatpush1.msra.mxu0 %v3557_v54  ;;  %620 = vmatpush1.msra.mxu1 %v3559_v55 }
  0x82   :  { %301 = vmatmul.mubr.f32.gmra.mxu0 %v112_v56  ;;  %414 = vmatmul.mubr.f32.gmra.mxu1 %v112_v56  ;;  %v3609_v56 = vld [vmem:[#allocation6 + $0x18] sm:$0xff] }
  0x83   :  { %550 = vmatprep.subr.mxu0 %v3568_v57  ;;  %621 = vmatprep.subr.mxu1 %v3570_v58  ;;  %4550 = vst [vmem:[#allocation32_spill] sm:$0xff] %v3609_v56 }
  0x84   :  { %551 = vmatpush1.msra.mxu0 %v3574_v59  ;;  %622 = vmatpush1.msra.mxu1 %v3576_v60 }
  0x85   :  { %552 = vmatprep.subr.mxu0 %v3578_v61  ;;  %623 = vmatprep.subr.mxu1 %v3580_v62 }
  0x86   :  { %306 = vmatprep.mubr.f32.mxu0 %v4464_v0  ;;  %419 = vmatprep.mubr.f32.mxu1 %v4464_v0  ;;  %v3613_v0 = vld [vmem:[#allocation6] sm:$0xff] }
  0x87   :  { %553 = vmatpush1.msra.mxu0 %v3586_v63  ;;  %624 = vmatpush1.msra.mxu1 %v3588_v1  ;;  %4551 = vst [vmem:[#allocation33_spill] sm:$0xff] %v3613_v0  ;;  %v3617_v1 = vld [vmem:[#allocation6 + $0x10] sm:$0xff] }
  0x88   :  { %307 = vmatmul.mubr.f32.gmra.mxu0 %v113_v2  ;;  %420 = vmatmul.mubr.f32.gmra.mxu1 %v113_v2  ;;  %4552 = vst [vmem:[#allocation34_spill] sm:$0xff] %v3617_v1  ;;  %v4553_v2 = vmov 0.0  }
  0x89   :  { %554 = vmatprep.subr.mxu0 %v3597_v11  ;;  %625 = vmatprep.subr.mxu1 %v3599_v20 }
  0x8a   :  { %555 = vmatpush1.msra.mxu0 %v3603_v29  ;;  %626 = vmatpush1.msra.mxu1 %v3605_v38 }
  0x8b   :  { %556 = vmatprep.subr.mxu0 %v3607_v47  ;;  %627 = vmatprep.subr.mxu1 %v3609_v56 }
  0x8c   :  { %557 = vmatpush1.msra.mxu0 %v3613_v0  ;;  %590 = vmatprep.mubr.f32.mxu0 %v4553_v2 }
  0x8d   :  { %628 = vmatpush1.msra.mxu1 %v3617_v1  ;;  %661 = vmatprep.mubr.f32.mxu1 %v4553_v2 }
  0x8e   :  { %591 = vmatmul.mubr.f32.vlgmr.msra.gmra.mxu0 %v4553_v2  ;;  %662 = vmatmul.mubr.f32.vlgmr.msra.gmra.mxu1 %v4553_v2 }
  0x8f   :  { %762 = vmatprep.subr.mxu0 %v3396_v3  ;;  %833 = vmatprep.subr.mxu1 %v3398_v4 }
  0x90   :  { %763 = vmatpush1.msra.mxu0 %v3400_v5  ;;  %834 = vmatpush1.msra.mxu1 %v3402_v6 }
  0x91   :  { %764 = vmatprep.subr.mxu0 %v3404_v7  ;;  %835 = vmatprep.subr.mxu1 %v3406_v8 }
  0x92   :  { %765 = vmatpush1.msra.mxu0 %v3412_v9  ;;  %836 = vmatpush1.msra.mxu1 %v3414_v10 }
  0x93   :  { %766 = vmatprep.subr.mxu0 %v3423_v12  ;;  %837 = vmatprep.subr.mxu1 %v3425_v13 }
  0x94   :  { %767 = vmatpush1.msra.mxu0 %v3429_v14  ;;  %838 = vmatpush1.msra.mxu1 %v3431_v15 }
  0x95   :  { %768 = vmatprep.subr.mxu0 %v3433_v16  ;;  %839 = vmatprep.subr.mxu1 %v3435_v17 }
  0x96   :  { %769 = vmatpush1.msra.mxu0 %v3441_v18  ;;  %840 = vmatpush1.msra.mxu1 %v3443_v19 }
  0x97   :  { %770 = vmatprep.subr.mxu0 %v3452_v21  ;;  %841 = vmatprep.subr.mxu1 %v3454_v22 }
  0x98   :  { %771 = vmatpush1.msra.mxu0 %v3458_v23  ;;  %842 = vmatpush1.msra.mxu1 %v3460_v24 }
  0x99   :  { %772 = vmatprep.subr.mxu0 %v3462_v25  ;;  %843 = vmatprep.subr.mxu1 %v3464_v26 }
  0x9a   :  { %773 = vmatpush1.msra.mxu0 %v3470_v27  ;;  %844 = vmatpush1.msra.mxu1 %v3472_v28 }
  0x9b   :  { %774 = vmatprep.subr.mxu0 %v3481_v30  ;;  %845 = vmatprep.subr.mxu1 %v3483_v31 }
  0x9c   :  { %775 = vmatpush1.msra.mxu0 %v3487_v32  ;;  %846 = vmatpush1.msra.mxu1 %v3489_v33 }
  0x9d   :  { %776 = vmatprep.subr.mxu0 %v3491_v34  ;;  %847 = vmatprep.subr.mxu1 %v3493_v35 }
  0x9e   :  { %777 = vmatpush1.msra.mxu0 %v3499_v36  ;;  %848 = vmatpush1.msra.mxu1 %v3501_v37 }
  0x9f   :  { %778 = vmatprep.subr.mxu0 %v3510_v39  ;;  %849 = vmatprep.subr.mxu1 %v3512_v40 }
  0xa0   :  { %779 = vmatpush1.msra.mxu0 %v3516_v41  ;;  %850 = vmatpush1.msra.mxu1 %v3518_v42 }
  0xa1   :  { %780 = vmatprep.subr.mxu0 %v3520_v43  ;;  %851 = vmatprep.subr.mxu1 %v3522_v44 }
  0xa2   :  { %781 = vmatpush1.msra.mxu0 %v3528_v45  ;;  %852 = vmatpush1.msra.mxu1 %v3530_v46 }
  0xa3   :  { %782 = vmatprep.subr.mxu0 %v3539_v48  ;;  %853 = vmatprep.subr.mxu1 %v3541_v49 }
  0xa4   :  { %783 = vmatpush1.msra.mxu0 %v3545_v50  ;;  %854 = vmatpush1.msra.mxu1 %v3547_v51 }
  0xa5   :  { %784 = vmatprep.subr.mxu0 %v3549_v52  ;;  %855 = vmatprep.subr.mxu1 %v3551_v53  ;;  %v4554_v52 = vld [vmem:[#allocation26_spill] sm:$0xff] }
  0xa6   :  { %785 = vmatpush1.msra.mxu0 %v3557_v54  ;;  %856 = vmatpush1.msra.mxu1 %v3559_v55 }
  0xa7   :  { %786 = vmatprep.subr.mxu0 %v3568_v57  ;;  %857 = vmatprep.subr.mxu1 %v3570_v58 }
  0xa8   :  { %787 = vmatpush1.msra.mxu0 %v3574_v59  ;;  %858 = vmatpush1.msra.mxu1 %v3576_v60 }
  0xa9   :  { %788 = vmatprep.subr.mxu0 %v3578_v61  ;;  %859 = vmatprep.subr.mxu1 %v3580_v62 }
  0xaa   :  { %789 = vmatpush1.msra.mxu0 %v3586_v63  ;;  %860 = vmatpush1.msra.mxu1 %v4554_v52 }
  0xab   :  { %790 = vmatprep.subr.mxu0 %v3597_v11  ;;  %861 = vmatprep.subr.mxu1 %v3599_v20  ;;  %v180_v20 = vlaneseq }
  0xac   :  { %791 = vmatpush1.msra.mxu0 %v3603_v29  ;;  %862 = vmatpush1.msra.mxu1 %v3605_v38 }
  0xad   :  { %792 = vmatprep.subr.mxu0 %v3607_v47  ;;  %863 = vmatprep.subr.mxu1 %v3609_v56  ;;  %v181_v29 = vshrl.u32 %v180_v20, 7 }
  0xae   :  { %793 = vmatpush1.msra.mxu0 %v3613_v0  ;;  %826 = vmatprep.mubr.f32.mxu0 %v4553_v2  ;;  %v178_v0 = vld [vmem:[%s4454_s3] sm:$0xf] }
  0xaf   :  { %864 = vmatpush1.msra.mxu1 %v3617_v1  ;;  %897 = vmatprep.mubr.f32.mxu1 %v4553_v2  ;;  %v182_v47 = vsub.s32 0, %v181_v29  ;;  %v190_v56 = vsub.s32 2, %v181_v29  ;;  %v186_v2 = vsub.s32 1, %v181_v29 }
  0xb0   :  { %999 = vmatprep.subr.mxu0 %v3396_v3  ;;  %1070 = vmatprep.subr.mxu1 %v3398_v4  ;;  %v194_v3 = vsub.s32 3, %v181_v29 }
  0xb1   :  { %v183_v63 = vrot.slane %v178_v0, %v182_v47  ;;  %v3706_v4 = vrot.slane %v178_v0, %v190_v56  ;;  %v187_v61 = vrot.slane %v178_v0, %v186_v2 }
  0xb2   :  { %v3708_v60 = vrot.slane %v178_v0, %v194_v3 }
 0x11e   :  { %v3695_v11 = vpop.f32.mrf.mxu0  ;;  %v3697_v38 = vpop.f32.mrf.mxu1 }
 0x120   :  { %v3702_v52 = vpop.f32.mrf.mxu0  ;;  %v3704_v1 = vpop.f32.mrf.mxu1 }
 0x124   :  { %v272_v20 = vpop.f32.mrf.mxu0  ;;  %v385_v62 = vpop.f32.mrf.mxu1 }
 0x125   :  { %v3710_v59 = vadd.f32 %v272_v20, %v183_v63  ;;  %v3713_v58 = vadd.f32 %v385_v62, %v3706_v4 }
 0x126   :  { %v274_v57 = vpop.f32.mrf.mxu0  ;;  %v387_v55 = vpop.f32.mrf.mxu1 }
 0x127   :  { %4555 = vst [vmem:[#allocation35_spill] sm:$0xff] %v3710_v59  ;;  %4556 = vst [vmem:[#allocation36_spill] sm:$0xff] %v3713_v58  ;;  %v3715_v54 = vadd.f32 %v274_v57, %v187_v61  ;;  %v3718_v53 = vadd.f32 %v387_v55, %v3708_v60 }
 0x129   :  { %4557 = vst [vmem:[#allocation37_spill] sm:$0xff] %v3715_v54  ;;  %4558 = vst [vmem:[#allocation38_spill] sm:$0xff] %v3718_v53 }
 0x12a   :  { %v278_v29 = vpop.f32.mrf.mxu0  ;;  %v391_v47 = vpop.f32.mrf.mxu1 }
 0x12b   :  { %v3720_v56 = vadd.f32 %v278_v29, %v183_v63  ;;  %v3723_v2 = vadd.f32 %v391_v47, %v3706_v4 }
 0x12c   :  { %v280_v0 = vpop.f32.mrf.mxu0  ;;  %v393_v3 = vpop.f32.mrf.mxu1 }
 0x12d   :  { %4559 = vst [vmem:[#allocation39_spill] sm:$0xff] %v3720_v56  ;;  %4560 = vst [vmem:[#allocation40_spill] sm:$0xff] %v3723_v2  ;;  %v3725_v20 = vadd.f32 %v280_v0, %v187_v61  ;;  %v3728_v62 = vadd.f32 %v393_v3, %v3708_v60 }
 0x12f   :  { %4561 = vst [vmem:[#allocation41_spill] sm:$0xff] %v3725_v20  ;;  %4562 = vst [vmem:[#allocation42_spill] sm:$0xff] %v3728_v62 }
 0x130   :  { %v284_v58 = vpop.f32.mrf.mxu0  ;;  %v397_v57 = vpop.f32.mrf.mxu1 }
 0x131   :  { %v3730_v54 = vadd.f32 %v284_v58, %v183_v63  ;;  %v3733_v55 = vadd.f32 %v397_v57, %v3706_v4 }
 0x132   :  { %v286_v53 = vpop.f32.mrf.mxu0  ;;  %v399_v29 = vpop.f32.mrf.mxu1 }
 0x133   :  { %4563 = vst [vmem:[#allocation43_spill] sm:$0xff] %v3730_v54  ;;  %4564 = vst [vmem:[#allocation44_spill] sm:$0xff] %v3733_v55  ;;  %v3735_v56 = vadd.f32 %v286_v53, %v187_v61  ;;  %v3738_v47 = vadd.f32 %v399_v29, %v3708_v60 }
 0x135   :  { %4565 = vst [vmem:[#allocation45_spill] sm:$0xff] %v3735_v56  ;;  %4566 = vst [vmem:[#allocation46_spill] sm:$0xff] %v3738_v47 }
 0x136   :  { %v290_v2 = vpop.f32.mrf.mxu0  ;;  %v403_v0 = vpop.f32.mrf.mxu1 }
 0x137   :  { %v3740_v20 = vadd.f32 %v290_v2, %v183_v63  ;;  %v3743_v3 = vadd.f32 %v403_v0, %v3706_v4 }
 0x138   :  { %v292_v62 = vpop.f32.mrf.mxu0  ;;  %v405_v58 = vpop.f32.mrf.mxu1 }
 0x139   :  { %4567 = vst [vmem:[#allocation47_spill] sm:$0xff] %v3740_v20  ;;  %4568 = vst [vmem:[#allocation48_spill] sm:$0xff] %v3743_v3  ;;  %v3745_v54 = vadd.f32 %v292_v62, %v187_v61  ;;  %v3748_v57 = vadd.f32 %v405_v58, %v3708_v60 }
 0x13b   :  { %4569 = vst [vmem:[#allocation49_spill] sm:$0xff] %v3745_v54  ;;  %4570 = vst [vmem:[#allocation50_spill] sm:$0xff] %v3748_v57 }
 0x13c   :  { %v296_v55 = vpop.f32.mrf.mxu0  ;;  %v409_v53 = vpop.f32.mrf.mxu1 }
 0x13d   :  { %v3750_v56 = vadd.f32 %v296_v55, %v183_v63  ;;  %v3753_v29 = vadd.f32 %v409_v53, %v3706_v4 }
 0x13e   :  { %v298_v47 = vpop.f32.mrf.mxu0  ;;  %v411_v2 = vpop.f32.mrf.mxu1 }
 0x13f   :  { %4571 = vst [vmem:[#allocation51_spill] sm:$0xff] %v3750_v56  ;;  %4572 = vst [vmem:[#allocation52_spill] sm:$0xff] %v3753_v29  ;;  %v3755_v20 = vadd.f32 %v298_v47, %v187_v61  ;;  %v3758_v0 = vadd.f32 %v411_v2, %v3708_v60 }
 0x141   :  { %4573 = vst [vmem:[#allocation53_spill] sm:$0xff] %v3755_v20  ;;  %4574 = vst [vmem:[#allocation54_spill] sm:$0xff] %v3758_v0 }
 0x142   :  { %v302_v3 = vpop.f32.mrf.mxu0  ;;  %v415_v62 = vpop.f32.mrf.mxu1 }
 0x143   :  { %v3760_v54 = vadd.f32 %v302_v3, %v183_v63  ;;  %v3763_v58 = vadd.f32 %v415_v62, %v3706_v4 }
 0x144   :  { %v304_v57 = vpop.f32.mrf.mxu0  ;;  %v417_v55 = vpop.f32.mrf.mxu1 }
 0x145   :  { %4575 = vst [vmem:[#allocation55_spill] sm:$0xff] %v3760_v54  ;;  %4576 = vst [vmem:[#allocation56_spill] sm:$0xff] %v3763_v58  ;;  %v3765_v56 = vadd.f32 %v304_v57, %v187_v61  ;;  %v3768_v53 = vadd.f32 %v417_v55, %v3708_v60  ;;  %v267_v57 = vadd.f32 %v3695_v11, %v183_v63 }
 0x146   :  { %v269_v55 = vadd.f32 %v3702_v52, %v187_v61 }
 0x147   :  { %4577 = vst [vmem:[#allocation57_spill] sm:$0xff] %v3765_v56  ;;  %4578 = vst [vmem:[#allocation58_spill] sm:$0xff] %v3768_v53 }
 0x148   :  { %v308_v29 = vpop.f32.mrf.mxu0  ;;  %v421_v47 = vpop.f32.mrf.mxu1 }
 0x149   :  { %v3770_v20 = vadd.f32 %v308_v29, %v183_v63  ;;  %v3773_v2 = vadd.f32 %v421_v47, %v3706_v4 }
 0x14a   :  { %v310_v0 = vpop.f32.mrf.mxu0  ;;  %v423_v3 = vpop.f32.mrf.mxu1 }
 0x14b   :  { %4579 = vst [vmem:[#allocation59_spill] sm:$0xff] %v3770_v20  ;;  %4580 = vst [vmem:[#allocation60_spill] sm:$0xff] %v3773_v2  ;;  %v3775_v54 = vadd.f32 %v310_v0, %v187_v61  ;;  %v3778_v62 = vadd.f32 %v423_v3, %v3708_v60  ;;  %v382_v0 = vadd.f32 %v3704_v1, %v3708_v60 }
 0x14c   :  { %v380_v3 = vadd.f32 %v3697_v38, %v3706_v4 }
 0x14d   :  { %4581 = vst [vmem:[#allocation61_spill] sm:$0xff] %v3775_v54  ;;  %4582 = vst [vmem:[#allocation62_spill] sm:$0xff] %v3778_v62 }
 0x14e   :  { %v592_v58 = vpop.f32.mrf.mxu0  ;;  %v663_v20 = vpop.f32.mrf.mxu1 }
 0x14f   :  { %v593_v53 = vadd.f32 %v592_v58, %v267_v57  ;;  %v664_v62 = vadd.f32 %v663_v20, %v380_v3 }
 0x150   :  { %v594_v56 = vpop.f32.mrf.mxu0  ;;  %v665_v2 = vpop.f32.mrf.mxu1 }
 0x151   :  { %v2785_v59 = vmul.f32 -1.442695, %v593_v53  ;;  %v595_v29 = vadd.f32 %v594_v56, %v269_v55  ;;  %v666_v54 = vadd.f32 %v665_v2, %v382_v0 }
 0x153   :  { %3058 = vpow2.f32 %v2785_v59  ;;  %v2786_v47 = vmul.f32 -1.442695, %v595_v29  ;;  %v2787_v63 = vmul.f32 -1.442695, %v666_v54 }
 0x155   :  { %3060 = vpow2.f32 %v2786_v47 }
 0x156   :  { %3062 = vpow2.f32 %v2787_v63 }
 0x160   :  { %v3059_v11 = vpop.eup %3058 }
 0x161   :  { %v671_v52 = vadd.f32 1.0, %v3059_v11 }
 0x162   :  { %v3061_v61 = vpop.eup %3060 }
 0x163   :  { %3064 = vrcp.f32 %v671_v52  ;;  %v677_v56 = vadd.f32 1.0, %v3061_v61  ;;  %v3063_v59 = vpop.eup %3062  ;;  %v3871_v61 = vld [vmem:[#allocation6 + $0x1e8] sm:$0xff] }
 0x164   :  { %3066 = vtanh.f32 %v664_v62  ;;  %v684_v55 = vadd.f32 1.0, %v3063_v59  ;;  %v3877_v59 = vld [vmem:[#allocation6 + $0x1e0] sm:$0xff] }
 0x165   :  { %3068 = vrcp.f32 %v677_v56  ;;  %v3873_v56 = vld [vmem:[#allocation6 + $0x1f8] sm:$0xff] }
 0x166   :  { %3070 = vrcp.f32 %v684_v55  ;;  %v3889_v55 = vld [vmem:[#allocation6 + $0x1c0] sm:$0xff] }
 0x170   :  { %v3065_v58 = vpop.eup %3064 }
 0x171   :  { %v3067_v53 = vpop.eup %3066 }
 0x172   :  { %v3069_v57 = vpop.eup %3068  ;;  %v688_v1 = vmul.f32 %v3067_v53, %v3065_v58  ;;  %v3879_v58 = vld [vmem:[#allocation6 + $0x1f0] sm:$0xff]  ;;  %v3883_v53 = vld [vmem:[#allocation6 + $0x1c8] sm:$0xff] }
 0x173   :  { %v687_v60 = vmul.f32 0.0, %v3069_v57  ;;  %v3071_v54 = vpop.eup %3070  ;;  %v3885_v57 = vld [vmem:[#allocation6 + $0x1d8] sm:$0xff] }
 0x175   :  { %v3786_v2 = vadd.f32 %v688_v1, %v687_v60  ;;  %v3891_v60 = vld [vmem:[#allocation6 + $0x1d0] sm:$0xff]  ;;  %v3895_v1 = vld [vmem:[#allocation6 + $0x1a8] sm:$0xff] }
 0x177   :  { %3072 = vtanh.f32 %v3786_v2 }
 0x184   :  { %v3073_v38 = vpop.eup %3072 }
 0x185   :  { %v3789_v4 = vmul.f32 %v3073_v38, %v3071_v54  ;;  %v3901_v54 = vld [vmem:[#allocation6 + $0x1a0] sm:$0xff]  ;;  %v3903_v38 = vld [vmem:[#allocation6 + $0x1b0] sm:$0xff] }
 0x187   :  { %4583 = vst [vmem:[#allocation63_spill] sm:$0xff] %v3789_v4  ;;  %827 = vmatmul.mubr.f32.vlgmr.msra.gmra.mxu0 %v3789_v4  ;;  %898 = vmatmul.mubr.f32.vlgmr.msra.gmra.mxu1 %v3789_v4  ;;  %v4049_v4 = vld [vmem:[#allocation6 + $0x18] sm:$0xff] }
 0x188   :  { %1000 = vmatpush1.msra.mxu0 %v3400_v5  ;;  %1071 = vmatpush1.msra.mxu1 %v3402_v6  ;;  %v4584_v5 = vld [vmem:[#allocation15_spill] sm:$0xff]  ;;  %v4585_v6 = vld [vmem:[#allocation16_spill] sm:$0xff] }
 0x189   :  { %1001 = vmatprep.subr.mxu0 %v3404_v7  ;;  %1072 = vmatprep.subr.mxu1 %v3406_v8  ;;  %v4586_v7 = vld [vmem:[#allocation17_spill] sm:$0xff]  ;;  %v4587_v8 = vld [vmem:[#allocation18_spill] sm:$0xff]  ;;  %4610 = vst [vmem:[#allocation16_spill] sm:$0xff] %v3871_v61 }
 0x18a   :  { %1002 = vmatpush1.msra.mxu0 %v3412_v9  ;;  %1073 = vmatpush1.msra.mxu1 %v3414_v10  ;;  %v4588_v9 = vld [vmem:[#allocation19_spill] sm:$0xff]  ;;  %v4589_v10 = vld [vmem:[#allocation20_spill] sm:$0xff]  ;;  %4611 = vst [vmem:[#allocation17_spill] sm:$0xff] %v3873_v56 }
 0x18b   :  { %1003 = vmatprep.subr.mxu0 %v3423_v12  ;;  %1074 = vmatprep.subr.mxu1 %v3425_v13  ;;  %v4590_v12 = vld [vmem:[#allocation21_spill] sm:$0xff]  ;;  %v4591_v13 = vld [vmem:[#allocation22_spill] sm:$0xff] }
 0x18c   :  { %1004 = vmatpush1.msra.mxu0 %v3429_v14  ;;  %1075 = vmatpush1.msra.mxu1 %v3431_v15  ;;  %v4592_v14 = vld [vmem:[#allocation23_spill] sm:$0xff]  ;;  %v4593_v15 = vld [vmem:[#allocation24_spill] sm:$0xff] }
 0x18d   :  { %1005 = vmatprep.subr.mxu0 %v3433_v16  ;;  %1076 = vmatprep.subr.mxu1 %v3435_v17  ;;  %v4594_v16 = vld [vmem:[#allocation25_spill] sm:$0xff]  ;;  %v4595_v17 = vld [vmem:[#allocation26_spill] sm:$0xff] }
 0x18e   :  { %1006 = vmatpush1.msra.mxu0 %v3441_v18  ;;  %1077 = vmatpush1.msra.mxu1 %v3443_v19  ;;  %v4596_v18 = vld [vmem:[#allocation27_spill] sm:$0xff]  ;;  %v4597_v19 = vld [vmem:[#allocation28_spill] sm:$0xff] }
 0x18f   :  { %1007 = vmatprep.subr.mxu0 %v3452_v21  ;;  %1078 = vmatprep.subr.mxu1 %v3454_v22  ;;  %v4598_v21 = vld [vmem:[#allocation29_spill] sm:$0xff]  ;;  %v4599_v22 = vld [vmem:[#allocation30_spill] sm:$0xff] }
 0x190   :  { %1008 = vmatpush1.msra.mxu0 %v3458_v23  ;;  %1079 = vmatpush1.msra.mxu1 %v3460_v24  ;;  %v4600_v23 = vld [vmem:[#allocation31_spill] sm:$0xff]  ;;  %v4601_v24 = vld [vmem:[#allocation32_spill] sm:$0xff] }
 0x191   :  { %1009 = vmatprep.subr.mxu0 %v3462_v25  ;;  %1080 = vmatprep.subr.mxu1 %v3464_v26  ;;  %v4602_v25 = vld [vmem:[#allocation33_spill] sm:$0xff]  ;;  %v4603_v26 = vmov 0.0   ;;  %4626 = vst [vmem:[#allocation32_spill] sm:$0xff] %v4049_v4 }
 0x192   :  { %1010 = vmatpush1.msra.mxu0 %v3470_v27  ;;  %1081 = vmatpush1.msra.mxu1 %v3472_v28  ;;  %v4604_v27 = vld [vmem:[#allocation34_spill] sm:$0xff] }
 0x193   :  { %1011 = vmatprep.subr.mxu0 %v3481_v30  ;;  %1082 = vmatprep.subr.mxu1 %v3483_v31  ;;  %v4605_v30 = vld [vmem:[#allocation35_spill] sm:$0xff] }
 0x194   :  { %1012 = vmatpush1.msra.mxu0 %v3487_v32  ;;  %1083 = vmatpush1.msra.mxu1 %v3489_v33 }
 0x195   :  { %1013 = vmatprep.subr.mxu0 %v3491_v34  ;;  %1084 = vmatprep.subr.mxu1 %v3493_v35  ;;  %v4606_v34 = vld [vmem:[#allocation37_spill] sm:$0xff] }
 0x196   :  { %1014 = vmatpush1.msra.mxu0 %v3499_v36  ;;  %1085 = vmatpush1.msra.mxu1 %v3501_v37 }
 0x197   :  { %1015 = vmatprep.subr.mxu0 %v3510_v39  ;;  %1086 = vmatprep.subr.mxu1 %v3512_v40  ;;  %v4607_v40 = vld [vmem:[#allocation38_spill] sm:$0xff] }
 0x198   :  { %1016 = vmatpush1.msra.mxu0 %v3516_v41  ;;  %1087 = vmatpush1.msra.mxu1 %v3518_v42  ;;  %v4608_v42 = vld [vmem:[#allocation36_spill] sm:$0xff] }
 0x199   :  { %1017 = vmatprep.subr.mxu0 %v3520_v43  ;;  %1088 = vmatprep.subr.mxu1 %v3522_v44 }
 0x19a   :  { %1018 = vmatpush1.msra.mxu0 %v3528_v45  ;;  %1089 = vmatpush1.msra.mxu1 %v3530_v46 }
 0x19b   :  { %1019 = vmatprep.subr.mxu0 %v3539_v48  ;;  %1090 = vmatprep.subr.mxu1 %v3541_v49 }
 0x19c   :  { %1020 = vmatpush1.msra.mxu0 %v3545_v50  ;;  %1091 = vmatpush1.msra.mxu1 %v3547_v51 }
 0x19d   :  { %1021 = vmatprep.subr.mxu0 %v4584_v5  ;;  %1092 = vmatprep.subr.mxu1 %v4585_v6  ;;  %v3907_v5 = vld [vmem:[#allocation6 + $0x188] sm:$0xff]  ;;  %v3909_v6 = vld [vmem:[#allocation6 + $0x198] sm:$0xff] }
 0x19e   :  { %1022 = vmatpush1.msra.mxu0 %v4586_v7  ;;  %1093 = vmatpush1.msra.mxu1 %v4587_v8  ;;  %v3913_v7 = vld [vmem:[#allocation6 + $0x180] sm:$0xff]  ;;  %v3915_v8 = vld [vmem:[#allocation6 + $0x190] sm:$0xff] }
 0x19f   :  { %1023 = vmatprep.subr.mxu0 %v4588_v9  ;;  %1094 = vmatprep.subr.mxu1 %v4589_v10  ;;  %v3919_v9 = vld [vmem:[#allocation6 + $0x168] sm:$0xff]  ;;  %v3921_v10 = vld [vmem:[#allocation6 + $0x178] sm:$0xff] }
 0x1a0   :  { %1024 = vmatpush1.msra.mxu0 %v4590_v12  ;;  %1095 = vmatpush1.msra.mxu1 %v4591_v13  ;;  %v3925_v12 = vld [vmem:[#allocation6 + $0x160] sm:$0xff]  ;;  %v3927_v13 = vld [vmem:[#allocation6 + $0x170] sm:$0xff] }
 0x1a1   :  { %1025 = vmatprep.subr.mxu0 %v4592_v14  ;;  %1096 = vmatprep.subr.mxu1 %v4593_v15  ;;  %v3931_v14 = vld [vmem:[#allocation6 + $0x148] sm:$0xff]  ;;  %v3933_v15 = vld [vmem:[#allocation6 + $0x158] sm:$0xff] }
 0x1a2   :  { %1026 = vmatpush1.msra.mxu0 %v4594_v16  ;;  %1097 = vmatpush1.msra.mxu1 %v4595_v17  ;;  %v3937_v16 = vld [vmem:[#allocation6 + $0x140] sm:$0xff]  ;;  %v3939_v17 = vld [vmem:[#allocation6 + $0x150] sm:$0xff] }
 0x1a3   :  { %1027 = vmatprep.subr.mxu0 %v4596_v18  ;;  %1098 = vmatprep.subr.mxu1 %v4597_v19  ;;  %v3943_v18 = vld [vmem:[#allocation6 + $0x128] sm:$0xff]  ;;  %v3945_v19 = vld [vmem:[#allocation6 + $0x138] sm:$0xff] }
 0x1a4   :  { %1028 = vmatpush1.msra.mxu0 %v4598_v21  ;;  %1099 = vmatpush1.msra.mxu1 %v4599_v22  ;;  %v3949_v21 = vld [vmem:[#allocation6 + $0x120] sm:$0xff]  ;;  %v3951_v22 = vld [vmem:[#allocation6 + $0x130] sm:$0xff] }
 0x1a5   :  { %1029 = vmatprep.subr.mxu0 %v4600_v23  ;;  %1100 = vmatprep.subr.mxu1 %v4601_v24  ;;  %v3955_v23 = vld [vmem:[#allocation6 + $0x108] sm:$0xff]  ;;  %v3957_v24 = vld [vmem:[#allocation6 + $0x118] sm:$0xff] }
 0x1a6   :  { %1030 = vmatpush1.msra.mxu0 %v4602_v25  ;;  %1063 = vmatprep.mubr.f32.mxu0 %v4603_v26  ;;  %v3959_v25 = vld [vmem:[#allocation6 + $0x100] sm:$0xff] }
 0x1a7   :  { %1101 = vmatpush1.msra.mxu1 %v4604_v27  ;;  %1134 = vmatprep.mubr.f32.mxu1 %v4603_v26  ;;  %v3963_v27 = vld [vmem:[#allocation6 + $0x110] sm:$0xff] }
 0x1a8   :  { %1236 = vmatprep.subr.mxu0 %v3871_v61  ;;  %1307 = vmatprep.subr.mxu1 %v3873_v56 }
 0x247   :  { %v828_v28 = vpop.f32.mrf.mxu0  ;;  %v899_v36 = vpop.f32.mrf.mxu1 }
 0x248   :  { %v829_v31 = vadd.f32 %v828_v28, %v4605_v30  ;;  %v900_v43 = vadd.f32 %v899_v36, %v4608_v42  ;;  %v3965_v28 = vld [vmem:[#allocation6 + $0xe8] sm:$0xff]  ;;  %v3967_v30 = vld [vmem:[#allocation6 + $0xf8] sm:$0xff]  ;;  %v3983_v36 = vld [vmem:[#allocation6 + $0xd0] sm:$0xff] }
 0x249   :  { %v830_v32 = vpop.f32.mrf.mxu0  ;;  %v901_v39 = vpop.f32.mrf.mxu1  ;;  %v3999_v42 = vld [vmem:[#allocation6 + $0x88] sm:$0xff] }
 0x24a   :  { %v2788_v33 = vmul.f32 -1.442695, %v829_v31  ;;  %v831_v35 = vadd.f32 %v830_v32, %v4606_v34  ;;  %v902_v41 = vadd.f32 %v901_v39, %v4607_v40  ;;  %v3971_v31 = vld [vmem:[#allocation6 + $0xe0] sm:$0xff]  ;;  %v3973_v32 = vld [vmem:[#allocation6 + $0xf0] sm:$0xff]  ;;  %v3979_v34 = vld [vmem:[#allocation6 + $0xd8] sm:$0xff] }
 0x24b   :  { %v3989_v39 = vld [vmem:[#allocation6 + $0xb8] sm:$0xff]  ;;  %v3993_v40 = vld [vmem:[#allocation6 + $0xa0] sm:$0xff] }
 0x24c   :  { %3074 = vpow2.f32 %v2788_v33  ;;  %v2789_v37 = vmul.f32 -1.442695, %v831_v35  ;;  %v2790_v44 = vmul.f32 -1.442695, %v902_v41  ;;  %v3975_v33 = vld [vmem:[#allocation6 + $0xc8] sm:$0xff]  ;;  %v3981_v35 = vld [vmem:[#allocation6 + $0xc0] sm:$0xff] }
 0x24d   :  { %v3995_v41 = vld [vmem:[#allocation6 + $0xb0] sm:$0xff] }
 0x24e   :  { %3076 = vpow2.f32 %v2789_v37  ;;  %v3987_v37 = vld [vmem:[#allocation6 + $0xa8] sm:$0xff] }
 0x24f   :  { %3078 = vtanh.f32 %v900_v43  ;;  %v4001_v43 = vld [vmem:[#allocation6 + $0x98] sm:$0xff] }
 0x250   :  { %3080 = vpow2.f32 %v2790_v44  ;;  %v4005_v44 = vld [vmem:[#allocation6 + $0x80] sm:$0xff] }
 0x259   :  { %v3075_v45 = vpop.eup %3074 }
 0x25a   :  { %v907_v46 = vadd.f32 1.0, %v3075_v45  ;;  %v4007_v45 = vld [vmem:[#allocation6 + $0x90] sm:$0xff] }
 0x25b   :  { %v3077_v48 = vpop.eup %3076  ;;  %4612 = vst [vmem:[#allocation18_spill] sm:$0xff] %v4007_v45 }
 0x25c   :  { %3082 = vrcp.f32 %v907_v46  ;;  %v913_v49 = vadd.f32 1.0, %v3077_v48  ;;  %v3079_v50 = vpop.eup %3078  ;;  %v4011_v46 = vld [vmem:[#allocation6 + $0x68] sm:$0xff]  ;;  %v4013_v48 = vld [vmem:[#allocation6 + $0x78] sm:$0xff] }
 0x25d   :  { %v3081_v51 = vpop.eup %3080  ;;  %4613 = vst [vmem:[#allocation19_spill] sm:$0xff] %v4011_v46  ;;  %4614 = vst [vmem:[#allocation20_spill] sm:$0xff] %v4013_v48 }
 0x25e   :  { %3084 = vrcp.f32 %v913_v49  ;;  %v920_v47 = vadd.f32 1.0, %v3081_v51  ;;  %v4017_v49 = vld [vmem:[#allocation6 + $0x60] sm:$0xff]  ;;  %v4023_v51 = vld [vmem:[#allocation6 + $0x48] sm:$0xff] }
 0x25f   :  { %4615 = vst [vmem:[#allocation21_spill] sm:$0xff] %v4017_v49  ;;  %4617 = vst [vmem:[#allocation23_spill] sm:$0xff] %v4023_v51 }
 0x260   :  { %3086 = vrcp.f32 %v920_v47  ;;  %v4035_v47 = vld [vmem:[#allocation6 + $0x28] sm:$0xff] }
 0x261   :  { %4621 = vst [vmem:[#allocation27_spill] sm:$0xff] %v4035_v47 }
 0x269   :  { %v3083_v20 = vpop.eup %3082 }
 0x26a   :  { %v924_v62 = vmul.f32 %v3083_v20, %v3079_v50  ;;  %v4019_v50 = vld [vmem:[#allocation6 + $0x70] sm:$0xff]  ;;  %v4025_v20 = vld [vmem:[#allocation6 + $0x58] sm:$0xff] }
 0x26b   :  { %v3085_v29 = vpop.eup %3084  ;;  %4616 = vst [vmem:[#allocation22_spill] sm:$0xff] %v4019_v50  ;;  %4618 = vst [vmem:[#allocation24_spill] sm:$0xff] %v4025_v20 }
 0x26c   :  { %v923_v0 = vmul.f32 %v3085_v29, %v3786_v2  ;;  %v3897_v2 = vld [vmem:[#allocation6 + $0x1b8] sm:$0xff]  ;;  %v4031_v29 = vld [vmem:[#allocation6 + $0x50] sm:$0xff] }
 0x26d   :  { %v3087_v63 = vpop.eup %3086  ;;  %4620 = vst [vmem:[#allocation26_spill] sm:$0xff] %v4031_v29 }
 0x26e   :  { %v3862_v3 = vadd.f32 %v924_v62, %v923_v0  ;;  %v4029_v62 = vld [vmem:[#allocation6 + $0x40] sm:$0xff]  ;;  %v4037_v0 = vld [vmem:[#allocation6 + $0x38] sm:$0xff] }
 0x26f   :  { %4619 = vst [vmem:[#allocation25_spill] sm:$0xff] %v4029_v62  ;;  %4622 = vst [vmem:[#allocation28_spill] sm:$0xff] %v4037_v0 }
 0x270   :  { %3088 = vtanh.f32 %v3862_v3 }
 0x27d   :  { %v3089_v11 = vpop.eup %3088 }
 0x27e   :  { %v3865_v52 = vmul.f32 %v3089_v11, %v3087_v63  ;;  %v4041_v63 = vld [vmem:[#allocation6 + $0x20] sm:$0xff]  ;;  %v4043_v11 = vld [vmem:[#allocation6 + $0x30] sm:$0xff] }
 0x27f   :  { %4623 = vst [vmem:[#allocation29_spill] sm:$0xff] %v4041_v63  ;;  %4624 = vst [vmem:[#allocation30_spill] sm:$0xff] %v4043_v11 }
 0x280   :  { %4609 = vst [vmem:[#allocation15_spill] sm:$0xff] %v3865_v52  ;;  %1064 = vmatmul.mubr.f32.vlgmr.msra.gmra.mxu0 %v3865_v52  ;;  %1135 = vmatmul.mubr.f32.vlgmr.msra.gmra.mxu1 %v3865_v52  ;;  %v4047_v52 = vld [vmem:[#allocation6 + $0x8] sm:$0xff] }
 0x281   :  { %1300 = vmatprep.mubr.f32.mxu0 %v4603_v26  ;;  %1371 = vmatprep.mubr.f32.mxu1 %v4603_v26  ;;  %4625 = vst [vmem:[#allocation31_spill] sm:$0xff] %v4047_v52  ;;  %v4053_v26 = vld [vmem:[#allocation6] sm:$0xff] }
 0x282   :  { %1237 = vmatpush1.msra.mxu0 %v3877_v59  ;;  %1308 = vmatpush1.msra.mxu1 %v3879_v58  ;;  %4627 = vst [vmem:[#allocation33_spill] sm:$0xff] %v4053_v26 }
 0x283   :  { %1238 = vmatprep.subr.mxu0 %v3883_v53  ;;  %1309 = vmatprep.subr.mxu1 %v3885_v57 }
 0x284   :  { %1239 = vmatpush1.msra.mxu0 %v3889_v55  ;;  %1310 = vmatpush1.msra.mxu1 %v3891_v60 }
 0x285   :  { %1240 = vmatprep.subr.mxu0 %v3895_v1  ;;  %1311 = vmatprep.subr.mxu1 %v3897_v2 }
 0x286   :  { %1241 = vmatpush1.msra.mxu0 %v3901_v54  ;;  %1312 = vmatpush1.msra.mxu1 %v3903_v38 }
 0x287   :  { %1242 = vmatprep.subr.mxu0 %v3907_v5  ;;  %1313 = vmatprep.subr.mxu1 %v3909_v6 }
 0x288   :  { %1243 = vmatpush1.msra.mxu0 %v3913_v7  ;;  %1314 = vmatpush1.msra.mxu1 %v3915_v8 }
 0x289   :  { %1244 = vmatprep.subr.mxu0 %v3919_v9  ;;  %1315 = vmatprep.subr.mxu1 %v3921_v10 }
 0x28a   :  { %1245 = vmatpush1.msra.mxu0 %v3925_v12  ;;  %1316 = vmatpush1.msra.mxu1 %v3927_v13 }
 0x28b   :  { %1246 = vmatprep.subr.mxu0 %v3931_v14  ;;  %1317 = vmatprep.subr.mxu1 %v3933_v15 }
 0x28c   :  { %1247 = vmatpush1.msra.mxu0 %v3937_v16  ;;  %1318 = vmatpush1.msra.mxu1 %v3939_v17 }
 0x28d   :  { %1248 = vmatprep.subr.mxu0 %v3943_v18  ;;  %1319 = vmatprep.subr.mxu1 %v3945_v19 }
 0x28e   :  { %1249 = vmatpush1.msra.mxu0 %v3949_v21  ;;  %1320 = vmatpush1.msra.mxu1 %v3951_v22 }
 0x28f   :  { %1250 = vmatprep.subr.mxu0 %v3955_v23  ;;  %1321 = vmatprep.subr.mxu1 %v3957_v24 }
 0x290   :  { %1251 = vmatpush1.msra.mxu0 %v3959_v25  ;;  %1322 = vmatpush1.msra.mxu1 %v3963_v27 }
 0x291   :  { %1252 = vmatprep.subr.mxu0 %v3965_v28  ;;  %1323 = vmatprep.subr.mxu1 %v3967_v30 }
 0x292   :  { %1253 = vmatpush1.msra.mxu0 %v3971_v31  ;;  %1324 = vmatpush1.msra.mxu1 %v3973_v32 }
 0x293   :  { %1254 = vmatprep.subr.mxu0 %v3975_v33  ;;  %1325 = vmatprep.subr.mxu1 %v3979_v34 }
 0x294   :  { %1255 = vmatpush1.msra.mxu0 %v3981_v35  ;;  %1326 = vmatpush1.msra.mxu1 %v3983_v36 }
 0x295   :  { %1256 = vmatprep.subr.mxu0 %v3987_v37  ;;  %1327 = vmatprep.subr.mxu1 %v3989_v39 }
 0x296   :  { %1257 = vmatpush1.msra.mxu0 %v3993_v40  ;;  %1328 = vmatpush1.msra.mxu1 %v3995_v41 }
 0x297   :  { %1258 = vmatprep.subr.mxu0 %v3999_v42  ;;  %1329 = vmatprep.subr.mxu1 %v4001_v43 }
 0x298   :  { %1259 = vmatpush1.msra.mxu0 %v4005_v44  ;;  %1330 = vmatpush1.msra.mxu1 %v4007_v45 }
 0x299   :  { %1260 = vmatprep.subr.mxu0 %v4011_v46  ;;  %1331 = vmatprep.subr.mxu1 %v4013_v48  ;;  %v4632_v48 = vld [vmem:[#allocation40_spill] sm:$0xff] }
 0x29a   :  { %1261 = vmatpush1.msra.mxu0 %v4017_v49  ;;  %1332 = vmatpush1.msra.mxu1 %v4019_v50  ;;  %v4631_v49 = vld [vmem:[#allocation42_spill] sm:$0xff] }
 0x29b   :  { %1262 = vmatprep.subr.mxu0 %v4023_v51  ;;  %1333 = vmatprep.subr.mxu1 %v4025_v20  ;;  %v4055_v51 = vld [vmem:[#allocation6 + $0x10] sm:$0xff] }
 0x29c   :  { %1263 = vmatpush1.msra.mxu0 %v4029_v62  ;;  %1334 = vmatpush1.msra.mxu1 %v4031_v29  ;;  %4628 = vst [vmem:[#allocation34_spill] sm:$0xff] %v4055_v51 }
 0x29d   :  { %1264 = vmatprep.subr.mxu0 %v4035_v47  ;;  %1335 = vmatprep.subr.mxu1 %v4037_v0  ;;  %v4629_v47 = vld [vmem:[#allocation39_spill] sm:$0xff] }
 0x29e   :  { %1265 = vmatpush1.msra.mxu0 %v4041_v63  ;;  %1336 = vmatpush1.msra.mxu1 %v4043_v11  ;;  %v4630_v63 = vld [vmem:[#allocation41_spill] sm:$0xff] }
 0x29f   :  { %1266 = vmatprep.subr.mxu0 %v4047_v52  ;;  %1337 = vmatprep.subr.mxu1 %v4049_v4 }
 0x2a0   :  { %1267 = vmatpush1.msra.mxu0 %v4053_v26  ;;  %1338 = vmatpush1.msra.mxu1 %v4055_v51 }
 0x2a1   :  { %1473 = vmatprep.subr.mxu0 %v3871_v61  ;;  %1544 = vmatprep.subr.mxu1 %v3873_v56 }
 0x340   :  { %v1065_v0 = vpop.f32.mrf.mxu0  ;;  %v1136_v11 = vpop.f32.mrf.mxu1 }
 0x341   :  { %v1066_v29 = vadd.f32 %v1065_v0, %v4629_v47  ;;  %v1137_v51 = vadd.f32 %v1136_v11, %v4632_v48  ;;  %v4640_v11 = vld [vmem:[#allocation24_spill] sm:$0xff] }
 0x342   :  { %v1067_v62 = vpop.f32.mrf.mxu0  ;;  %v1138_v4 = vpop.f32.mrf.mxu1 }
 0x343   :  { %v2791_v20 = vmul.f32 -1.442695, %v1066_v29  ;;  %v1068_v50 = vadd.f32 %v1067_v62, %v4630_v63  ;;  %v1139_v26 = vadd.f32 %v1138_v4, %v4631_v49  ;;  %v4638_v49 = vld [vmem:[#allocation22_spill] sm:$0xff] }
 0x345   :  { %3090 = vpow2.f32 %v2791_v20  ;;  %v2792_v52 = vmul.f32 -1.442695, %v1068_v50  ;;  %v2793_v46 = vmul.f32 -1.442695, %v1139_v26 }
 0x347   :  { %3092 = vpow2.f32 %v2792_v52 }
 0x348   :  { %3094 = vtanh.f32 %v1137_v51  ;;  %v4639_v51 = vld [vmem:[#allocation23_spill] sm:$0xff] }
 0x349   :  { %3096 = vpow2.f32 %v2793_v46  ;;  %v4637_v46 = vld [vmem:[#allocation21_spill] sm:$0xff] }
 0x352   :  { %v3091_v61 = vpop.eup %3090 }
 0x353   :  { %v1144_v45 = vadd.f32 1.0, %v3091_v61 }
 0x354   :  { %v3093_v56 = vpop.eup %3092 }
 0x355   :  { %3098 = vrcp.f32 %v1144_v45  ;;  %v1150_v47 = vadd.f32 1.0, %v3093_v56  ;;  %v3095_v29 = vpop.eup %3094  ;;  %v4635_v56 = vld [vmem:[#allocation19_spill] sm:$0xff]  ;;  %v4636_v45 = vld [vmem:[#allocation20_spill] sm:$0xff] }
 0x356   :  { %v3097_v62 = vpop.eup %3096 }
 0x357   :  { %3100 = vrcp.f32 %v1150_v47  ;;  %v1157_v52 = vadd.f32 1.0, %v3097_v62  ;;  %v4641_v47 = vld [vmem:[#allocation25_spill] sm:$0xff]  ;;  %v4643_v62 = vld [vmem:[#allocation27_spill] sm:$0xff] }
 0x359   :  { %3102 = vrcp.f32 %v1157_v52  ;;  %v4647_v52 = vld [vmem:[#allocation31_spill] sm:$0xff] }
 0x362   :  { %v3099_v20 = vpop.eup %3098 }
 0x363   :  { %v1161_v0 = vmul.f32 %v3099_v20, %v3095_v29  ;;  %v4642_v29 = vld [vmem:[#allocation26_spill] sm:$0xff]  ;;  %v4644_v20 = vld [vmem:[#allocation28_spill] sm:$0xff] }
 0x364   :  { %v3101_v50 = vpop.eup %3100 }
 0x365   :  { %v1160_v63 = vmul.f32 %v3101_v50, %v3862_v3  ;;  %v4634_v3 = vld [vmem:[#allocation18_spill] sm:$0xff] }
 0x366   :  { %v3103_v26 = vpop.eup %3102  ;;  %v4646_v50 = vld [vmem:[#allocation30_spill] sm:$0xff] }
 0x367   :  { %v4070_v4 = vadd.f32 %v1161_v0, %v1160_v63  ;;  %v4645_v0 = vld [vmem:[#allocation29_spill] sm:$0xff]  ;;  %v4648_v63 = vld [vmem:[#allocation32_spill] sm:$0xff] }
 0x369   :  { %3104 = vtanh.f32 %v4070_v4 }
 0x376   :  { %v3105_v61 = vpop.eup %3104 }
 0x377   :  { %v4073_v48 = vmul.f32 %v3105_v61, %v3103_v26  ;;  %v4649_v26 = vld [vmem:[#allocation33_spill] sm:$0xff]  ;;  %v4650_v61 = vmov 0.0  }
 0x379   :  { %4633 = vst [vmem:[#allocation35_spill] sm:$0xff] %v4073_v48  ;;  %1301 = vmatmul.mubr.f32.vlgmr.msra.gmra.mxu0 %v4073_v48  ;;  %1372 = vmatmul.mubr.f32.vlgmr.msra.gmra.mxu1 %v4073_v48  ;;  %v4651_v48 = vld [vmem:[#allocation34_spill] sm:$0xff] }
 0x37a   :  { %1474 = vmatpush1.msra.mxu0 %v3877_v59  ;;  %1545 = vmatpush1.msra.mxu1 %v3879_v58 }
 0x37b   :  { %1475 = vmatprep.subr.mxu0 %v3883_v53  ;;  %1546 = vmatprep.subr.mxu1 %v3885_v57 }
 0x37c   :  { %1476 = vmatpush1.msra.mxu0 %v3889_v55  ;;  %1547 = vmatpush1.msra.mxu1 %v3891_v60 }
 0x37d   :  { %1477 = vmatprep.subr.mxu0 %v3895_v1  ;;  %1548 = vmatprep.subr.mxu1 %v3897_v2 }
 0x37e   :  { %1478 = vmatpush1.msra.mxu0 %v3901_v54  ;;  %1549 = vmatpush1.msra.mxu1 %v3903_v38 }
 0x37f   :  { %1479 = vmatprep.subr.mxu0 %v3907_v5  ;;  %1550 = vmatprep.subr.mxu1 %v3909_v6 }
 0x380   :  { %1480 = vmatpush1.msra.mxu0 %v3913_v7  ;;  %1551 = vmatpush1.msra.mxu1 %v3915_v8 }
 0x381   :  { %1481 = vmatprep.subr.mxu0 %v3919_v9  ;;  %1552 = vmatprep.subr.mxu1 %v3921_v10 }
 0x382   :  { %1482 = vmatpush1.msra.mxu0 %v3925_v12  ;;  %1553 = vmatpush1.msra.mxu1 %v3927_v13 }
 0x383   :  { %1483 = vmatprep.subr.mxu0 %v3931_v14  ;;  %1554 = vmatprep.subr.mxu1 %v3933_v15 }
 0x384   :  { %1484 = vmatpush1.msra.mxu0 %v3937_v16  ;;  %1555 = vmatpush1.msra.mxu1 %v3939_v17 }
 0x385   :  { %1485 = vmatprep.subr.mxu0 %v3943_v18  ;;  %1556 = vmatprep.subr.mxu1 %v3945_v19 }
 0x386   :  { %1486 = vmatpush1.msra.mxu0 %v3949_v21  ;;  %1557 = vmatpush1.msra.mxu1 %v3951_v22 }
 0x387   :  { %1487 = vmatprep.subr.mxu0 %v3955_v23  ;;  %1558 = vmatprep.subr.mxu1 %v3957_v24 }
 0x388   :  { %1488 = vmatpush1.msra.mxu0 %v3959_v25  ;;  %1559 = vmatpush1.msra.mxu1 %v3963_v27 }
 0x389   :  { %1489 = vmatprep.subr.mxu0 %v3965_v28  ;;  %1560 = vmatprep.subr.mxu1 %v3967_v30 }
 0x38a   :  { %1490 = vmatpush1.msra.mxu0 %v3971_v31  ;;  %1561 = vmatpush1.msra.mxu1 %v3973_v32 }
 0x38b   :  { %1491 = vmatprep.subr.mxu0 %v3975_v33  ;;  %1562 = vmatprep.subr.mxu1 %v3979_v34 }
 0x38c   :  { %1492 = vmatpush1.msra.mxu0 %v3981_v35  ;;  %1563 = vmatpush1.msra.mxu1 %v3983_v36 }
 0x38d   :  { %1493 = vmatprep.subr.mxu0 %v3987_v37  ;;  %1564 = vmatprep.subr.mxu1 %v3989_v39 }
 0x38e   :  { %1494 = vmatpush1.msra.mxu0 %v3993_v40  ;;  %1565 = vmatpush1.msra.mxu1 %v3995_v41 }
 0x38f   :  { %1495 = vmatprep.subr.mxu0 %v3999_v42  ;;  %1566 = vmatprep.subr.mxu1 %v4001_v43 }
 0x390   :  { %1496 = vmatpush1.msra.mxu0 %v4005_v44  ;;  %1567 = vmatpush1.msra.mxu1 %v4634_v3 }
 0x391   :  { %1497 = vmatprep.subr.mxu0 %v4635_v56  ;;  %1568 = vmatprep.subr.mxu1 %v4636_v45  ;;  %v4657_v45 = vld [vmem:[#allocation44_spill] sm:$0xff] }
 0x392   :  { %1498 = vmatpush1.msra.mxu0 %v4637_v46  ;;  %1569 = vmatpush1.msra.mxu1 %v4638_v49  ;;  %v4656_v46 = vld [vmem:[#allocation46_spill] sm:$0xff] }
 0x393   :  { %1499 = vmatprep.subr.mxu0 %v4639_v51  ;;  %1570 = vmatprep.subr.mxu1 %v4640_v11 }
 0x394   :  { %1500 = vmatpush1.msra.mxu0 %v4641_v47  ;;  %1571 = vmatpush1.msra.mxu1 %v4642_v29  ;;  %v4652_v29 = vld [vmem:[#allocation16_spill] sm:$0xff] }
 0x395   :  { %1501 = vmatprep.subr.mxu0 %v4643_v62  ;;  %1572 = vmatprep.subr.mxu1 %v4644_v20  ;;  %v4653_v62 = vld [vmem:[#allocation17_spill] sm:$0xff] }
 0x396   :  { %1502 = vmatpush1.msra.mxu0 %v4645_v0  ;;  %1573 = vmatpush1.msra.mxu1 %v4646_v50  ;;  %v4654_v0 = vld [vmem:[#allocation43_spill] sm:$0xff] }
 0x397   :  { %1503 = vmatprep.subr.mxu0 %v4647_v52  ;;  %1574 = vmatprep.subr.mxu1 %v4648_v63  ;;  %v4655_v52 = vld [vmem:[#allocation45_spill] sm:$0xff] }
 0x398   :  { %1504 = vmatpush1.msra.mxu0 %v4649_v26  ;;  %1537 = vmatprep.mubr.f32.mxu0 %v4650_v61 }
 0x399   :  { %1575 = vmatpush1.msra.mxu1 %v4651_v48  ;;  %1608 = vmatprep.mubr.f32.mxu1 %v4650_v61 }
 0x39a   :  { %1710 = vmatprep.subr.mxu0 %v4652_v29  ;;  %1781 = vmatprep.subr.mxu1 %v4653_v62 }
 0x439   :  { %v1302_v20 = vpop.f32.mrf.mxu0  ;;  %v1373_v63 = vpop.f32.mrf.mxu1 }
 0x43a   :  { %v1303_v47 = vadd.f32 %v1302_v20, %v4654_v0  ;;  %v1374_v61 = vadd.f32 %v1373_v63, %v4657_v45  ;;  %v4664_v63 = vld [vmem:[#allocation23_spill] sm:$0xff] }
 0x43b   :  { %v1304_v50 = vpop.f32.mrf.mxu0  ;;  %v1375_v49 = vpop.f32.mrf.mxu1 }
 0x43c   :  { %v2794_v11 = vmul.f32 -1.442695, %v1303_v47  ;;  %v1305_v51 = vadd.f32 %v1304_v50, %v4655_v52  ;;  %v1376_v48 = vadd.f32 %v1375_v49, %v4656_v46 }
 0x43e   :  { %3106 = vpow2.f32 %v2794_v11  ;;  %v2795_v26 = vmul.f32 -1.442695, %v1305_v51  ;;  %v2796_v56 = vmul.f32 -1.442695, %v1376_v48 }
 0x440   :  { %3108 = vpow2.f32 %v2795_v26 }
 0x441   :  { %3110 = vtanh.f32 %v1374_v61  ;;  %v4665_v61 = vld [vmem:[#allocation24_spill] sm:$0xff] }
 0x442   :  { %3112 = vpow2.f32 %v2796_v56  ;;  %v4661_v56 = vld [vmem:[#allocation20_spill] sm:$0xff] }
 0x44b   :  { %v3107_v29 = vpop.eup %3106 }
 0x44c   :  { %v1381_v3 = vadd.f32 1.0, %v3107_v29  ;;  %v4662_v29 = vld [vmem:[#allocation21_spill] sm:$0xff] }
 0x44d   :  { %v3109_v62 = vpop.eup %3108 }
 0x44e   :  { %3114 = vrcp.f32 %v1381_v3  ;;  %v1387_v20 = vadd.f32 1.0, %v3109_v62  ;;  %v3111_v47 = vpop.eup %3110  ;;  %v4660_v3 = vld [vmem:[#allocation19_spill] sm:$0xff]  ;;  %v4663_v62 = vld [vmem:[#allocation22_spill] sm:$0xff] }
 0x44f   :  { %v3113_v0 = vpop.eup %3112 }
 0x450   :  { %3116 = vrcp.f32 %v1387_v20  ;;  %v1394_v52 = vadd.f32 1.0, %v3113_v0  ;;  %v4666_v20 = vld [vmem:[#allocation25_spill] sm:$0xff]  ;;  %v4668_v0 = vld [vmem:[#allocation27_spill] sm:$0xff] }
 0x452   :  { %3118 = vrcp.f32 %v1394_v52  ;;  %v4672_v52 = vld [vmem:[#allocation31_spill] sm:$0xff] }
 0x45b   :  { %v3115_v11 = vpop.eup %3114 }
 0x45c   :  { %v1398_v50 = vmul.f32 %v3115_v11, %v3111_v47  ;;  %v4667_v47 = vld [vmem:[#allocation26_spill] sm:$0xff]  ;;  %v4669_v11 = vld [vmem:[#allocation28_spill] sm:$0xff] }
 0x45d   :  { %v3117_v51 = vpop.eup %3116 }
 0x45e   :  { %v1397_v26 = vmul.f32 %v3117_v51, %v4070_v4  ;;  %v4659_v4 = vld [vmem:[#allocation18_spill] sm:$0xff] }
 0x45f   :  { %v3119_v48 = vpop.eup %3118  ;;  %v4671_v51 = vld [vmem:[#allocation30_spill] sm:$0xff] }
 0x460   :  { %v4148_v46 = vadd.f32 %v1398_v50, %v1397_v26  ;;  %v4670_v50 = vld [vmem:[#allocation29_spill] sm:$0xff]  ;;  %v4673_v26 = vld [vmem:[#allocation32_spill] sm:$0xff] }
 0x462   :  { %3120 = vtanh.f32 %v4148_v46 }
 0x46f   :  { %v3121_v45 = vpop.eup %3120 }
 0x470   :  { %v4151_v49 = vmul.f32 %v3121_v45, %v3119_v48  ;;  %v4674_v48 = vld [vmem:[#allocation33_spill] sm:$0xff]  ;;  %v4675_v45 = vmov 0.0  }
 0x472   :  { %4658 = vst [vmem:[#allocation37_spill] sm:$0xff] %v4151_v49  ;;  %1538 = vmatmul.mubr.f32.vlgmr.msra.gmra.mxu0 %v4151_v49  ;;  %1609 = vmatmul.mubr.f32.vlgmr.msra.gmra.mxu1 %v4151_v49  ;;  %v4676_v49 = vld [vmem:[#allocation34_spill] sm:$0xff] }
 0x473   :  { %1711 = vmatpush1.msra.mxu0 %v3877_v59  ;;  %1782 = vmatpush1.msra.mxu1 %v3879_v58 }
 0x474   :  { %1712 = vmatprep.subr.mxu0 %v3883_v53  ;;  %1783 = vmatprep.subr.mxu1 %v3885_v57 }
 0x475   :  { %1713 = vmatpush1.msra.mxu0 %v3889_v55  ;;  %1784 = vmatpush1.msra.mxu1 %v3891_v60 }
 0x476   :  { %1714 = vmatprep.subr.mxu0 %v3895_v1  ;;  %1785 = vmatprep.subr.mxu1 %v3897_v2 }
 0x477   :  { %1715 = vmatpush1.msra.mxu0 %v3901_v54  ;;  %1786 = vmatpush1.msra.mxu1 %v3903_v38 }
 0x478   :  { %1716 = vmatprep.subr.mxu0 %v3907_v5  ;;  %1787 = vmatprep.subr.mxu1 %v3909_v6 }
 0x479   :  { %1717 = vmatpush1.msra.mxu0 %v3913_v7  ;;  %1788 = vmatpush1.msra.mxu1 %v3915_v8 }
 0x47a   :  { %1718 = vmatprep.subr.mxu0 %v3919_v9  ;;  %1789 = vmatprep.subr.mxu1 %v3921_v10 }
 0x47b   :  { %1719 = vmatpush1.msra.mxu0 %v3925_v12  ;;  %1790 = vmatpush1.msra.mxu1 %v3927_v13 }
 0x47c   :  { %1720 = vmatprep.subr.mxu0 %v3931_v14  ;;  %1791 = vmatprep.subr.mxu1 %v3933_v15 }
 0x47d   :  { %1721 = vmatpush1.msra.mxu0 %v3937_v16  ;;  %1792 = vmatpush1.msra.mxu1 %v3939_v17 }
 0x47e   :  { %1722 = vmatprep.subr.mxu0 %v3943_v18  ;;  %1793 = vmatprep.subr.mxu1 %v3945_v19 }
 0x47f   :  { %1723 = vmatpush1.msra.mxu0 %v3949_v21  ;;  %1794 = vmatpush1.msra.mxu1 %v3951_v22 }
 0x480   :  { %1724 = vmatprep.subr.mxu0 %v3955_v23  ;;  %1795 = vmatprep.subr.mxu1 %v3957_v24 }
 0x481   :  { %1725 = vmatpush1.msra.mxu0 %v3959_v25  ;;  %1796 = vmatpush1.msra.mxu1 %v3963_v27 }
 0x482   :  { %1726 = vmatprep.subr.mxu0 %v3965_v28  ;;  %1797 = vmatprep.subr.mxu1 %v3967_v30 }
 0x483   :  { %1727 = vmatpush1.msra.mxu0 %v3971_v31  ;;  %1798 = vmatpush1.msra.mxu1 %v3973_v32 }
 0x484   :  { %1728 = vmatprep.subr.mxu0 %v3975_v33  ;;  %1799 = vmatprep.subr.mxu1 %v3979_v34 }
 0x485   :  { %1729 = vmatpush1.msra.mxu0 %v3981_v35  ;;  %1800 = vmatpush1.msra.mxu1 %v3983_v36 }
 0x486   :  { %1730 = vmatprep.subr.mxu0 %v3987_v37  ;;  %1801 = vmatprep.subr.mxu1 %v3989_v39 }
 0x487   :  { %1731 = vmatpush1.msra.mxu0 %v3993_v40  ;;  %1802 = vmatpush1.msra.mxu1 %v3995_v41 }
 0x488   :  { %1732 = vmatprep.subr.mxu0 %v3999_v42  ;;  %1803 = vmatprep.subr.mxu1 %v4001_v43 }
 0x489   :  { %1733 = vmatpush1.msra.mxu0 %v4005_v44  ;;  %1804 = vmatpush1.msra.mxu1 %v4659_v4 }
 0x48a   :  { %1734 = vmatprep.subr.mxu0 %v4660_v3  ;;  %1805 = vmatprep.subr.mxu1 %v4661_v56  ;;  %v4682_v56 = vld [vmem:[#allocation48_spill] sm:$0xff] }
 0x48b   :  { %1735 = vmatpush1.msra.mxu0 %v4662_v29  ;;  %1806 = vmatpush1.msra.mxu1 %v4663_v62  ;;  %v4681_v29 = vld [vmem:[#allocation50_spill] sm:$0xff] }
 0x48c   :  { %1736 = vmatprep.subr.mxu0 %v4664_v63  ;;  %1807 = vmatprep.subr.mxu1 %v4665_v61 }
 0x48d   :  { %1737 = vmatpush1.msra.mxu0 %v4666_v20  ;;  %1808 = vmatpush1.msra.mxu1 %v4667_v47  ;;  %v4677_v47 = vld [vmem:[#allocation16_spill] sm:$0xff] }
 0x48e   :  { %1738 = vmatprep.subr.mxu0 %v4668_v0  ;;  %1809 = vmatprep.subr.mxu1 %v4669_v11  ;;  %v4678_v0 = vld [vmem:[#allocation17_spill] sm:$0xff] }
 0x48f   :  { %1739 = vmatpush1.msra.mxu0 %v4670_v50  ;;  %1810 = vmatpush1.msra.mxu1 %v4671_v51  ;;  %v4679_v50 = vld [vmem:[#allocation47_spill] sm:$0xff] }
 0x490   :  { %1740 = vmatprep.subr.mxu0 %v4672_v52  ;;  %1811 = vmatprep.subr.mxu1 %v4673_v26  ;;  %v4680_v52 = vld [vmem:[#allocation49_spill] sm:$0xff] }
 0x491   :  { %1741 = vmatpush1.msra.mxu0 %v4674_v48  ;;  %1774 = vmatprep.mubr.f32.mxu0 %v4675_v45 }
 0x492   :  { %1812 = vmatpush1.msra.mxu1 %v4676_v49  ;;  %1845 = vmatprep.mubr.f32.mxu1 %v4675_v45 }
 0x493   :  { %1947 = vmatprep.subr.mxu0 %v4677_v47  ;;  %2018 = vmatprep.subr.mxu1 %v4678_v0 }
 0x532   :  { %v1539_v11 = vpop.f32.mrf.mxu0  ;;  %v1610_v26 = vpop.f32.mrf.mxu1 }
 0x533   :  { %v1540_v20 = vadd.f32 %v1539_v11, %v4679_v50  ;;  %v1611_v45 = vadd.f32 %v1610_v26, %v4682_v56  ;;  %v2176_v26 = vld [vmem:[#allocation6 + $0x1e8] sm:$0xff] }
 0x534   :  { %v1541_v51 = vpop.f32.mrf.mxu0  ;;  %v1612_v62 = vpop.f32.mrf.mxu1 }
 0x535   :  { %v2797_v61 = vmul.f32 -1.442695, %v1540_v20  ;;  %v1542_v63 = vadd.f32 %v1541_v51, %v4680_v52  ;;  %v1613_v49 = vadd.f32 %v1612_v62, %v4681_v29 }
 0x537   :  { %3122 = vpow2.f32 %v2797_v61  ;;  %v2798_v48 = vmul.f32 -1.442695, %v1542_v63  ;;  %v2799_v3 = vmul.f32 -1.442695, %v1613_v49 }
 0x539   :  { %3124 = vpow2.f32 %v2798_v48 }
 0x53a   :  { %3126 = vtanh.f32 %v1611_v45  ;;  %v2175_v45 = vld [vmem:[#allocation6 + $0x1e0] sm:$0xff] }
 0x53b   :  { %3128 = vpow2.f32 %v2799_v3 }
 0x544   :  { %v3123_v47 = vpop.eup %3122 }
 0x545   :  { %v1618_v4 = vadd.f32 1.0, %v3123_v47  ;;  %v2178_v47 = vld [vmem:[#allocation6 + $0x1f8] sm:$0xff] }
 0x546   :  { %v3125_v0 = vpop.eup %3124 }
 0x547   :  { %3130 = vrcp.f32 %v1618_v4  ;;  %v1624_v11 = vadd.f32 1.0, %v3125_v0  ;;  %v3127_v20 = vpop.eup %3126  ;;  %v2172_v0 = vld [vmem:[#allocation6 + $0x1c8] sm:$0xff] }
 0x548   :  { %v3129_v50 = vpop.eup %3128 }
 0x549   :  { %3132 = vrcp.f32 %v1624_v11  ;;  %v1631_v52 = vadd.f32 1.0, %v3129_v50  ;;  %v2177_v11 = vld [vmem:[#allocation6 + $0x1f0] sm:$0xff]  ;;  %v2174_v50 = vld [vmem:[#allocation6 + $0x1d8] sm:$0xff] }
 0x54b   :  { %3134 = vrcp.f32 %v1631_v52  ;;  %v2170_v52 = vld [vmem:[#allocation6 + $0x1b8] sm:$0xff] }
 0x554   :  { %v3131_v61 = vpop.eup %3130 }
 0x555   :  { %v1635_v51 = vmul.f32 %v3131_v61, %v3127_v20  ;;  %v2171_v20 = vld [vmem:[#allocation6 + $0x1c0] sm:$0xff]  ;;  %v2168_v61 = vld [vmem:[#allocation6 + $0x1a8] sm:$0xff] }
 0x556   :  { %v3133_v63 = vpop.eup %3132 }
 0x557   :  { %v1634_v48 = vmul.f32 %v3133_v63, %v4148_v46  ;;  %v2167_v63 = vld [vmem:[#allocation6 + $0x1a0] sm:$0xff] }
 0x558   :  { %v3135_v49 = vpop.eup %3134 }
 0x559   :  { %v4226_v29 = vadd.f32 %v1635_v51, %v1634_v48  ;;  %v2173_v51 = vld [vmem:[#allocation6 + $0x1d0] sm:$0xff]  ;;  %v2164_v48 = vld [vmem:[#allocation6 + $0x188] sm:$0xff] }
 0x55b   :  { %3136 = vtanh.f32 %v4226_v29 }
 0x568   :  { %v3137_v56 = vpop.eup %3136 }
 0x569   :  { %v4229_v62 = vmul.f32 %v3137_v56, %v3135_v49  ;;  %v2163_v49 = vld [vmem:[#allocation6 + $0x180] sm:$0xff]  ;;  %v2166_v56 = vld [vmem:[#allocation6 + $0x198] sm:$0xff] }
 0x56b   :  { %1775 = vmatmul.mubr.f32.vlgmr.msra.gmra.mxu0 %v4229_v62  ;;  %1846 = vmatmul.mubr.f32.vlgmr.msra.gmra.mxu1 %v4229_v62 }
 0x56c   :  { %1948 = vmatpush1.msra.mxu0 %v3877_v59  ;;  %2019 = vmatpush1.msra.mxu1 %v3879_v58  ;;  %v4683_v59 = vld [vmem:[#allocation18_spill] sm:$0xff]  ;;  %v4684_v58 = vld [vmem:[#allocation19_spill] sm:$0xff] }
 0x56d   :  { %1949 = vmatprep.subr.mxu0 %v3883_v53  ;;  %2020 = vmatprep.subr.mxu1 %v3885_v57  ;;  %v4685_v53 = vld [vmem:[#allocation20_spill] sm:$0xff]  ;;  %v4686_v57 = vld [vmem:[#allocation21_spill] sm:$0xff] }
 0x56e   :  { %1950 = vmatpush1.msra.mxu0 %v3889_v55  ;;  %2021 = vmatpush1.msra.mxu1 %v3891_v60  ;;  %v4687_v55 = vld [vmem:[#allocation22_spill] sm:$0xff]  ;;  %v4688_v60 = vld [vmem:[#allocation23_spill] sm:$0xff] }
 0x56f   :  { %1951 = vmatprep.subr.mxu0 %v3895_v1  ;;  %2022 = vmatprep.subr.mxu1 %v3897_v2  ;;  %v4689_v1 = vld [vmem:[#allocation24_spill] sm:$0xff]  ;;  %v4690_v2 = vld [vmem:[#allocation25_spill] sm:$0xff] }
 0x570   :  { %1952 = vmatpush1.msra.mxu0 %v3901_v54  ;;  %2023 = vmatpush1.msra.mxu1 %v3903_v38  ;;  %v4691_v54 = vld [vmem:[#allocation26_spill] sm:$0xff]  ;;  %v4692_v38 = vld [vmem:[#allocation27_spill] sm:$0xff] }
 0x571   :  { %1953 = vmatprep.subr.mxu0 %v3907_v5  ;;  %2024 = vmatprep.subr.mxu1 %v3909_v6  ;;  %v4693_v5 = vld [vmem:[#allocation28_spill] sm:$0xff]  ;;  %v4694_v6 = vld [vmem:[#allocation29_spill] sm:$0xff] }
 0x572   :  { %1954 = vmatpush1.msra.mxu0 %v3913_v7  ;;  %2025 = vmatpush1.msra.mxu1 %v3915_v8  ;;  %v4695_v7 = vld [vmem:[#allocation30_spill] sm:$0xff]  ;;  %v4696_v8 = vld [vmem:[#allocation31_spill] sm:$0xff] }
 0x573   :  { %1955 = vmatprep.subr.mxu0 %v3919_v9  ;;  %2026 = vmatprep.subr.mxu1 %v3921_v10  ;;  %v4697_v9 = vld [vmem:[#allocation32_spill] sm:$0xff]  ;;  %v4698_v10 = vld [vmem:[#allocation33_spill] sm:$0xff] }
 0x574   :  { %1956 = vmatpush1.msra.mxu0 %v3925_v12  ;;  %2027 = vmatpush1.msra.mxu1 %v3927_v13  ;;  %v4699_v12 = vmov 0.0   ;;  %v4700_v13 = vld [vmem:[#allocation34_spill] sm:$0xff] }
 0x575   :  { %1957 = vmatprep.subr.mxu0 %v3931_v14  ;;  %2028 = vmatprep.subr.mxu1 %v3933_v15  ;;  %v4701_v15 = vld [vmem:[#allocation51_spill] sm:$0xff] }
 0x576   :  { %1958 = vmatpush1.msra.mxu0 %v3937_v16  ;;  %2029 = vmatpush1.msra.mxu1 %v3939_v17 }
 0x577   :  { %1959 = vmatprep.subr.mxu0 %v3943_v18  ;;  %2030 = vmatprep.subr.mxu1 %v3945_v19  ;;  %v4702_v19 = vld [vmem:[#allocation53_spill] sm:$0xff] }
 0x578   :  { %1960 = vmatpush1.msra.mxu0 %v3949_v21  ;;  %2031 = vmatpush1.msra.mxu1 %v3951_v22 }
 0x579   :  { %1961 = vmatprep.subr.mxu0 %v3955_v23  ;;  %2032 = vmatprep.subr.mxu1 %v3957_v24 }
 0x57a   :  { %1962 = vmatpush1.msra.mxu0 %v3959_v25  ;;  %2033 = vmatpush1.msra.mxu1 %v3963_v27  ;;  %v4703_v25 = vld [vmem:[#allocation54_spill] sm:$0xff] }
 0x57b   :  { %1963 = vmatprep.subr.mxu0 %v3965_v28  ;;  %2034 = vmatprep.subr.mxu1 %v3967_v30  ;;  %v4704_v28 = vld [vmem:[#allocation52_spill] sm:$0xff] }
 0x57c   :  { %1964 = vmatpush1.msra.mxu0 %v3971_v31  ;;  %2035 = vmatpush1.msra.mxu1 %v3973_v32 }
 0x57d   :  { %1965 = vmatprep.subr.mxu0 %v3975_v33  ;;  %2036 = vmatprep.subr.mxu1 %v3979_v34 }
 0x57e   :  { %1966 = vmatpush1.msra.mxu0 %v3981_v35  ;;  %2037 = vmatpush1.msra.mxu1 %v3983_v36 }
 0x57f   :  { %1967 = vmatprep.subr.mxu0 %v3987_v37  ;;  %2038 = vmatprep.subr.mxu1 %v3989_v39 }
 0x580   :  { %1968 = vmatpush1.msra.mxu0 %v3993_v40  ;;  %2039 = vmatpush1.msra.mxu1 %v3995_v41 }
 0x581   :  { %1969 = vmatprep.subr.mxu0 %v3999_v42  ;;  %2040 = vmatprep.subr.mxu1 %v4001_v43 }
 0x582   :  { %1970 = vmatpush1.msra.mxu0 %v4005_v44  ;;  %2041 = vmatpush1.msra.mxu1 %v4683_v59  ;;  %v2160_v59 = vld [vmem:[#allocation6 + $0x168] sm:$0xff] }
 0x583   :  { %1971 = vmatprep.subr.mxu0 %v4684_v58  ;;  %2042 = vmatprep.subr.mxu1 %v4685_v53  ;;  %v2165_v58 = vld [vmem:[#allocation6 + $0x190] sm:$0xff]  ;;  %v2159_v53 = vld [vmem:[#allocation6 + $0x160] sm:$0xff] }
 0x584   :  { %1972 = vmatpush1.msra.mxu0 %v4686_v57  ;;  %2043 = vmatpush1.msra.mxu1 %v4687_v55  ;;  %v2162_v57 = vld [vmem:[#allocation6 + $0x178] sm:$0xff]  ;;  %v2156_v55 = vld [vmem:[#allocation6 + $0x148] sm:$0xff] }
 0x585   :  { %1973 = vmatprep.subr.mxu0 %v4688_v60  ;;  %2044 = vmatprep.subr.mxu1 %v4689_v1  ;;  %v2161_v60 = vld [vmem:[#allocation6 + $0x170] sm:$0xff]  ;;  %v2155_v1 = vld [vmem:[#allocation6 + $0x140] sm:$0xff] }
 0x586   :  { %1974 = vmatpush1.msra.mxu0 %v4690_v2  ;;  %2045 = vmatpush1.msra.mxu1 %v4691_v54  ;;  %v2158_v2 = vld [vmem:[#allocation6 + $0x158] sm:$0xff]  ;;  %v2152_v54 = vld [vmem:[#allocation6 + $0x128] sm:$0xff] }
 0x587   :  { %1975 = vmatprep.subr.mxu0 %v4692_v38  ;;  %2046 = vmatprep.subr.mxu1 %v4693_v5  ;;  %v2157_v38 = vld [vmem:[#allocation6 + $0x150] sm:$0xff]  ;;  %v2151_v5 = vld [vmem:[#allocation6 + $0x120] sm:$0xff] }
 0x588   :  { %1976 = vmatpush1.msra.mxu0 %v4694_v6  ;;  %2047 = vmatpush1.msra.mxu1 %v4695_v7  ;;  %v2154_v6 = vld [vmem:[#allocation6 + $0x138] sm:$0xff]  ;;  %v2148_v7 = vld [vmem:[#allocation6 + $0x108] sm:$0xff] }
 0x589   :  { %1977 = vmatprep.subr.mxu0 %v4696_v8  ;;  %2048 = vmatprep.subr.mxu1 %v4697_v9  ;;  %v2153_v8 = vld [vmem:[#allocation6 + $0x130] sm:$0xff]  ;;  %v2147_v9 = vld [vmem:[#allocation6 + $0x100] sm:$0xff] }
 0x58a   :  { %1978 = vmatpush1.msra.mxu0 %v4698_v10  ;;  %2011 = vmatprep.mubr.f32.mxu0 %v4699_v12  ;;  %v2150_v10 = vld [vmem:[#allocation6 + $0x118] sm:$0xff] }
 0x58b   :  { %2049 = vmatpush1.msra.mxu1 %v4700_v13  ;;  %2082 = vmatprep.mubr.f32.mxu1 %v4699_v12  ;;  %v2149_v13 = vld [vmem:[#allocation6 + $0x110] sm:$0xff] }
 0x58c   :  { %2184 = vmatprep.subr.mxu0 %v2176_v26  ;;  %2255 = vmatprep.subr.mxu1 %v2178_v47  ;;  %v2115_v26 = vld [vmem:[#allocation6] sm:$0xff]  ;;  %v2117_v47 = vld [vmem:[#allocation6 + $0x10] sm:$0xff] }
 0x62b   :  { %v1776_v14 = vpop.f32.mrf.mxu0  ;;  %v1847_v22 = vpop.f32.mrf.mxu1 }
 0x62c   :  { %v1777_v16 = vadd.f32 %v1776_v14, %v4701_v15  ;;  %v1848_v30 = vadd.f32 %v1847_v22, %v4704_v28  ;;  %v2143_v14 = vld [vmem:[#allocation6 + $0xe0] sm:$0xff]  ;;  %v2146_v15 = vld [vmem:[#allocation6 + $0xf8] sm:$0xff]  ;;  %v2141_v22 = vld [vmem:[#allocation6 + $0xd0] sm:$0xff] }
 0x62d   :  { %v1778_v17 = vpop.f32.mrf.mxu0  ;;  %v1849_v24 = vpop.f32.mrf.mxu1  ;;  %v2131_v28 = vld [vmem:[#allocation6 + $0x80] sm:$0xff] }
 0x62e   :  { %v2800_v18 = vmul.f32 -1.442695, %v1777_v16  ;;  %v1779_v21 = vadd.f32 %v1778_v17, %v4702_v19  ;;  %v1850_v27 = vadd.f32 %v1849_v24, %v4703_v25  ;;  %v2140_v16 = vld [vmem:[#allocation6 + $0xc8] sm:$0xff]  ;;  %v2145_v17 = vld [vmem:[#allocation6 + $0xf0] sm:$0xff]  ;;  %v2142_v19 = vld [vmem:[#allocation6 + $0xd8] sm:$0xff] }
 0x62f   :  { %v2138_v24 = vld [vmem:[#allocation6 + $0xb8] sm:$0xff]  ;;  %v2132_v25 = vld [vmem:[#allocation6 + $0x88] sm:$0xff] }
 0x630   :  { %3138 = vpow2.f32 %v2800_v18  ;;  %v2801_v23 = vmul.f32 -1.442695, %v1779_v21  ;;  %v2802_v31 = vmul.f32 -1.442695, %v1850_v27  ;;  %v2139_v18 = vld [vmem:[#allocation6 + $0xc0] sm:$0xff]  ;;  %v2136_v21 = vld [vmem:[#allocation6 + $0xa8] sm:$0xff] }
 0x631   :  { %v2137_v27 = vld [vmem:[#allocation6 + $0xb0] sm:$0xff] }
 0x632   :  { %3140 = vpow2.f32 %v2801_v23  ;;  %v2135_v23 = vld [vmem:[#allocation6 + $0xa0] sm:$0xff] }
 0x633   :  { %3142 = vtanh.f32 %v1848_v30  ;;  %v2134_v30 = vld [vmem:[#allocation6 + $0x98] sm:$0xff] }
 0x634   :  { %3144 = vpow2.f32 %v2802_v31  ;;  %v2128_v31 = vld [vmem:[#allocation6 + $0x68] sm:$0xff] }
 0x63d   :  { %v3139_v32 = vpop.eup %3138 }
 0x63e   :  { %v1855_v33 = vadd.f32 1.0, %v3139_v32  ;;  %v2133_v32 = vld [vmem:[#allocation6 + $0x90] sm:$0xff] }
 0x63f   :  { %v3141_v34 = vpop.eup %3140 }
 0x640   :  { %3146 = vrcp.f32 %v1855_v33  ;;  %v1861_v35 = vadd.f32 1.0, %v3141_v34  ;;  %v3143_v36 = vpop.eup %3142  ;;  %v2127_v33 = vld [vmem:[#allocation6 + $0x60] sm:$0xff]  ;;  %v2130_v34 = vld [vmem:[#allocation6 + $0x78] sm:$0xff] }
 0x641   :  { %v3145_v37 = vpop.eup %3144 }
 0x642   :  { %3148 = vrcp.f32 %v1861_v35  ;;  %v1868_v42 = vadd.f32 1.0, %v3145_v37  ;;  %v2124_v35 = vld [vmem:[#allocation6 + $0x48] sm:$0xff]  ;;  %v2123_v37 = vld [vmem:[#allocation6 + $0x40] sm:$0xff] }
 0x644   :  { %3150 = vrcp.f32 %v1868_v42  ;;  %v2119_v42 = vld [vmem:[#allocation6 + $0x20] sm:$0xff] }
 0x64d   :  { %v3147_v39 = vpop.eup %3146 }
 0x64e   :  { %v1872_v40 = vmul.f32 %v3147_v39, %v3143_v36  ;;  %v2129_v36 = vld [vmem:[#allocation6 + $0x70] sm:$0xff]  ;;  %v2126_v39 = vld [vmem:[#allocation6 + $0x58] sm:$0xff] }
 0x64f   :  { %v3149_v41 = vpop.eup %3148 }
 0x650   :  { %v1871_v43 = vmul.f32 %v3149_v41, %v4226_v29  ;;  %v2169_v29 = vld [vmem:[#allocation6 + $0x1b0] sm:$0xff] }
 0x651   :  { %v3151_v46 = vpop.eup %3150  ;;  %v2125_v41 = vld [vmem:[#allocation6 + $0x50] sm:$0xff] }
 0x652   :  { %v4302_v44 = vadd.f32 %v1872_v40, %v1871_v43  ;;  %v2120_v40 = vld [vmem:[#allocation6 + $0x28] sm:$0xff]  ;;  %v2122_v43 = vld [vmem:[#allocation6 + $0x38] sm:$0xff] }
 0x654   :  { %3152 = vtanh.f32 %v4302_v44 }
 0x661   :  { %v3153_v4 = vpop.eup %3152 }
 0x662   :  { %v4305_v3 = vmul.f32 %v3153_v4, %v3151_v46  ;;  %v2116_v46 = vld [vmem:[#allocation6 + $0x8] sm:$0xff]  ;;  %v2121_v4 = vld [vmem:[#allocation6 + $0x30] sm:$0xff] }
 0x664   :  { %2012 = vmatmul.mubr.f32.vlgmr.msra.gmra.mxu0 %v4305_v3  ;;  %2083 = vmatmul.mubr.f32.vlgmr.msra.gmra.mxu1 %v4305_v3 }
 0x665   :  { %2248 = vmatprep.mubr.f32.mxu0 %v4699_v12  ;;  %2319 = vmatprep.mubr.f32.mxu1 %v4699_v12  ;;  %v2144_v12 = vld [vmem:[#allocation6 + $0xe8] sm:$0xff] }
 0x666   :  { %2185 = vmatpush1.msra.mxu0 %v2175_v45  ;;  %2256 = vmatpush1.msra.mxu1 %v2177_v11  ;;  %v2118_v45 = vld [vmem:[#allocation6 + $0x18] sm:$0xff] }
 0x667   :  { %2186 = vmatprep.subr.mxu0 %v2172_v0  ;;  %2257 = vmatprep.subr.mxu1 %v2174_v50  ;;  %v2377_v0 = vld [vmem:[#allocation8 + $0x78] sm:$0xff] }
 0x668   :  { %2187 = vmatpush1.msra.mxu0 %v2171_v20  ;;  %2258 = vmatpush1.msra.mxu1 %v2173_v51  ;;  %v4705_v20 = vld [vmem:[#allocation55_spill] sm:$0xff] }
 0x669   :  { %2188 = vmatprep.subr.mxu0 %v2168_v61  ;;  %2259 = vmatprep.subr.mxu1 %v2170_v52 }
 0x66a   :  { %2189 = vmatpush1.msra.mxu0 %v2167_v63  ;;  %2260 = vmatpush1.msra.mxu1 %v2169_v29  ;;  %v4706_v63 = vld [vmem:[#allocation57_spill] sm:$0xff] }
 0x66b   :  { %2190 = vmatprep.subr.mxu0 %v2164_v48  ;;  %2261 = vmatprep.subr.mxu1 %v2166_v56  ;;  %v4707_v56 = vld [vmem:[#allocation58_spill] sm:$0xff] }
 0x66c   :  { %2191 = vmatpush1.msra.mxu0 %v2163_v49  ;;  %2262 = vmatpush1.msra.mxu1 %v2165_v58  ;;  %v4708_v58 = vld [vmem:[#allocation56_spill] sm:$0xff] }
 0x66d   :  { %2192 = vmatprep.subr.mxu0 %v2160_v59  ;;  %2263 = vmatprep.subr.mxu1 %v2162_v57 }
 0x66e   :  { %2193 = vmatpush1.msra.mxu0 %v2159_v53  ;;  %2264 = vmatpush1.msra.mxu1 %v2161_v60 }
 0x66f   :  { %2194 = vmatprep.subr.mxu0 %v2156_v55  ;;  %2265 = vmatprep.subr.mxu1 %v2158_v2 }
 0x670   :  { %2195 = vmatpush1.msra.mxu0 %v2155_v1  ;;  %2266 = vmatpush1.msra.mxu1 %v2157_v38 }
 0x671   :  { %2196 = vmatprep.subr.mxu0 %v2152_v54  ;;  %2267 = vmatprep.subr.mxu1 %v2154_v6 }
 0x672   :  { %2197 = vmatpush1.msra.mxu0 %v2151_v5  ;;  %2268 = vmatpush1.msra.mxu1 %v2153_v8 }
 0x673   :  { %2198 = vmatprep.subr.mxu0 %v2148_v7  ;;  %2269 = vmatprep.subr.mxu1 %v2150_v10 }
 0x674   :  { %2199 = vmatpush1.msra.mxu0 %v2147_v9  ;;  %2270 = vmatpush1.msra.mxu1 %v2149_v13 }
 0x675   :  { %2200 = vmatprep.subr.mxu0 %v2144_v12  ;;  %2271 = vmatprep.subr.mxu1 %v2146_v15  ;;  %v2376_v15 = vld [vmem:[#allocation8 + $0x70] sm:$0xff] }
 0x676   :  { %2201 = vmatpush1.msra.mxu0 %v2143_v14  ;;  %2272 = vmatpush1.msra.mxu1 %v2145_v17  ;;  %v2375_v17 = vld [vmem:[#allocation8 + $0x68] sm:$0xff] }
 0x677   :  { %2202 = vmatprep.subr.mxu0 %v2140_v16  ;;  %2273 = vmatprep.subr.mxu1 %v2142_v19  ;;  %v4709_v16 = vld [vmem:[#allocation63_spill] sm:$0xff]  ;;  %v2372_v19 = vld [vmem:[#allocation8 + $0x50] sm:$0xff] }
 0x678   :  { %2203 = vmatpush1.msra.mxu0 %v2139_v18  ;;  %2274 = vmatpush1.msra.mxu1 %v2141_v22  ;;  %v2374_v18 = vld [vmem:[#allocation8 + $0x60] sm:$0xff] }
 0x679   :  { %2204 = vmatprep.subr.mxu0 %v2136_v21  ;;  %2275 = vmatprep.subr.mxu1 %v2138_v24  ;;  %v2371_v21 = vld [vmem:[#allocation8 + $0x48] sm:$0xff]  ;;  %v2370_v22 = vld [vmem:[#allocation8 + $0x40] sm:$0xff]  ;;  %v2368_v24 = vld [vmem:[#allocation8 + $0x30] sm:$0xff] }
 0x67a   :  { %2205 = vmatpush1.msra.mxu0 %v2135_v23  ;;  %2276 = vmatpush1.msra.mxu1 %v2137_v27  ;;  %v2369_v23 = vld [vmem:[#allocation8 + $0x38] sm:$0xff]  ;;  %v2366_v27 = vld [vmem:[#allocation8 + $0x20] sm:$0xff] }
 0x67b   :  { %2206 = vmatprep.subr.mxu0 %v2132_v25  ;;  %2277 = vmatprep.subr.mxu1 %v2134_v30  ;;  %v2367_v25 = vld [vmem:[#allocation8 + $0x28] sm:$0xff]  ;;  %v2364_v30 = vld [vmem:[#allocation8 + $0x10] sm:$0xff] }
 0x67c   :  { %2207 = vmatpush1.msra.mxu0 %v2131_v28  ;;  %2278 = vmatpush1.msra.mxu1 %v2133_v32  ;;  %v2365_v28 = vld [vmem:[#allocation8 + $0x18] sm:$0xff]  ;;  %v2362_v32 = vld [vmem:[#allocation8] sm:$0xff] }
 0x67d   :  { %2208 = vmatprep.subr.mxu0 %v2128_v31  ;;  %2279 = vmatprep.subr.mxu1 %v2130_v34  ;;  %v2363_v31 = vld [vmem:[#allocation8 + $0x8] sm:$0xff]  ;;  %v4711_v34 = vld [vmem:[#allocation35_spill] sm:$0xff] }
 0x67e   :  { %2209 = vmatpush1.msra.mxu0 %v2127_v33  ;;  %2280 = vmatpush1.msra.mxu1 %v2129_v36  ;;  %v4710_v33 = vld [vmem:[#allocation15_spill] sm:$0xff]  ;;  %v2513_v36 = vld [vmem:[#allocation9 + $0x78] sm:$0xff] }
 0x67f   :  { %2210 = vmatprep.subr.mxu0 %v2124_v35  ;;  %2281 = vmatprep.subr.mxu1 %v2126_v39  ;;  %v4712_v35 = vld [vmem:[#allocation37_spill] sm:$0xff]  ;;  %v2511_v39 = vld [vmem:[#allocation9 + $0x68] sm:$0xff] }
 0x680   :  { %2211 = vmatpush1.msra.mxu0 %v2123_v37  ;;  %2282 = vmatpush1.msra.mxu1 %v2125_v41  ;;  %v2512_v37 = vld [vmem:[#allocation9 + $0x70] sm:$0xff]  ;;  %v2509_v41 = vld [vmem:[#allocation9 + $0x58] sm:$0xff] }
 0x681   :  { %2212 = vmatprep.subr.mxu0 %v2120_v40  ;;  %2283 = vmatprep.subr.mxu1 %v2122_v43  ;;  %v2510_v40 = vld [vmem:[#allocation9 + $0x60] sm:$0xff]  ;;  %v2505_v43 = vld [vmem:[#allocation9 + $0x38] sm:$0xff] }
 0x682   :  { %2213 = vmatpush1.msra.mxu0 %v2119_v42  ;;  %2284 = vmatpush1.msra.mxu1 %v2121_v4  ;;  %v2508_v42 = vld [vmem:[#allocation9 + $0x50] sm:$0xff]  ;;  %v2503_v4 = vld [vmem:[#allocation9 + $0x28] sm:$0xff] }
 0x683   :  { %2214 = vmatprep.subr.mxu0 %v2116_v46  ;;  %2285 = vmatprep.subr.mxu1 %v2118_v45  ;;  %v2504_v46 = vld [vmem:[#allocation9 + $0x30] sm:$0xff]  ;;  %v2501_v45 = vld [vmem:[#allocation9 + $0x18] sm:$0xff] }
 0x684   :  { %2215 = vmatpush1.msra.mxu0 %v2115_v26  ;;  %2286 = vmatpush1.msra.mxu1 %v2117_v47  ;;  %v2502_v26 = vld [vmem:[#allocation9 + $0x20] sm:$0xff]  ;;  %v2500_v47 = vld [vmem:[#allocation9 + $0x10] sm:$0xff] }
 0x685   :  { %2884 = vmatprep.subr.mxu0 %v2377_v0  ;;  %2928 = vmatprep.subr.mxu1 %v2513_v36 }
 0x724   :  { %v2013_v11 = vpop.f32.mrf.mxu0  ;;  %v2084_v48 = vpop.f32.mrf.mxu1 }
 0x725   :  { %v2014_v50 = vadd.f32 %v2013_v11, %v4705_v20  ;;  %v2085_v53 = vadd.f32 %v2084_v48, %v4708_v58  ;;  %v2498_v11 = vld [vmem:[#allocation9] sm:$0xff]  ;;  %v4325_v20 = vld [vmem:[#allocation11 + $0x78] sm:$0xff]  ;;  %v4348_v48 = vld [vmem:[#allocation11 + $0x48] sm:$0xff] }
 0x726   :  { %v2015_v61 = vpop.f32.mrf.mxu0  ;;  %v2086_v49 = vpop.f32.mrf.mxu1  ;;  %v4368_v58 = vld [vmem:[#allocation11 + $0x20] sm:$0xff] }
 0x727   :  { %v2803_v51 = vmul.f32 -1.442695, %v2014_v50  ;;  %v2016_v52 = vadd.f32 %v2015_v61, %v4706_v63  ;;  %v2087_v59 = vadd.f32 %v2086_v49, %v4707_v56  ;;  %v4327_v50 = vld [vmem:[#allocation11 + $0x70] sm:$0xff]  ;;  %v4332_v61 = vld [vmem:[#allocation11 + $0x68] sm:$0xff]  ;;  %v4340_v63 = vld [vmem:[#allocation11 + $0x58] sm:$0xff] }
 0x728   :  { %v4356_v49 = vld [vmem:[#allocation11 + $0x38] sm:$0xff]  ;;  %v4360_v56 = vld [vmem:[#allocation11 + $0x30] sm:$0xff] }
 0x729   :  { %3154 = vpow2.f32 %v2803_v51  ;;  %v2804_v29 = vmul.f32 -1.442695, %v2016_v52  ;;  %v2805_v57 = vmul.f32 -1.442695, %v2087_v59  ;;  %v4336_v51 = vld [vmem:[#allocation11 + $0x60] sm:$0xff]  ;;  %v4344_v52 = vld [vmem:[#allocation11 + $0x50] sm:$0xff] }
 0x72a   :  { %v4364_v59 = vld [vmem:[#allocation11 + $0x28] sm:$0xff] }
 0x72b   :  { %3156 = vpow2.f32 %v2804_v29  ;;  %v4352_v29 = vld [vmem:[#allocation11 + $0x40] sm:$0xff] }
 0x72c   :  { %3158 = vtanh.f32 %v2085_v53 }
 0x72d   :  { %3160 = vpow2.f32 %v2805_v57  ;;  %v4713_v57 = vld [vmem:[#allocation59_spill] sm:$0xff] }
 0x736   :  { %v3155_v55 = vpop.eup %3154 }
 0x737   :  { %v2092_v60 = vadd.f32 1.0, %v3155_v55 }
 0x738   :  { %v3157_v1 = vpop.eup %3156 }
 0x739   :  { %3162 = vrcp.f32 %v2092_v60  ;;  %v2098_v2 = vadd.f32 1.0, %v3157_v1  ;;  %v3159_v54 = vpop.eup %3158 }
 0x73a   :  { %v3161_v38 = vpop.eup %3160 }
 0x73b   :  { %3164 = vrcp.f32 %v2098_v2  ;;  %v2105_v8 = vadd.f32 1.0, %v3161_v38  ;;  %v4714_v2 = vld [vmem:[#allocation61_spill] sm:$0xff] }
 0x73d   :  { %3166 = vrcp.f32 %v2105_v8 }
 0x746   :  { %v3163_v5 = vpop.eup %3162 }
 0x747   :  { %v2109_v6 = vmul.f32 %v3163_v5, %v3159_v54 }
 0x748   :  { %v3165_v7 = vpop.eup %3164 }
 0x749   :  { %v2108_v9 = vmul.f32 %v3165_v7, %v4302_v44  ;;  %v2373_v44 = vld [vmem:[#allocation8 + $0x58] sm:$0xff] }
 0x74a   :  { %v3167_v12 = vpop.eup %3166  ;;  %v4715_v7 = vld [vmem:[#allocation62_spill] sm:$0xff] }
 0x74b   :  { %v4316_v10 = vadd.f32 %v2109_v6, %v2108_v9  ;;  %v4716_v9 = vld [vmem:[#allocation60_spill] sm:$0xff] }
 0x74d   :  { %3168 = vtanh.f32 %v4316_v10 }
 0x75a   :  { %v3169_v13 = vpop.eup %3168 }
 0x75b   :  { %v2112_v14 = vmul.f32 %v3169_v13, %v3167_v12 }
 0x75d   :  { %2249 = vmatmul.mubr.f32.vlgmr.msra.gmra.mxu0 %v2112_v14  ;;  %2320 = vmatmul.mubr.f32.vlgmr.msra.gmra.mxu1 %v2112_v14 }
 0x75e   :  { %2885 = vmatpush3.msra.mxu0 %v2377_v0  ;;  %2916 = vmatprep.mubr.f32.mxu0 %v4709_v16  ;;  %v2499_v0 = vld [vmem:[#allocation9 + $0x8] sm:$0xff] }
 0x75f   :  { %2886 = vmatprep.subr.mxu0 %v2376_v15  ;;  %2929 = vmatpush3.msra.mxu1 %v2513_v36 }
 0x760   :  { %2887 = vmatpush3.msra.mxu0 %v2376_v15  ;;  %2930 = vmatprep.subr.mxu1 %v2512_v37 }
 0x761   :  { %2888 = vmatprep.subr.mxu0 %v2375_v17  ;;  %2931 = vmatpush3.msra.mxu1 %v2512_v37 }
 0x762   :  { %2889 = vmatpush3.msra.mxu0 %v2375_v17  ;;  %2932 = vmatprep.subr.mxu1 %v2511_v39 }
 0x763   :  { %2890 = vmatprep.subr.mxu0 %v2374_v18  ;;  %2933 = vmatpush3.msra.mxu1 %v2511_v39 }
 0x764   :  { %2891 = vmatpush3.msra.mxu0 %v2374_v18  ;;  %2934 = vmatprep.subr.mxu1 %v2510_v40  ;;  %v4381_v18 = vld [vmem:[%s4456_s5] ss:$0 sm:$0xff] }
 0x765   :  { %2892 = vmatprep.subr.mxu0 %v2373_v44  ;;  %2935 = vmatpush3.msra.mxu1 %v2510_v40 }
 0x766   :  { %2893 = vmatpush3.msra.mxu0 %v2373_v44  ;;  %2936 = vmatprep.subr.mxu1 %v2509_v41 }
 0x767   :  { %2894 = vmatprep.subr.mxu0 %v2372_v19  ;;  %2937 = vmatpush3.msra.mxu1 %v2509_v41 }
 0x768   :  { %2895 = vmatpush3.msra.mxu0 %v2372_v19  ;;  %2938 = vmatprep.subr.mxu1 %v2508_v42 }
 0x769   :  { %2896 = vmatprep.subr.mxu0 %v2371_v21  ;;  %2939 = vmatpush3.msra.mxu1 %v2508_v42 }
 0x76a   :  { %2897 = vmatpush3.msra.mxu0 %v2371_v21 }
 0x76b   :  { %2898 = vmatprep.subr.mxu0 %v2370_v22 }
 0x76c   :  { %2899 = vmatpush3.msra.mxu0 %v2370_v22 }
 0x76d   :  { %2900 = vmatprep.subr.mxu0 %v2369_v23 }
 0x76e   :  { %2901 = vmatpush3.msra.mxu0 %v2369_v23 }
 0x76f   :  { %2902 = vmatprep.subr.mxu0 %v2368_v24 }
 0x770   :  { %2903 = vmatpush3.msra.mxu0 %v2368_v24 }
 0x771   :  { %2904 = vmatprep.subr.mxu0 %v2367_v25 }
 0x772   :  { %2905 = vmatpush3.msra.mxu0 %v2367_v25 }
 0x773   :  { %2906 = vmatprep.subr.mxu0 %v2366_v27 }
 0x774   :  { %2907 = vmatpush3.msra.mxu0 %v2366_v27 }
 0x775   :  { %2908 = vmatprep.subr.mxu0 %v2365_v28 }
 0x776   :  { %2909 = vmatpush3.msra.mxu0 %v2365_v28 }
 0x777   :  { %2910 = vmatprep.subr.mxu0 %v2364_v30 }
 0x778   :  { %2911 = vmatpush3.msra.mxu0 %v2364_v30 }
 0x779   :  { %2912 = vmatprep.subr.mxu0 %v2363_v31 }
 0x77a   :  { %2913 = vmatpush3.msra.mxu0 %v2363_v31 }
 0x77b   :  { %2914 = vmatprep.subr.mxu0 %v2362_v32 }
 0x77c   :  { %2915 = vmatpush3.msra.mxu0 %v2362_v32 }
 0x77d   :  { %2917 = vmatmul.mubr.f32.vlgmr.msra.gmra.mxu0 %v4710_v33  ;;  %2972 = vmatprep.subr.mxu0 %v4325_v20 }
 0x77e   :  { %2919 = vmatprep.mubr.f32.mxu0 %v4711_v34  ;;  %2973 = vmatpush3.msra.mxu0 %v4325_v20 }
 0x77f   :  { %2974 = vmatprep.subr.mxu0 %v4327_v50 }
 0x780   :  { %2975 = vmatpush3.msra.mxu0 %v4327_v50 }
 0x781   :  { %2920 = vmatmul.mubr.f32.gmra.mxu0 %v4712_v35  ;;  %2976 = vmatprep.subr.mxu0 %v4332_v61 }
 0x782   :  { %2922 = vmatprep.mubr.f32.mxu0 %v4229_v62  ;;  %v2507_v62 = vld [vmem:[#allocation9 + $0x48] sm:$0xff]  ;;  %2977 = vmatpush3.msra.mxu0 %v4332_v61 }
 0x783   :  { %2940 = vmatprep.subr.mxu1 %v2507_v62  ;;  %2978 = vmatprep.subr.mxu0 %v4336_v51 }
 0x784   :  { %2941 = vmatpush3.msra.mxu1 %v2507_v62  ;;  %2979 = vmatpush3.msra.mxu0 %v4336_v51 }
 0x785   :  { %2923 = vmatmul.mubr.f32.gmra.mxu0 %v4305_v3  ;;  %v2506_v3 = vld [vmem:[#allocation9 + $0x40] sm:$0xff]  ;;  %2980 = vmatprep.subr.mxu0 %v4340_v63 }
 0x786   :  { %2925 = vmatprep.mubr.f32.mxu0 %v2112_v14  ;;  %2942 = vmatprep.subr.mxu1 %v2506_v3 }
 0x787   :  { %2943 = vmatpush3.msra.mxu1 %v2506_v3  ;;  %2981 = vmatpush3.msra.mxu0 %v4340_v63 }
 0x788   :  { %2944 = vmatprep.subr.mxu1 %v2505_v43  ;;  %2982 = vmatprep.subr.mxu0 %v4344_v52 }
 0x789   :  { %2945 = vmatpush3.msra.mxu1 %v2505_v43  ;;  %2983 = vmatpush3.msra.mxu0 %v4344_v52 }
 0x78a   :  { %2946 = vmatprep.subr.mxu1 %v2504_v46  ;;  %2984 = vmatprep.subr.mxu0 %v4348_v48 }
 0x78b   :  { %2947 = vmatpush3.msra.mxu1 %v2504_v46  ;;  %2985 = vmatpush3.msra.mxu0 %v4348_v48 }
 0x78c   :  { %2948 = vmatprep.subr.mxu1 %v2503_v4  ;;  %2986 = vmatprep.subr.mxu0 %v4352_v29 }
 0x78d   :  { %2949 = vmatpush3.msra.mxu1 %v2503_v4  ;;  %2987 = vmatpush3.msra.mxu0 %v4352_v29 }
 0x78e   :  { %2950 = vmatprep.subr.mxu1 %v2502_v26  ;;  %2988 = vmatprep.subr.mxu0 %v4356_v49 }
 0x78f   :  { %2951 = vmatpush3.msra.mxu1 %v2502_v26  ;;  %2989 = vmatpush3.msra.mxu0 %v4356_v49 }
 0x790   :  { %2952 = vmatprep.subr.mxu1 %v2501_v45  ;;  %2990 = vmatprep.subr.mxu0 %v4360_v56 }
 0x791   :  { %2953 = vmatpush3.msra.mxu1 %v2501_v45  ;;  %2991 = vmatpush3.msra.mxu0 %v4360_v56 }
 0x792   :  { %2954 = vmatprep.subr.mxu1 %v2500_v47  ;;  %2992 = vmatprep.subr.mxu0 %v4364_v59 }
 0x793   :  { %2955 = vmatpush3.msra.mxu1 %v2500_v47  ;;  %2993 = vmatpush3.msra.mxu0 %v4364_v59  ;;  %v2637_v47 = vld [vmem:[#allocation11 + $0x18] sm:$0xff] }
 0x794   :  { %2956 = vmatprep.subr.mxu1 %v2499_v0  ;;  %2994 = vmatprep.subr.mxu0 %v4368_v58 }
 0x795   :  { %2957 = vmatpush3.msra.mxu1 %v2499_v0  ;;  %2995 = vmatpush3.msra.mxu0 %v4368_v58  ;;  %v2636_v0 = vld [vmem:[#allocation11 + $0x10] sm:$0xff] }
 0x796   :  { %2958 = vmatprep.subr.mxu1 %v2498_v11  ;;  %2996 = vmatprep.subr.mxu0 %v2637_v47 }
 0x797   :  { %2959 = vmatpush3.msra.mxu1 %v2498_v11  ;;  %2997 = vmatpush3.msra.mxu0 %v2637_v47  ;;  %v2635_v11 = vld [vmem:[#allocation11 + $0x8] sm:$0xff] }
 0x798   :  { %3016 = vmatprep.subr.mxu1 %v4325_v20  ;;  %2998 = vmatprep.subr.mxu0 %v2636_v0 }
 0x799   :  { %2999 = vmatpush3.msra.mxu0 %v2636_v0 }
 0x79a   :  { %3000 = vmatprep.subr.mxu0 %v2635_v11 }
 0x79b   :  { %3001 = vmatpush3.msra.mxu0 %v2635_v11 }
 0x81d   :  { %v2250_v53 = vpop.f32.mrf.mxu0  ;;  %v2321_v38 = vpop.f32.mrf.mxu1 }
 0x81e   :  { %v2251_v55 = vadd.f32 %v2250_v53, %v4713_v57  ;;  %v2322_v12 = vadd.f32 %v2321_v38, %v4716_v9 }
 0x81f   :  { %v2252_v60 = vpop.f32.mrf.mxu0  ;;  %v2323_v6 = vpop.f32.mrf.mxu1 }
 0x820   :  { %v2806_v1 = vmul.f32 -1.442695, %v2251_v55  ;;  %v2253_v54 = vadd.f32 %v2252_v60, %v4714_v2  ;;  %v2324_v8 = vadd.f32 %v2323_v6, %v4715_v7 }
 0x822   :  { %3170 = vpow2.f32 %v2806_v1  ;;  %v2807_v5 = vmul.f32 -1.442695, %v2253_v54  ;;  %v2808_v13 = vmul.f32 -1.442695, %v2324_v8 }
 0x824   :  { %3172 = vpow2.f32 %v2807_v5 }
 0x825   :  { %3174 = vtanh.f32 %v2322_v12 }
 0x826   :  { %3176 = vpow2.f32 %v2808_v13  ;;  %v2811_v13 = vld [vmem:[%s4460_s9] ss:$0 sm:$0xff] }
 0x82f   :  { %v3171_v14 = vpop.eup %3170 }
 0x830   :  { %v2329_v15 = vadd.f32 1.0, %v3171_v14 }
 0x831   :  { %v3173_v16 = vpop.eup %3172 }
 0x832   :  { %3178 = vrcp.f32 %v2329_v15  ;;  %v2335_v17 = vadd.f32 1.0, %v3173_v16  ;;  %v3175_v44 = vpop.eup %3174 }
 0x833   :  { %v3177_v21 = vpop.eup %3176 }
 0x834   :  { %3180 = vrcp.f32 %v2335_v17  ;;  %v2342_v30 = vadd.f32 1.0, %v3177_v21 }
 0x836   :  { %3182 = vrcp.f32 %v2342_v30 }
 0x83d   :  { %v2918_v19 = vpop.f32.mrf.mxu0 }
 0x83e   :  { %v2457_v23 = vadd.f32 %v2918_v19, %v4381_v18 }
 0x83f   :  { %v3179_v22 = vpop.eup %3178  ;;  %v2451_v24 = vpop.f32.mrf.mxu0 }
 0x840   :  { %v2346_v25 = vmul.f32 %v3179_v22, %v3175_v44  ;;  %v2452_v27 = vadd.f32 %v4381_v18, %v2451_v24  ;;  %v2491_v34 = vmax.f32 %v2457_v23, 0.0 }
 0x841   :  { %v3181_v28 = vpop.eup %3180  ;;  %v2921_v31 = vpop.f32.mrf.mxu0 }
 0x842   :  { %v2345_v32 = vmul.f32 %v3181_v28, %v4316_v10  ;;  %v2490_v33 = vmax.f32 %v2452_v27, 0.0  ;;  %v2467_v35 = vadd.f32 %v2921_v31, %v4381_v18 }
 0x843   :  { %v2461_v36 = vpop.f32.mrf.mxu0  ;;  %v3183_v4 = vpop.eup %3182 }
 0x844   :  { %v2462_v37 = vadd.f32 %v4381_v18, %v2461_v36  ;;  %2960 = vmatprep.mubr.f32.mxu1 %v2490_v33  ;;  %v2347_v39 = vadd.f32 %v2346_v25, %v2345_v32  ;;  %v2493_v10 = vmax.f32 %v2467_v35, 0.0 }
 0x845   :  { %v2924_v40 = vpop.f32.mrf.mxu0  ;;  %2961 = vmatmul.mubr.f32.vlgmr.msra.gmra.mxu1 %v2491_v34 }
 0x846   :  { %v2492_v41 = vmax.f32 %v2462_v37, 0.0  ;;  %3184 = vtanh.f32 %v2347_v39  ;;  %2353 = vst [vmem:[%s4463_s12] sm:$0xff] %v2347_v39  ;;  %3032 = vmatpush3.msra.mxu1 %v4325_v20  ;;  %v2477_v42 = vadd.f32 %v2924_v40, %v4381_v18  ;;  %v2634_v20 = vld [vmem:[#allocation11] sm:$0xff] }
 0x847   :  { %v2471_v62 = vpop.f32.mrf.mxu0  ;;  %3017 = vmatprep.subr.mxu1 %v4327_v50  ;;  %3002 = vmatprep.subr.mxu0 %v2634_v20 }
 0x848   :  { %v2472_v3 = vadd.f32 %v4381_v18, %v2471_v62  ;;  %2963 = vmatprep.mubr.f32.mxu1 %v2492_v41  ;;  %3033 = vmatpush3.msra.mxu1 %v4327_v50  ;;  %v2495_v46 = vmax.f32 %v2477_v42, 0.0  ;;  %v2810_v50 = vld [vmem:[%s4458_s7] ss:$0 sm:$0xff] }
 0x849   :  { %2964 = vmatmul.mubr.f32.gmra.mxu1 %v2493_v10  ;;  %3018 = vmatprep.subr.mxu1 %v4332_v61 }
 0x84a   :  { %v2494_v43 = vmax.f32 %v2472_v3, 0.0  ;;  %3034 = vmatpush3.msra.mxu1 %v4332_v61  ;;  %3003 = vmatpush3.msra.mxu0 %v2634_v20 }
 0x84b   :  { %3019 = vmatprep.subr.mxu1 %v4336_v51 }
 0x84c   :  { %2966 = vmatprep.mubr.f32.mxu1 %v2494_v43  ;;  %3035 = vmatpush3.msra.mxu1 %v4336_v51 }
 0x84d   :  { %2967 = vmatmul.mubr.f32.gmra.mxu1 %v2495_v46  ;;  %3020 = vmatprep.subr.mxu1 %v4340_v63 }
 0x84e   :  { %3036 = vmatpush3.msra.mxu1 %v4340_v63 }
 0x84f   :  { %3021 = vmatprep.subr.mxu1 %v4344_v52 }
 0x850   :  { %3037 = vmatpush3.msra.mxu1 %v4344_v52 }
 0x851   :  { %3022 = vmatprep.subr.mxu1 %v4348_v48 }
 0x852   :  { %3038 = vmatpush3.msra.mxu1 %v4348_v48 }
 0x853   :  { %v3185_v26 = vpop.eup %3184  ;;  %3023 = vmatprep.subr.mxu1 %v4352_v29 }
 0x854   :  { %v2349_v45 = vmul.f32 %v3185_v26, %v3183_v4  ;;  %3039 = vmatpush3.msra.mxu1 %v4352_v29 }
 0x855   :  { %3024 = vmatprep.subr.mxu1 %v4356_v49 }
 0x856   :  { %2352 = vst [vmem:[%s4462_s11] sm:$0xff] %v2349_v45  ;;  %2926 = vmatmul.mubr.f32.gmra.mxu0 %v2349_v45  ;;  %3040 = vmatpush3.msra.mxu1 %v4356_v49 }
 0x857   :  { %3025 = vmatprep.subr.mxu1 %v4360_v56 }
 0x858   :  { %3041 = vmatpush3.msra.mxu1 %v4360_v56 }
 0x859   :  { %3026 = vmatprep.subr.mxu1 %v4364_v59 }
 0x85a   :  { %3042 = vmatpush3.msra.mxu1 %v4364_v59 }
 0x85b   :  { %3027 = vmatprep.subr.mxu1 %v4368_v58 }
 0x85c   :  { %3043 = vmatpush3.msra.mxu1 %v4368_v58 }
 0x85d   :  { %3028 = vmatprep.subr.mxu1 %v2637_v47 }
 0x85e   :  { %3044 = vmatpush3.msra.mxu1 %v2637_v47 }
 0x85f   :  { %3029 = vmatprep.subr.mxu1 %v2636_v0 }
 0x860   :  { %3045 = vmatpush3.msra.mxu1 %v2636_v0 }
 0x861   :  { %3030 = vmatprep.subr.mxu1 %v2635_v11 }
 0x862   :  { %3046 = vmatpush3.msra.mxu1 %v2635_v11 }
 0x863   :  { %3031 = vmatprep.subr.mxu1 %v2634_v20 }
 0x864   :  { %3047 = vmatpush3.msra.mxu1 %v2634_v20 }
 0x905   :  { %v2962_v61 = vpop.f32.mrf.mxu1 }
 0x906   :  { %v2593_v51 = vadd.f32 %v2962_v61, %v2810_v50 }
 0x907   :  { %v2587_v63 = vpop.f32.mrf.mxu1 }
 0x908   :  { %v2588_v52 = vadd.f32 %v2810_v50, %v2587_v63  ;;  %v2627_v49 = vmax.f32 %v2593_v51, 0.0 }
 0x909   :  { %v2965_v48 = vpop.f32.mrf.mxu1 }
 0x90a   :  { %v2626_v29 = vmax.f32 %v2588_v52, 0.0  ;;  %v2603_v56 = vadd.f32 %v2965_v48, %v2810_v50 }
 0x90b   :  { %v2597_v59 = vpop.f32.mrf.mxu1 }
 0x90c   :  { %v2598_v58 = vadd.f32 %v2810_v50, %v2597_v59  ;;  %3004 = vmatprep.mubr.f32.mxu0 %v2626_v29  ;;  %v2629_v57 = vmax.f32 %v2603_v56, 0.0 }
 0x90d   :  { %3005 = vmatmul.mubr.f32.vlgmr.msra.gmra.mxu0 %v2627_v49  ;;  %v2968_v55 = vpop.f32.mrf.mxu1 }
 0x90e   :  { %v2628_v53 = vmax.f32 %v2598_v58, 0.0  ;;  %v2613_v7 = vadd.f32 %v2968_v55, %v2810_v50 }
 0x90f   :  { %v2607_v60 = vpop.f32.mrf.mxu1 }
 0x910   :  { %3007 = vmatprep.mubr.f32.mxu0 %v2628_v53  ;;  %v2608_v38 = vadd.f32 %v2810_v50, %v2607_v60  ;;  %v2631_v12 = vmax.f32 %v2613_v7, 0.0 }
 0x911   :  { %3008 = vmatmul.mubr.f32.gmra.mxu0 %v2629_v57 }
 0x912   :  { %v2630_v9 = vmax.f32 %v2608_v38, 0.0 }
 0x916   :  { %v2927_v1 = vpop.f32.mrf.mxu0 }
 0x917   :  { %v2487_v2 = vadd.f32 %v2927_v1, %v4381_v18 }
 0x918   :  { %v2481_v54 = vpop.f32.mrf.mxu0 }
 0x919   :  { %v2482_v5 = vadd.f32 %v4381_v18, %v2481_v54  ;;  %v2497_v8 = vmax.f32 %v2487_v2, 0.0 }
 0x91b   :  { %v2496_v6 = vmax.f32 %v2482_v5, 0.0 }
 0x91d   :  { %2969 = vmatprep.mubr.f32.mxu1 %v2496_v6 }
 0x91e   :  { %2970 = vmatmul.mubr.f32.gmra.mxu1 %v2497_v8 }
 0x91f   :  { %3010 = vmatprep.mubr.f32.mxu1 %v2630_v9 }
 0x922   :  { %3011 = vmatmul.mubr.f32.vlgmr.msra.gmra.mxu1 %v2631_v12 }
 0x9cd   :  { %v3006_v14 = vpop.f32.mrf.mxu0 }
 0x9ce   :  { %v2729_v15 = vadd.f32 %v3006_v14, %v2811_v13 }
 0x9cf   :  { %v2723_v16 = vpop.f32.mrf.mxu0 }
 0x9d0   :  { %2763 = vst [vmem:[%s4461_s10 + $0x8] sm:$0xff] %v2729_v15  ;;  %v2724_v17 = vadd.f32 %v2811_v13, %v2723_v16 }
 0x9d1   :  { %v3009_v18 = vpop.f32.mrf.mxu0 }
 0x9d2   :  { %2762 = vst [vmem:[%s4461_s10] sm:$0xff] %v2724_v17  ;;  %v2739_v44 = vadd.f32 %v3009_v18, %v2811_v13 }
 0x9d3   :  { %v2733_v19 = vpop.f32.mrf.mxu0 }
 0x9d4   :  { %2765 = vst [vmem:[%s4461_s10 + $0x18] sm:$0xff] %v2739_v44  ;;  %v2734_v21 = vadd.f32 %v2811_v13, %v2733_v19 }
 0x9d6   :  { %2764 = vst [vmem:[%s4461_s10 + $0x10] sm:$0xff] %v2734_v21 }
 0x9de   :  { %v2971_v22 = vpop.f32.mrf.mxu1 }
 0x9df   :  { %v2623_v23 = vadd.f32 %v2971_v22, %v2810_v50 }
 0x9e0   :  { %v2617_v24 = vpop.f32.mrf.mxu1 }
 0x9e1   :  { %v2618_v25 = vadd.f32 %v2810_v50, %v2617_v24  ;;  %v2633_v31 = vmax.f32 %v2623_v23, 0.0 }
 0x9e2   :  { %v3012_v27 = vpop.f32.mrf.mxu1 }
 0x9e3   :  { %v2632_v28 = vmax.f32 %v2618_v25, 0.0  ;;  %v2749_v30 = vadd.f32 %v3012_v27, %v2811_v13 }
 0x9e4   :  { %v2743_v32 = vpop.f32.mrf.mxu1 }
 0x9e5   :  { %2767 = vst [vmem:[%s4461_s10 + $0x28] sm:$0xff] %v2749_v30  ;;  %v2744_v33 = vadd.f32 %v2811_v13, %v2743_v32  ;;  %3013 = vmatprep.mubr.f32.mxu1 %v2632_v28 }
 0x9e6   :  { %3014 = vmatmul.mubr.f32.gmra.mxu1 %v2633_v31 }
 0x9e7   :  { %2766 = vst [vmem:[%s4461_s10 + $0x20] sm:$0xff] %v2744_v33 }
 0xaa6   :  { %v3015_v34 = vpop.f32.mrf.mxu1 }
 0xaa7   :  { %v2759_v35 = vadd.f32 %v3015_v34, %v2811_v13 }
 0xaa8   :  { %v2753_v36 = vpop.f32.mrf.mxu1 }
 0xaa9   :  { %2769 = vst [vmem:[%s4461_s10 + $0x38] sm:$0xff] %v2759_v35  ;;  %v2754_v37 = vadd.f32 %v2811_v13, %v2753_v36 }
 0xaab   :  { %2768 = vst [vmem:[%s4461_s10 + $0x30] sm:$0xff] %v2754_v37 }
 0xaac   :  { %2782 = vsyncpa [#allocation5], 1 }
 0xaad   :  { %2783 = vsyncpa [#allocation7], 1 }
 0xaae   :  { %2784 = vsyncpa [#allocation10], 1 }

</bundles_post_ra>
